<compile_context>
chip_gen: v5e
topology: v5e:2x2
jax: 0.10.0
libtpu: 0.0.40
codegen_flags: <defaults>
</compile_context>

<pallas_src>
import jax
import jax.numpy as jnp
from jax.experimental import pallas as pl
from jax.experimental.pallas import tpu as pltpu


def _sigmoid(z):
    # exp (EUP) + approx reciprocal (EUP vrcp) -> keeps the divide off the VALU slots.
    return pl.reciprocal(1.0 + jnp.exp(-z), approx=True)


# ---------------------------------------------------------------------------
# Fused kernel: pool + all-task input projection (pipelined over batch tiles),
# then on the last grid step: per-task recurrence + fused classifier heads.
# ---------------------------------------------------------------------------
def _fused_kernel(x_ref, wih_ref, bias_ref, whh_ref, whead_ref, bhead_ref,
                  out_ref, gx_ref):
    # x block      : (Bb, C, D, S)          -- batch tile of the raw feature map
    # wih_ref      : (C, n*4H)   bf16       -- all tasks' W_ih^T, column-blocked per task
    # bias_ref     : (1, n*4H)   f32        -- all tasks' (b_ih + b_hh)
    # whh_ref      : (n, Hd, 4H) bf16       -- per-task W_hh^T
    # whead_ref    : (n*Hd, M)   bf16       -- all classifier heads fused
    # bhead_ref    : (1, M)      f32
    # out_ref      : (B, M)      f32        -- resident across the batch grid axis
    # gx_ref       : (B, T, n*4H) f32 VMEM scratch -- precomputed input projections
    bi = pl.program_id(0)
    nb = pl.num_programs(0)
    Bb = x_ref.shape[0]
    row0 = pl.multiple_of(bi * Bb, Bb)

    # ---- Phase 1: pool this batch tile and project it for ALL tasks at once --------
    wih = wih_ref[...]                                   # (C, n*4H) bf16, resident
    bias = bias_ref[...]                                 # (1, n*4H) f32,  resident
    for j in range(Bb):                                  # Bb is small & static
        m = jnp.mean(x_ref[j].astype(jnp.float32), axis=-1)      # (C, D)  spatial avg
        seq = m.T.astype(jnp.bfloat16)                            # (T, C)  tiny transpose
        gx = jnp.dot(seq, wih, preferred_element_type=jnp.float32) + bias   # (T, n*4H)
        gx_ref[pl.ds(row0 + j, 1)] = gx[None]

    # ---- Phase 2 (last grid step): per-task recurrence + fused heads ----------------
    @pl.when(bi == nb - 1)
    def _recurrence_and_heads():
        Bsz, T, _ = gx_ref.shape
        n_tasks, Hd, four_h = whh_ref.shape
        gx_all = gx_ref[...]                             # (B, T, n*4H) f32

        feats = []
        for task in range(n_tasks):
            # Per-task slice done ONCE (outside the time loop); 4H == 128 when Hd == 32,
            # so the slice is lane-aligned.
            gx_t = gx_all[:, :, task * four_h:(task + 1) * four_h]   # (B, T, 4H)
            whh = whh_ref[task]                                      # (Hd, 4H) bf16
            h = jnp.zeros((Bsz, Hd), jnp.float32)
            c = jnp.zeros((Bsz, Hd), jnp.float32)
            for t in range(T):                                       # T small & static
                gates = gx_t[:, t, :] + jnp.dot(h.astype(jnp.bfloat16), whh,
                                                preferred_element_type=jnp.float32)
                # PyTorch nn.LSTM gate order: i, f, g, o
                i_g = _sigmoid(gates[:, 0 * Hd:1 * Hd])
                f_g = _sigmoid(gates[:, 1 * Hd:2 * Hd])
                g_g = jnp.tanh(gates[:, 2 * Hd:3 * Hd])
                o_g = _sigmoid(gates[:, 3 * Hd:4 * Hd])
                c = f_g * c + i_g * g_g
                h = o_g * jnp.tanh(c)
            feats.append(h)                                          # decoder_out[-1]

        hcat = jnp.concatenate(feats, axis=1).astype(jnp.bfloat16)   # (B, n*Hd)
        logits = jnp.dot(hcat, whead_ref[...],
                         preferred_element_type=jnp.float32) + bhead_ref[...]
        out_ref[...] = logits.astype(out_ref.dtype)


# ---------------------------------------------------------------------------
# Wrapper
# ---------------------------------------------------------------------------
def multitask_lstm_attn_forward(x, lstm_wih, lstm_whh, lstm_bih, lstm_bhh,
                                fc_w_list, fc_b_list):
    """
    x         : (B, C, D, Hs, Ws) feature map (NCDHW, C == last_conv_size), any float dtype
    lstm_wih  : (n_tasks, 4H, C)  stacked decoder-LSTM weight_ih (PyTorch layout)
    lstm_whh  : (n_tasks, 4H, H)  stacked decoder-LSTM weight_hh
    lstm_bih  : (n_tasks, 4H)     stacked bias_ih
    lstm_bhh  : (n_tasks, 4H)     stacked bias_hh
    fc_w_list : list of (num_classes[i], n_tasks*H) classifier weights
    fc_b_list : list of (num_classes[i],)           classifier biases
    Returns the list [ (B, num_classes[i]) ] matching the PyTorch module's h_out.
    """
    B, C, D, Hs, Ws = x.shape
    T = D
    S = Hs * Ws
    n_tasks, four_h, _ = lstm_wih.shape
    Hd = four_h // 4
    nG = n_tasks * four_h
    num_out = [int(w.shape[0]) for w in fc_w_list]
    M = int(sum(num_out))

    # Metadata-only reshape; keep the native dtype (cast to f32 happens inside the kernel).
    x4 = x.reshape(B, C, D, S)

    # Batch tile: big enough to amortize per-grid-step overhead, small enough that the
    # double-buffered tile stays well inside the default scoped VMEM on every TPU
    # generation (16 MiB v5e / 32 MiB v6e, 64 MiB physical v7x).
    per_sample_bytes = C * D * S * x4.dtype.itemsize
    Bb = max(1, min(B, 16, (2 * 1024 * 1024) // max(1, per_sample_bytes)))
    while B % Bb:
        Bb -= 1
    nb = B // Bb

    # ---- Tiny host-side weight prep (bf16 MXU operands, f32 biases) -----------------
    wih_all = jnp.transpose(lstm_wih, (2, 0, 1)).reshape(C, nG).astype(jnp.bfloat16)
    whh_all = jnp.transpose(lstm_whh, (0, 2, 1)).astype(jnp.bfloat16)          # (n, Hd, 4H)
    bias_all = (lstm_bih + lstm_bhh).reshape(1, nG).astype(jnp.float32)        # (1, n*4H)
    w_head = jnp.concatenate([w.T for w in fc_w_list], axis=1).astype(jnp.bfloat16)  # (n*Hd, M)
    b_head = jnp.concatenate(fc_b_list).reshape(1, M).astype(jnp.float32)      # (1, M)

    flops = int(B * C * D * S                      # pooling adds
                + 2 * B * T * C * nG               # fused all-task input projection
                + n_tasks * T * 2 * B * Hd * four_h  # recurrent matmuls
                + 2 * B * n_tasks * Hd * M)        # fused classifier heads
    transcendentals = int(n_tasks * T * B * 8 * Hd)
    bytes_accessed = int(x4.size * x4.dtype.itemsize
                         + 2 * (C * nG + n_tasks * Hd * four_h + n_tasks * Hd * M)
                         + 4 * (nG + M + B * M))

    logits = pl.pallas_call(
        _fused_kernel,
        out_shape=jax.ShapeDtypeStruct((B, M), jnp.float32),
        grid_spec=pltpu.PrefetchScalarGridSpec(
            num_scalar_prefetch=0,
            grid=(nb,),
            in_specs=[
                pl.BlockSpec((Bb, C, D, S), lambda b: (b, 0, 0, 0)),
                pl.BlockSpec((C, nG), lambda b: (0, 0)),             # resident
                pl.BlockSpec((1, nG), lambda b: (0, 0)),             # resident
                pl.BlockSpec((n_tasks, Hd, four_h), lambda b: (0, 0, 0)),
                pl.BlockSpec((n_tasks * Hd, M), lambda b: (0, 0)),
                pl.BlockSpec((1, M), lambda b: (0, 0)),
            ],
            out_specs=pl.BlockSpec((B, M), lambda b: (0, 0)),        # resident output
            scratch_shapes=[pltpu.VMEM((B, T, nG), jnp.float32)],
        ),
        # Output + gx scratch are resident across the batch axis -> must be "arbitrary".
        compiler_params=pltpu.CompilerParams(dimension_semantics=("arbitrary",)),
        cost_estimate=pl.CostEstimate(flops=flops,
                                      transcendentals=transcendentals,
                                      bytes_accessed=bytes_accessed),
    )(x4, wih_all, bias_all, whh_all, w_head, b_head)

    # Split the fused logits back into the per-task list (matches PyTorch h_out).
    outs, off = [], 0
    for m in num_out:
        outs.append(logits[:, off:off + m])
        off += m
    return outs


# ---------------------------------------------------------------------------
# Pure-JAX f32 reference mirroring the PyTorch forward (eval mode)
# ---------------------------------------------------------------------------
def _reference_forward(x, lstm_wih, lstm_whh, lstm_bih, lstm_bhh, fc_w_list, fc_b_list):
    B = x.shape[0]
    pooled = jnp.mean(x.astype(jnp.float32), axis=(3, 4))   # avg_pool3d(kernel=(1,H,W))
    seq = jnp.transpose(pooled, (2, 0, 1))                  # (T, B, C)
    n_tasks = lstm_wih.shape[0]
    Hd = lstm_whh.shape[2]
    feats = []
    for i in range(n_tasks):
        h = jnp.zeros((B, Hd), jnp.float32)
        c = jnp.zeros((B, Hd), jnp.float32)
        for t in range(seq.shape[0]):
            gates = seq[t] @ lstm_wih[i].T + lstm_bih[i] + h @ lstm_whh[i].T + lstm_bhh[i]
            i_g = 1.0 / (1.0 + jnp.exp(-gates[:, 0 * Hd:1 * Hd]))
            f_g = 1.0 / (1.0 + jnp.exp(-gates[:, 1 * Hd:2 * Hd]))
            g_g = jnp.tanh(gates[:, 2 * Hd:3 * Hd])
            o_g = 1.0 / (1.0 + jnp.exp(-gates[:, 3 * Hd:4 * Hd]))
            c = f_g * c + i_g * g_g
            h = o_g * jnp.tanh(c)
        feats.append(h)                                      # decoder_out[-1]
    h_temp = jnp.concatenate(feats, axis=1)                  # (B, n*H)
    return [h_temp @ w.T + b for w, b in zip(fc_w_list, fc_b_list)]


if __name__ == "__main__":
    # Small deterministic config consistent with the module:
    #   last_conv_size=32 (== LSTM hidden, hidden_multiplier=1), max_seq_len=8 (depth D),
    #   spatial 8x8, two classification tasks with 3 and 5 classes.
    B = 2
    last_conv_size = 32
    max_seq_len = 8
    Hs = Ws = 8
    num_classes = [3, 5]                 # all > 0 (the module drops non-positive entries)
    n_tasks = len(num_classes)
    Hd = last_conv_size                  # hidden_multiplier == 1

    key = jax.random.PRNGKey(0)
    ks = jax.random.split(key, 5 + 2 * n_tasks)
    x = jax.random.normal(ks[0], (B, last_conv_size, max_seq_len, Hs, Ws), jnp.float32)
    lstm_wih = 0.1 * jax.random.normal(ks[1], (n_tasks, 4 * Hd, last_conv_size), jnp.float32)
    lstm_whh = 0.1 * jax.random.normal(ks[2], (n_tasks, 4 * Hd, Hd), jnp.float32)
    lstm_bih = 0.1 * jax.random.normal(ks[3], (n_tasks, 4 * Hd), jnp.float32)
    lstm_bhh = 0.1 * jax.random.normal(ks[4], (n_tasks, 4 * Hd), jnp.float32)
    fc_w_list = [0.1 * jax.random.normal(ks[5 + 2 * i], (num_classes[i], n_tasks * Hd), jnp.float32)
                 for i in range(n_tasks)]
    fc_b_list = [0.1 * jax.random.normal(ks[6 + 2 * i], (num_classes[i],), jnp.float32)
                 for i in range(n_tasks)]

    outs = multitask_lstm_attn_forward(x, lstm_wih, lstm_whh, lstm_bih, lstm_bhh,
                                       fc_w_list, fc_b_list)
    jax.block_until_ready(outs)

    refs = _reference_forward(x, lstm_wih, lstm_whh, lstm_bih, lstm_bhh,
                              fc_w_list, fc_b_list)
    # Tolerance accounts for bf16 MXU operands (f32 accumulation) + approx reciprocal
    # in the sigmoid; the reference is pure f32.
    for o, r, m in zip(outs, refs, num_classes):
        assert o.shape == (B, m)
        assert jnp.allclose(o, r, atol=5e-3, rtol=5e-2), (o, r, jnp.max(jnp.abs(o - r)))
    print("KERNEL_OK")
</pallas_src>

<mosaic_0001>
module attributes {stable_mosaic.version = 11 : i64} {
  func.func @_fused_kernel(%arg0: i32, %arg1: memref<2x32x8x64xf32, #tpu.memory_space<vmem>>, %arg2: memref<32x256xbf16, #tpu.memory_space<vmem>>, %arg3: memref<1x256xf32, #tpu.memory_space<vmem>>, %arg4: memref<2x32x128xbf16, #tpu.memory_space<vmem>>, %arg5: memref<64x8xbf16, #tpu.memory_space<vmem>>, %arg6: memref<1x8xf32, #tpu.memory_space<vmem>>, %arg7: memref<2x8xf32, #tpu.memory_space<vmem>>, %arg8: memref<2x8x256xf32, #tpu.memory_space<vmem>>) attributes {dimension_semantics = [#tpu.dimension_semantics<arbitrary>], iteration_bounds = array<i64: 1>, scalar_prefetch = 0 : i64, scratch_operands = 1 : i64, tpu.core_type = #tpu.core_type<tc>, window_params = [{transform_indices = @transform_0, window_bounds = array<i64: 2, 32, 8, 64>}, {pipeline_mode = #tpu.pipeline_mode<synchronous>, transform_indices = @transform_1, window_bounds = array<i64: 32, 256>}, {pipeline_mode = #tpu.pipeline_mode<synchronous>, transform_indices = @transform_2, window_bounds = array<i64: 1, 256>}, {pipeline_mode = #tpu.pipeline_mode<synchronous>, transform_indices = @transform_3, window_bounds = array<i64: 2, 32, 128>}, {pipeline_mode = #tpu.pipeline_mode<synchronous>, transform_indices = @transform_4, window_bounds = array<i64: 64, 8>}, {pipeline_mode = #tpu.pipeline_mode<synchronous>, transform_indices = @transform_5, window_bounds = array<i64: 1, 8>}, {pipeline_mode = #tpu.pipeline_mode<synchronous>, transform_indices = @transform_6, window_bounds = array<i64: 2, 8>}]} {
    %c2_i32 = arith.constant 2 : i32
    %0 = arith.muli %arg0, %c2_i32 : i32
    %1 = tpu.assume_multiple %0, 2 : i32
    %c0 = arith.constant 0 : index
    %c0_0 = arith.constant 0 : index
    %2 = vector.load %arg2[%c0, %c0_0] : memref<32x256xbf16, #tpu.memory_space<vmem>>, vector<32x256xbf16>
    %c0_1 = arith.constant 0 : index
    %c0_2 = arith.constant 0 : index
    %3 = vector.load %arg3[%c0_1, %c0_2] : memref<1x256xf32, #tpu.memory_space<vmem>>, vector<1x256xf32>
    %c0_3 = arith.constant 0 : index
    %c0_4 = arith.constant 0 : index
    %c0_5 = arith.constant 0 : index
    %c0_6 = arith.constant 0 : index
    %4 = vector.load %arg1[%c0_3, %c0_4, %c0_5, %c0_6] : memref<2x32x8x64xf32, #tpu.memory_space<vmem>>, vector<1x32x8x64xf32>
    %5 = vector.shape_cast %4 : vector<1x32x8x64xf32> to vector<32x8x64xf32>
    %cst = arith.constant dense<0.000000e+00> : vector<32x8xf32>
    %6 = vector.multi_reduction <add>, %5, %cst [2] : vector<32x8x64xf32> to vector<32x8xf32>
    %cst_7 = arith.constant 6.400000e+01 : f32
    %7 = vector.broadcast %cst_7 : f32 to vector<32x8xf32>
    %8 = arith.divf %6, %7 : vector<32x8xf32>
    %9 = tpu.transpose %8, [1, 0] : vector<32x8xf32> -> vector<8x32xf32>
    %10 = arith.truncf %9 : vector<8x32xf32> to vector<8x32xbf16>
    %cst_8 = arith.constant dense<0.000000e+00> : vector<8x256xf32>
    %11 = tpu.matmul %10, %2, %cst_8 {dimension_numbers = #tpu.dot_dimension_numbers<[1], [0], [0], [1], [0, 0, 1, 1], [], []>} : vector<8x32xbf16>, vector<32x256xbf16>, vector<8x256xf32> -> vector<8x256xf32>
    %12 = vector.broadcast %3 : vector<1x256xf32> to vector<8x256xf32>
    %13 = arith.addf %11, %12 : vector<8x256xf32>
    %14 = vector.shape_cast %13 : vector<8x256xf32> to vector<1x8x256xf32>
    %c0_i32 = arith.constant 0 : i32
    %15 = arith.addi %1, %c0_i32 : i32
    %16 = arith.index_cast %15 : i32 to index
    %c0_9 = arith.constant 0 : index
    %c0_10 = arith.constant 0 : index
    %17 = vector.load %arg8[%16, %c0_9, %c0_10] : memref<2x8x256xf32, #tpu.memory_space<vmem>>, vector<1x8x256xf32>
    tpu.vector_store %arg8[%16, %c0_9, %c0_10], %14 {strides = array<i32>} : memref<2x8x256xf32, #tpu.memory_space<vmem>>, vector<1x8x256xf32>,
    %c1 = arith.constant 1 : index
    %c0_11 = arith.constant 0 : index
    %c0_12 = arith.constant 0 : index
    %c0_13 = arith.constant 0 : index
    %18 = vector.load %arg1[%c1, %c0_11, %c0_12, %c0_13] : memref<2x32x8x64xf32, #tpu.memory_space<vmem>>, vector<1x32x8x64xf32>
    %19 = vector.shape_cast %18 : vector<1x32x8x64xf32> to vector<32x8x64xf32>
    %cst_14 = arith.constant dense<0.000000e+00> : vector<32x8xf32>
    %20 = vector.multi_reduction <add>, %19, %cst_14 [2] : vector<32x8x64xf32> to vector<32x8xf32>
    %cst_15 = arith.constant 6.400000e+01 : f32
    %21 = vector.broadcast %cst_15 : f32 to vector<32x8xf32>
    %22 = arith.divf %20, %21 : vector<32x8xf32>
    %23 = tpu.transpose %22, [1, 0] : vector<32x8xf32> -> vector<8x32xf32>
    %24 = arith.truncf %23 : vector<8x32xf32> to vector<8x32xbf16>
    %cst_16 = arith.constant dense<0.000000e+00> : vector<8x256xf32>
    %25 = tpu.matmul %24, %2, %cst_16 {dimension_numbers = #tpu.dot_dimension_numbers<[1], [0], [0], [1], [0, 0, 1, 1], [], []>} : vector<8x32xbf16>, vector<32x256xbf16>, vector<8x256xf32> -> vector<8x256xf32>
    %26 = vector.broadcast %3 : vector<1x256xf32> to vector<8x256xf32>
    %27 = arith.addf %25, %26 : vector<8x256xf32>
    %28 = vector.shape_cast %27 : vector<8x256xf32> to vector<1x8x256xf32>
    %c1_i32 = arith.constant 1 : i32
    %29 = arith.addi %1, %c1_i32 : i32
    %30 = arith.index_cast %29 : i32 to index
    %c0_17 = arith.constant 0 : index
    %c0_18 = arith.constant 0 : index
    %31 = vector.load %arg8[%30, %c0_17, %c0_18] : memref<2x8x256xf32, #tpu.memory_space<vmem>>, vector<1x8x256xf32>
    tpu.vector_store %arg8[%30, %c0_17, %c0_18], %28 {strides = array<i32>} : memref<2x8x256xf32, #tpu.memory_space<vmem>>, vector<1x8x256xf32>,
    %c0_i32_19 = arith.constant 0 : i32
    %32 = arith.cmpi eq, %arg0, %c0_i32_19 : i32
    %33 = arith.extui %32 : i1 to i32
    %c0_i32_20 = arith.constant 0 : i32
    %34 = arith.cmpi ne, %33, %c0_i32_20 : i32
    scf.if %34 {
      %c0_21 = arith.constant 0 : index
      %c0_22 = arith.constant 0 : index
      %c0_23 = arith.constant 0 : index
      %35 = vector.load %arg8[%c0_21, %c0_22, %c0_23] : memref<2x8x256xf32, #tpu.memory_space<vmem>>, vector<2x8x256xf32>
      %36 = vector.extract_strided_slice %35 {offsets = [0, 0, 0], sizes = [2, 8, 128], strides = [1, 1, 1]} : vector<2x8x256xf32> to vector<2x8x128xf32>
      %c0_24 = arith.constant 0 : index
      %c0_25 = arith.constant 0 : index
      %c0_26 = arith.constant 0 : index
      %37 = vector.load %arg4[%c0_24, %c0_25, %c0_26] : memref<2x32x128xbf16, #tpu.memory_space<vmem>>, vector<1x32x128xbf16>
      %38 = vector.shape_cast %37 : vector<1x32x128xbf16> to vector<32x128xbf16>
      %cst_27 = arith.constant 0.000000e+00 : f32
      %39 = vector.broadcast %cst_27 : f32 to vector<2x32xf32>
      %cst_28 = arith.constant 0.000000e+00 : f32
      %40 = vector.broadcast %cst_28 : f32 to vector<2x32xf32>
      %41 = vector.extract_strided_slice %36 {offsets = [0, 0, 0], sizes = [2, 1, 128], strides = [1, 1, 1]} : vector<2x8x128xf32> to vector<2x1x128xf32>
      %42 = vector.shape_cast %41 : vector<2x1x128xf32> to vector<2x128xf32>
      %43 = arith.truncf %39 : vector<2x32xf32> to vector<2x32xbf16>
      %cst_29 = arith.constant dense<0.000000e+00> : vector<2x128xf32>
      %44 = tpu.matmul %43, %38, %cst_29 {dimension_numbers = #tpu.dot_dimension_numbers<[1], [0], [0], [1], [0, 0, 1, 1], [], []>} : vector<2x32xbf16>, vector<32x128xbf16>, vector<2x128xf32> -> vector<2x128xf32>
      %45 = arith.addf %42, %44 : vector<2x128xf32>
      %46 = vector.extract_strided_slice %45 {offsets = [0, 0], sizes = [2, 32], strides = [1, 1]} : vector<2x128xf32> to vector<2x32xf32>
      %cst_30 = arith.constant 0.000000e+00 : f32
      %47 = vector.broadcast %cst_30 : f32 to vector<2x32xf32>
      %48 = arith.subf %47, %46 : vector<2x32xf32>
      %49 = math.exp %48 : vector<2x32xf32>
      %cst_31 = arith.constant 1.000000e+00 : f32
      %50 = vector.broadcast %cst_31 : f32 to vector<2x32xf32>
      %51 = arith.addf %50, %49 : vector<2x32xf32>
      %52 = tpu.reciprocal %51 {approx = true} : vector<2x32xf32> -> vector<2x32xf32>
      %53 = vector.extract_strided_slice %45 {offsets = [0, 32], sizes = [2, 32], strides = [1, 1]} : vector<2x128xf32> to vector<2x32xf32>
      %cst_32 = arith.constant 0.000000e+00 : f32
      %54 = vector.broadcast %cst_32 : f32 to vector<2x32xf32>
      %55 = arith.subf %54, %53 : vector<2x32xf32>
      %56 = math.exp %55 : vector<2x32xf32>
      %cst_33 = arith.constant 1.000000e+00 : f32
      %57 = vector.broadcast %cst_33 : f32 to vector<2x32xf32>
      %58 = arith.addf %57, %56 : vector<2x32xf32>
      %59 = tpu.reciprocal %58 {approx = true} : vector<2x32xf32> -> vector<2x32xf32>
      %60 = vector.extract_strided_slice %45 {offsets = [0, 64], sizes = [2, 32], strides = [1, 1]} : vector<2x128xf32> to vector<2x32xf32>
      %61 = math.tanh %60 : vector<2x32xf32>
      %62 = vector.extract_strided_slice %45 {offsets = [0, 96], sizes = [2, 32], strides = [1, 1]} : vector<2x128xf32> to vector<2x32xf32>
      %cst_34 = arith.constant 0.000000e+00 : f32
      %63 = vector.broadcast %cst_34 : f32 to vector<2x32xf32>
      %64 = arith.subf %63, %62 : vector<2x32xf32>
      %65 = math.exp %64 : vector<2x32xf32>
      %cst_35 = arith.constant 1.000000e+00 : f32
      %66 = vector.broadcast %cst_35 : f32 to vector<2x32xf32>
      %67 = arith.addf %66, %65 : vector<2x32xf32>
      %68 = tpu.reciprocal %67 {approx = true} : vector<2x32xf32> -> vector<2x32xf32>
      %69 = arith.mulf %59, %40 : vector<2x32xf32>
      %70 = arith.mulf %52, %61 : vector<2x32xf32>
      %71 = arith.addf %69, %70 : vector<2x32xf32>
      %72 = math.tanh %71 : vector<2x32xf32>
      %73 = arith.mulf %68, %72 : vector<2x32xf32>
      %74 = vector.extract_strided_slice %36 {offsets = [0, 1, 0], sizes = [2, 1, 128], strides = [1, 1, 1]} : vector<2x8x128xf32> to vector<2x1x128xf32>
      %75 = vector.shape_cast %74 : vector<2x1x128xf32> to vector<2x128xf32>
      %76 = arith.truncf %73 : vector<2x32xf32> to vector<2x32xbf16>
      %cst_36 = arith.constant dense<0.000000e+00> : vector<2x128xf32>
      %77 = tpu.matmul %76, %38, %cst_36 {dimension_numbers = #tpu.dot_dimension_numbers<[1], [0], [0], [1], [0, 0, 1, 1], [], []>} : vector<2x32xbf16>, vector<32x128xbf16>, vector<2x128xf32> -> vector<2x128xf32>
      %78 = arith.addf %75, %77 : vector<2x128xf32>
      %79 = vector.extract_strided_slice %78 {offsets = [0, 0], sizes = [2, 32], strides = [1, 1]} : vector<2x128xf32> to vector<2x32xf32>
      %cst_37 = arith.constant 0.000000e+00 : f32
      %80 = vector.broadcast %cst_37 : f32 to vector<2x32xf32>
      %81 = arith.subf %80, %79 : vector<2x32xf32>
      %82 = math.exp %81 : vector<2x32xf32>
      %cst_38 = arith.constant 1.000000e+00 : f32
      %83 = vector.broadcast %cst_38 : f32 to vector<2x32xf32>
      %84 = arith.addf %83, %82 : vector<2x32xf32>
      %85 = tpu.reciprocal %84 {approx = true} : vector<2x32xf32> -> vector<2x32xf32>
      %86 = vector.extract_strided_slice %78 {offsets = [0, 32], sizes = [2, 32], strides = [1, 1]} : vector<2x128xf32> to vector<2x32xf32>
      %cst_39 = arith.constant 0.000000e+00 : f32
      %87 = vector.broadcast %cst_39 : f32 to vector<2x32xf32>
      %88 = arith.subf %87, %86 : vector<2x32xf32>
      %89 = math.exp %88 : vector<2x32xf32>
      %cst_40 = arith.constant 1.000000e+00 : f32
      %90 = vector.broadcast %cst_40 : f32 to vector<2x32xf32>
      %91 = arith.addf %90, %89 : vector<2x32xf32>
      %92 = tpu.reciprocal %91 {approx = true} : vector<2x32xf32> -> vector<2x32xf32>
      %93 = vector.extract_strided_slice %78 {offsets = [0, 64], sizes = [2, 32], strides = [1, 1]} : vector<2x128xf32> to vector<2x32xf32>
      %94 = math.tanh %93 : vector<2x32xf32>
      %95 = vector.extract_strided_slice %78 {offsets = [0, 96], sizes = [2, 32], strides = [1, 1]} : vector<2x128xf32> to vector<2x32xf32>
      %cst_41 = arith.constant 0.000000e+00 : f32
      %96 = vector.broadcast %cst_41 : f32 to vector<2x32xf32>
      %97 = arith.subf %96, %95 : vector<2x32xf32>
      %98 = math.exp %97 : vector<2x32xf32>
      %cst_42 = arith.constant 1.000000e+00 : f32
      %99 = vector.broadcast %cst_42 : f32 to vector<2x32xf32>
      %100 = arith.addf %99, %98 : vector<2x32xf32>
      %101 = tpu.reciprocal %100 {approx = true} : vector<2x32xf32> -> vector<2x32xf32>
      %102 = arith.mulf %92, %71 : vector<2x32xf32>
      %103 = arith.mulf %85, %94 : vector<2x32xf32>
      %104 = arith.addf %102, %103 : vector<2x32xf32>
      %105 = math.tanh %104 : vector<2x32xf32>
      %106 = arith.mulf %101, %105 : vector<2x32xf32>
      %107 = vector.extract_strided_slice %36 {offsets = [0, 2, 0], sizes = [2, 1, 128], strides = [1, 1, 1]} : vector<2x8x128xf32> to vector<2x1x128xf32>
      %108 = vector.shape_cast %107 : vector<2x1x128xf32> to vector<2x128xf32>
      %109 = arith.truncf %106 : vector<2x32xf32> to vector<2x32xbf16>
      %cst_43 = arith.constant dense<0.000000e+00> : vector<2x128xf32>
      %110 = tpu.matmul %109, %38, %cst_43 {dimension_numbers = #tpu.dot_dimension_numbers<[1], [0], [0], [1], [0, 0, 1, 1], [], []>} : vector<2x32xbf16>, vector<32x128xbf16>, vector<2x128xf32> -> vector<2x128xf32>
      %111 = arith.addf %108, %110 : vector<2x128xf32>
      %112 = vector.extract_strided_slice %111 {offsets = [0, 0], sizes = [2, 32], strides = [1, 1]} : vector<2x128xf32> to vector<2x32xf32>
      %cst_44 = arith.constant 0.000000e+00 : f32
      %113 = vector.broadcast %cst_44 : f32 to vector<2x32xf32>
      %114 = arith.subf %113, %112 : vector<2x32xf32>
      %115 = math.exp %114 : vector<2x32xf32>
      %cst_45 = arith.constant 1.000000e+00 : f32
      %116 = vector.broadcast %cst_45 : f32 to vector<2x32xf32>
      %117 = arith.addf %116, %115 : vector<2x32xf32>
      %118 = tpu.reciprocal %117 {approx = true} : vector<2x32xf32> -> vector<2x32xf32>
      %119 = vector.extract_strided_slice %111 {offsets = [0, 32], sizes = [2, 32], strides = [1, 1]} : vector<2x128xf32> to vector<2x32xf32>
      %cst_46 = arith.constant 0.000000e+00 : f32
      %120 = vector.broadcast %cst_46 : f32 to vector<2x32xf32>
      %121 = arith.subf %120, %119 : vector<2x32xf32>
      %122 = math.exp %121 : vector<2x32xf32>
      %cst_47 = arith.constant 1.000000e+00 : f32
      %123 = vector.broadcast %cst_47 : f32 to vector<2x32xf32>
      %124 = arith.addf %123, %122 : vector<2x32xf32>
      %125 = tpu.reciprocal %124 {approx = true} : vector<2x32xf32> -> vector<2x32xf32>
      %126 = vector.extract_strided_slice %111 {offsets = [0, 64], sizes = [2, 32], strides = [1, 1]} : vector<2x128xf32> to vector<2x32xf32>
      %127 = math.tanh %126 : vector<2x32xf32>
      %128 = vector.extract_strided_slice %111 {offsets = [0, 96], sizes = [2, 32], strides = [1, 1]} : vector<2x128xf32> to vector<2x32xf32>
      %cst_48 = arith.constant 0.000000e+00 : f32
      %129 = vector.broadcast %cst_48 : f32 to vector<2x32xf32>
      %130 = arith.subf %129, %128 : vector<2x32xf32>
      %131 = math.exp %130 : vector<2x32xf32>
      %cst_49 = arith.constant 1.000000e+00 : f32
      %132 = vector.broadcast %cst_49 : f32 to vector<2x32xf32>
      %133 = arith.addf %132, %131 : vector<2x32xf32>
      %134 = tpu.reciprocal %133 {approx = true} : vector<2x32xf32> -> vector<2x32xf32>
      %135 = arith.mulf %125, %104 : vector<2x32xf32>
      %136 = arith.mulf %118, %127 : vector<2x32xf32>
      %137 = arith.addf %135, %136 : vector<2x32xf32>
      %138 = math.tanh %137 : vector<2x32xf32>
      %139 = arith.mulf %134, %138 : vector<2x32xf32>
      %140 = vector.extract_strided_slice %36 {offsets = [0, 3, 0], sizes = [2, 1, 128], strides = [1, 1, 1]} : vector<2x8x128xf32> to vector<2x1x128xf32>
      %141 = vector.shape_cast %140 : vector<2x1x128xf32> to vector<2x128xf32>
      %142 = arith.truncf %139 : vector<2x32xf32> to vector<2x32xbf16>
      %cst_50 = arith.constant dense<0.000000e+00> : vector<2x128xf32>
      %143 = tpu.matmul %142, %38, %cst_50 {dimension_numbers = #tpu.dot_dimension_numbers<[1], [0], [0], [1], [0, 0, 1, 1], [], []>} : vector<2x32xbf16>, vector<32x128xbf16>, vector<2x128xf32> -> vector<2x128xf32>
      %144 = arith.addf %141, %143 : vector<2x128xf32>
      %145 = vector.extract_strided_slice %144 {offsets = [0, 0], sizes = [2, 32], strides = [1, 1]} : vector<2x128xf32> to vector<2x32xf32>
      %cst_51 = arith.constant 0.000000e+00 : f32
      %146 = vector.broadcast %cst_51 : f32 to vector<2x32xf32>
      %147 = arith.subf %146, %145 : vector<2x32xf32>
      %148 = math.exp %147 : vector<2x32xf32>
      %cst_52 = arith.constant 1.000000e+00 : f32
      %149 = vector.broadcast %cst_52 : f32 to vector<2x32xf32>
      %150 = arith.addf %149, %148 : vector<2x32xf32>
      %151 = tpu.reciprocal %150 {approx = true} : vector<2x32xf32> -> vector<2x32xf32>
      %152 = vector.extract_strided_slice %144 {offsets = [0, 32], sizes = [2, 32], strides = [1, 1]} : vector<2x128xf32> to vector<2x32xf32>
      %cst_53 = arith.constant 0.000000e+00 : f32
      %153 = vector.broadcast %cst_53 : f32 to vector<2x32xf32>
      %154 = arith.subf %153, %152 : vector<2x32xf32>
      %155 = math.exp %154 : vector<2x32xf32>
      %cst_54 = arith.constant 1.000000e+00 : f32
      %156 = vector.broadcast %cst_54 : f32 to vector<2x32xf32>
      %157 = arith.addf %156, %155 : vector<2x32xf32>
      %158 = tpu.reciprocal %157 {approx = true} : vector<2x32xf32> -> vector<2x32xf32>
      %159 = vector.extract_strided_slice %144 {offsets = [0, 64], sizes = [2, 32], strides = [1, 1]} : vector<2x128xf32> to vector<2x32xf32>
      %160 = math.tanh %159 : vector<2x32xf32>
      %161 = vector.extract_strided_slice %144 {offsets = [0, 96], sizes = [2, 32], strides = [1, 1]} : vector<2x128xf32> to vector<2x32xf32>
      %cst_55 = arith.constant 0.000000e+00 : f32
      %162 = vector.broadcast %cst_55 : f32 to vector<2x32xf32>
      %163 = arith.subf %162, %161 : vector<2x32xf32>
      %164 = math.exp %163 : vector<2x32xf32>
      %cst_56 = arith.constant 1.000000e+00 : f32
      %165 = vector.broadcast %cst_56 : f32 to vector<2x32xf32>
      %166 = arith.addf %165, %164 : vector<2x32xf32>
      %167 = tpu.reciprocal %166 {approx = true} : vector<2x32xf32> -> vector<2x32xf32>
      %168 = arith.mulf %158, %137 : vector<2x32xf32>
      %169 = arith.mulf %151, %160 : vector<2x32xf32>
      %170 = arith.addf %168, %169 : vector<2x32xf32>
      %171 = math.tanh %170 : vector<2x32xf32>
      %172 = arith.mulf %167, %171 : vector<2x32xf32>
      %173 = vector.extract_strided_slice %36 {offsets = [0, 4, 0], sizes = [2, 1, 128], strides = [1, 1, 1]} : vector<2x8x128xf32> to vector<2x1x128xf32>
      %174 = vector.shape_cast %173 : vector<2x1x128xf32> to vector<2x128xf32>
      %175 = arith.truncf %172 : vector<2x32xf32> to vector<2x32xbf16>
      %cst_57 = arith.constant dense<0.000000e+00> : vector<2x128xf32>
      %176 = tpu.matmul %175, %38, %cst_57 {dimension_numbers = #tpu.dot_dimension_numbers<[1], [0], [0], [1], [0, 0, 1, 1], [], []>} : vector<2x32xbf16>, vector<32x128xbf16>, vector<2x128xf32> -> vector<2x128xf32>
      %177 = arith.addf %174, %176 : vector<2x128xf32>
      %178 = vector.extract_strided_slice %177 {offsets = [0, 0], sizes = [2, 32], strides = [1, 1]} : vector<2x128xf32> to vector<2x32xf32>
      %cst_58 = arith.constant 0.000000e+00 : f32
      %179 = vector.broadcast %cst_58 : f32 to vector<2x32xf32>
      %180 = arith.subf %179, %178 : vector<2x32xf32>
      %181 = math.exp %180 : vector<2x32xf32>
      %cst_59 = arith.constant 1.000000e+00 : f32
      %182 = vector.broadcast %cst_59 : f32 to vector<2x32xf32>
      %183 = arith.addf %182, %181 : vector<2x32xf32>
      %184 = tpu.reciprocal %183 {approx = true} : vector<2x32xf32> -> vector<2x32xf32>
      %185 = vector.extract_strided_slice %177 {offsets = [0, 32], sizes = [2, 32], strides = [1, 1]} : vector<2x128xf32> to vector<2x32xf32>
      %cst_60 = arith.constant 0.000000e+00 : f32
      %186 = vector.broadcast %cst_60 : f32 to vector<2x32xf32>
      %187 = arith.subf %186, %185 : vector<2x32xf32>
      %188 = math.exp %187 : vector<2x32xf32>
      %cst_61 = arith.constant 1.000000e+00 : f32
      %189 = vector.broadcast %cst_61 : f32 to vector<2x32xf32>
      %190 = arith.addf %189, %188 : vector<2x32xf32>
      %191 = tpu.reciprocal %190 {approx = true} : vector<2x32xf32> -> vector<2x32xf32>
      %192 = vector.extract_strided_slice %177 {offsets = [0, 64], sizes = [2, 32], strides = [1, 1]} : vector<2x128xf32> to vector<2x32xf32>
      %193 = math.tanh %192 : vector<2x32xf32>
      %194 = vector.extract_strided_slice %177 {offsets = [0, 96], sizes = [2, 32], strides = [1, 1]} : vector<2x128xf32> to vector<2x32xf32>
      %cst_62 = arith.constant 0.000000e+00 : f32
      %195 = vector.broadcast %cst_62 : f32 to vector<2x32xf32>
      %196 = arith.subf %195, %194 : vector<2x32xf32>
      %197 = math.exp %196 : vector<2x32xf32>
      %cst_63 = arith.constant 1.000000e+00 : f32
      %198 = vector.broadcast %cst_63 : f32 to vector<2x32xf32>
      %199 = arith.addf %198, %197 : vector<2x32xf32>
      %200 = tpu.reciprocal %199 {approx = true} : vector<2x32xf32> -> vector<2x32xf32>
      %201 = arith.mulf %191, %170 : vector<2x32xf32>
      %202 = arith.mulf %184, %193 : vector<2x32xf32>
      %203 = arith.addf %201, %202 : vector<2x32xf32>
      %204 = math.tanh %203 : vector<2x32xf32>
      %205 = arith.mulf %200, %204 : vector<2x32xf32>
      %206 = vector.extract_strided_slice %36 {offsets = [0, 5, 0], sizes = [2, 1, 128], strides = [1, 1, 1]} : vector<2x8x128xf32> to vector<2x1x128xf32>
      %207 = vector.shape_cast %206 : vector<2x1x128xf32> to vector<2x128xf32>
      %208 = arith.truncf %205 : vector<2x32xf32> to vector<2x32xbf16>
      %cst_64 = arith.constant dense<0.000000e+00> : vector<2x128xf32>
      %209 = tpu.matmul %208, %38, %cst_64 {dimension_numbers = #tpu.dot_dimension_numbers<[1], [0], [0], [1], [0, 0, 1, 1], [], []>} : vector<2x32xbf16>, vector<32x128xbf16>, vector<2x128xf32> -> vector<2x128xf32>
      %210 = arith.addf %207, %209 : vector<2x128xf32>
      %211 = vector.extract_strided_slice %210 {offsets = [0, 0], sizes = [2, 32], strides = [1, 1]} : vector<2x128xf32> to vector<2x32xf32>
      %cst_65 = arith.constant 0.000000e+00 : f32
      %212 = vector.broadcast %cst_65 : f32 to vector<2x32xf32>
      %213 = arith.subf %212, %211 : vector<2x32xf32>
      %214 = math.exp %213 : vector<2x32xf32>
      %cst_66 = arith.constant 1.000000e+00 : f32
      %215 = vector.broadcast %cst_66 : f32 to vector<2x32xf32>
      %216 = arith.addf %215, %214 : vector<2x32xf32>
      %217 = tpu.reciprocal %216 {approx = true} : vector<2x32xf32> -> vector<2x32xf32>
      %218 = vector.extract_strided_slice %210 {offsets = [0, 32], sizes = [2, 32], strides = [1, 1]} : vector<2x128xf32> to vector<2x32xf32>
      %cst_67 = arith.constant 0.000000e+00 : f32
      %219 = vector.broadcast %cst_67 : f32 to vector<2x32xf32>
      %220 = arith.subf %219, %218 : vector<2x32xf32>
      %221 = math.exp %220 : vector<2x32xf32>
      %cst_68 = arith.constant 1.000000e+00 : f32
      %222 = vector.broadcast %cst_68 : f32 to vector<2x32xf32>
      %223 = arith.addf %222, %221 : vector<2x32xf32>
      %224 = tpu.reciprocal %223 {approx = true} : vector<2x32xf32> -> vector<2x32xf32>
      %225 = vector.extract_strided_slice %210 {offsets = [0, 64], sizes = [2, 32], strides = [1, 1]} : vector<2x128xf32> to vector<2x32xf32>
      %226 = math.tanh %225 : vector<2x32xf32>
      %227 = vector.extract_strided_slice %210 {offsets = [0, 96], sizes = [2, 32], strides = [1, 1]} : vector<2x128xf32> to vector<2x32xf32>
      %cst_69 = arith.constant 0.000000e+00 : f32
      %228 = vector.broadcast %cst_69 : f32 to vector<2x32xf32>
      %229 = arith.subf %228, %227 : vector<2x32xf32>
      %230 = math.exp %229 : vector<2x32xf32>
      %cst_70 = arith.constant 1.000000e+00 : f32
      %231 = vector.broadcast %cst_70 : f32 to vector<2x32xf32>
      %232 = arith.addf %231, %230 : vector<2x32xf32>
      %233 = tpu.reciprocal %232 {approx = true} : vector<2x32xf32> -> vector<2x32xf32>
      %234 = arith.mulf %224, %203 : vector<2x32xf32>
      %235 = arith.mulf %217, %226 : vector<2x32xf32>
      %236 = arith.addf %234, %235 : vector<2x32xf32>
      %237 = math.tanh %236 : vector<2x32xf32>
      %238 = arith.mulf %233, %237 : vector<2x32xf32>
      %239 = vector.extract_strided_slice %36 {offsets = [0, 6, 0], sizes = [2, 1, 128], strides = [1, 1, 1]} : vector<2x8x128xf32> to vector<2x1x128xf32>
      %240 = vector.shape_cast %239 : vector<2x1x128xf32> to vector<2x128xf32>
      %241 = arith.truncf %238 : vector<2x32xf32> to vector<2x32xbf16>
      %cst_71 = arith.constant dense<0.000000e+00> : vector<2x128xf32>
      %242 = tpu.matmul %241, %38, %cst_71 {dimension_numbers = #tpu.dot_dimension_numbers<[1], [0], [0], [1], [0, 0, 1, 1], [], []>} : vector<2x32xbf16>, vector<32x128xbf16>, vector<2x128xf32> -> vector<2x128xf32>
      %243 = arith.addf %240, %242 : vector<2x128xf32>
      %244 = vector.extract_strided_slice %243 {offsets = [0, 0], sizes = [2, 32], strides = [1, 1]} : vector<2x128xf32> to vector<2x32xf32>
      %cst_72 = arith.constant 0.000000e+00 : f32
      %245 = vector.broadcast %cst_72 : f32 to vector<2x32xf32>
      %246 = arith.subf %245, %244 : vector<2x32xf32>
      %247 = math.exp %246 : vector<2x32xf32>
      %cst_73 = arith.constant 1.000000e+00 : f32
      %248 = vector.broadcast %cst_73 : f32 to vector<2x32xf32>
      %249 = arith.addf %248, %247 : vector<2x32xf32>
      %250 = tpu.reciprocal %249 {approx = true} : vector<2x32xf32> -> vector<2x32xf32>
      %251 = vector.extract_strided_slice %243 {offsets = [0, 32], sizes = [2, 32], strides = [1, 1]} : vector<2x128xf32> to vector<2x32xf32>
      %cst_74 = arith.constant 0.000000e+00 : f32
      %252 = vector.broadcast %cst_74 : f32 to vector<2x32xf32>
      %253 = arith.subf %252, %251 : vector<2x32xf32>
      %254 = math.exp %253 : vector<2x32xf32>
      %cst_75 = arith.constant 1.000000e+00 : f32
      %255 = vector.broadcast %cst_75 : f32 to vector<2x32xf32>
      %256 = arith.addf %255, %254 : vector<2x32xf32>
      %257 = tpu.reciprocal %256 {approx = true} : vector<2x32xf32> -> vector<2x32xf32>
      %258 = vector.extract_strided_slice %243 {offsets = [0, 64], sizes = [2, 32], strides = [1, 1]} : vector<2x128xf32> to vector<2x32xf32>
      %259 = math.tanh %258 : vector<2x32xf32>
      %260 = vector.extract_strided_slice %243 {offsets = [0, 96], sizes = [2, 32], strides = [1, 1]} : vector<2x128xf32> to vector<2x32xf32>
      %cst_76 = arith.constant 0.000000e+00 : f32
      %261 = vector.broadcast %cst_76 : f32 to vector<2x32xf32>
      %262 = arith.subf %261, %260 : vector<2x32xf32>
      %263 = math.exp %262 : vector<2x32xf32>
      %cst_77 = arith.constant 1.000000e+00 : f32
      %264 = vector.broadcast %cst_77 : f32 to vector<2x32xf32>
      %265 = arith.addf %264, %263 : vector<2x32xf32>
      %266 = tpu.reciprocal %265 {approx = true} : vector<2x32xf32> -> vector<2x32xf32>
      %267 = arith.mulf %257, %236 : vector<2x32xf32>
      %268 = arith.mulf %250, %259 : vector<2x32xf32>
      %269 = arith.addf %267, %268 : vector<2x32xf32>
      %270 = math.tanh %269 : vector<2x32xf32>
      %271 = arith.mulf %266, %270 : vector<2x32xf32>
      %272 = vector.extract_strided_slice %36 {offsets = [0, 7, 0], sizes = [2, 1, 128], strides = [1, 1, 1]} : vector<2x8x128xf32> to vector<2x1x128xf32>
      %273 = vector.shape_cast %272 : vector<2x1x128xf32> to vector<2x128xf32>
      %274 = arith.truncf %271 : vector<2x32xf32> to vector<2x32xbf16>
      %cst_78 = arith.constant dense<0.000000e+00> : vector<2x128xf32>
      %275 = tpu.matmul %274, %38, %cst_78 {dimension_numbers = #tpu.dot_dimension_numbers<[1], [0], [0], [1], [0, 0, 1, 1], [], []>} : vector<2x32xbf16>, vector<32x128xbf16>, vector<2x128xf32> -> vector<2x128xf32>
      %276 = arith.addf %273, %275 : vector<2x128xf32>
      %277 = vector.extract_strided_slice %276 {offsets = [0, 0], sizes = [2, 32], strides = [1, 1]} : vector<2x128xf32> to vector<2x32xf32>
      %cst_79 = arith.constant 0.000000e+00 : f32
      %278 = vector.broadcast %cst_79 : f32 to vector<2x32xf32>
      %279 = arith.subf %278, %277 : vector<2x32xf32>
      %280 = math.exp %279 : vector<2x32xf32>
      %cst_80 = arith.constant 1.000000e+00 : f32
      %281 = vector.broadcast %cst_80 : f32 to vector<2x32xf32>
      %282 = arith.addf %281, %280 : vector<2x32xf32>
      %283 = tpu.reciprocal %282 {approx = true} : vector<2x32xf32> -> vector<2x32xf32>
      %284 = vector.extract_strided_slice %276 {offsets = [0, 32], sizes = [2, 32], strides = [1, 1]} : vector<2x128xf32> to vector<2x32xf32>
      %cst_81 = arith.constant 0.000000e+00 : f32
      %285 = vector.broadcast %cst_81 : f32 to vector<2x32xf32>
      %286 = arith.subf %285, %284 : vector<2x32xf32>
      %287 = math.exp %286 : vector<2x32xf32>
      %cst_82 = arith.constant 1.000000e+00 : f32
      %288 = vector.broadcast %cst_82 : f32 to vector<2x32xf32>
      %289 = arith.addf %288, %287 : vector<2x32xf32>
      %290 = tpu.reciprocal %289 {approx = true} : vector<2x32xf32> -> vector<2x32xf32>
      %291 = vector.extract_strided_slice %276 {offsets = [0, 64], sizes = [2, 32], strides = [1, 1]} : vector<2x128xf32> to vector<2x32xf32>
      %292 = math.tanh %291 : vector<2x32xf32>
      %293 = vector.extract_strided_slice %276 {offsets = [0, 96], sizes = [2, 32], strides = [1, 1]} : vector<2x128xf32> to vector<2x32xf32>
      %cst_83 = arith.constant 0.000000e+00 : f32
      %294 = vector.broadcast %cst_83 : f32 to vector<2x32xf32>
      %295 = arith.subf %294, %293 : vector<2x32xf32>
      %296 = math.exp %295 : vector<2x32xf32>
      %cst_84 = arith.constant 1.000000e+00 : f32
      %297 = vector.broadcast %cst_84 : f32 to vector<2x32xf32>
      %298 = arith.addf %297, %296 : vector<2x32xf32>
      %299 = tpu.reciprocal %298 {approx = true} : vector<2x32xf32> -> vector<2x32xf32>
      %300 = arith.mulf %290, %269 : vector<2x32xf32>
      %301 = arith.mulf %283, %292 : vector<2x32xf32>
      %302 = arith.addf %300, %301 : vector<2x32xf32>
      %303 = math.tanh %302 : vector<2x32xf32>
      %304 = arith.mulf %299, %303 : vector<2x32xf32>
      %305 = vector.extract_strided_slice %35 {offsets = [0, 0, 128], sizes = [2, 8, 128], strides = [1, 1, 1]} : vector<2x8x256xf32> to vector<2x8x128xf32>
      %c1_85 = arith.constant 1 : index
      %c0_86 = arith.constant 0 : index
      %c0_87 = arith.constant 0 : index
      %306 = vector.load %arg4[%c1_85, %c0_86, %c0_87] : memref<2x32x128xbf16, #tpu.memory_space<vmem>>, vector<1x32x128xbf16>
      %307 = vector.shape_cast %306 : vector<1x32x128xbf16> to vector<32x128xbf16>
      %cst_88 = arith.constant 0.000000e+00 : f32
      %308 = vector.broadcast %cst_88 : f32 to vector<2x32xf32>
      %cst_89 = arith.constant 0.000000e+00 : f32
      %309 = vector.broadcast %cst_89 : f32 to vector<2x32xf32>
      %310 = vector.extract_strided_slice %305 {offsets = [0, 0, 0], sizes = [2, 1, 128], strides = [1, 1, 1]} : vector<2x8x128xf32> to vector<2x1x128xf32>
      %311 = vector.shape_cast %310 : vector<2x1x128xf32> to vector<2x128xf32>
      %312 = arith.truncf %308 : vector<2x32xf32> to vector<2x32xbf16>
      %cst_90 = arith.constant dense<0.000000e+00> : vector<2x128xf32>
      %313 = tpu.matmul %312, %307, %cst_90 {dimension_numbers = #tpu.dot_dimension_numbers<[1], [0], [0], [1], [0, 0, 1, 1], [], []>} : vector<2x32xbf16>, vector<32x128xbf16>, vector<2x128xf32> -> vector<2x128xf32>
      %314 = arith.addf %311, %313 : vector<2x128xf32>
      %315 = vector.extract_strided_slice %314 {offsets = [0, 0], sizes = [2, 32], strides = [1, 1]} : vector<2x128xf32> to vector<2x32xf32>
      %cst_91 = arith.constant 0.000000e+00 : f32
      %316 = vector.broadcast %cst_91 : f32 to vector<2x32xf32>
      %317 = arith.subf %316, %315 : vector<2x32xf32>
      %318 = math.exp %317 : vector<2x32xf32>
      %cst_92 = arith.constant 1.000000e+00 : f32
      %319 = vector.broadcast %cst_92 : f32 to vector<2x32xf32>
      %320 = arith.addf %319, %318 : vector<2x32xf32>
      %321 = tpu.reciprocal %320 {approx = true} : vector<2x32xf32> -> vector<2x32xf32>
      %322 = vector.extract_strided_slice %314 {offsets = [0, 32], sizes = [2, 32], strides = [1, 1]} : vector<2x128xf32> to vector<2x32xf32>
      %cst_93 = arith.constant 0.000000e+00 : f32
      %323 = vector.broadcast %cst_93 : f32 to vector<2x32xf32>
      %324 = arith.subf %323, %322 : vector<2x32xf32>
      %325 = math.exp %324 : vector<2x32xf32>
      %cst_94 = arith.constant 1.000000e+00 : f32
      %326 = vector.broadcast %cst_94 : f32 to vector<2x32xf32>
      %327 = arith.addf %326, %325 : vector<2x32xf32>
      %328 = tpu.reciprocal %327 {approx = true} : vector<2x32xf32> -> vector<2x32xf32>
      %329 = vector.extract_strided_slice %314 {offsets = [0, 64], sizes = [2, 32], strides = [1, 1]} : vector<2x128xf32> to vector<2x32xf32>
      %330 = math.tanh %329 : vector<2x32xf32>
      %331 = vector.extract_strided_slice %314 {offsets = [0, 96], sizes = [2, 32], strides = [1, 1]} : vector<2x128xf32> to vector<2x32xf32>
      %cst_95 = arith.constant 0.000000e+00 : f32
      %332 = vector.broadcast %cst_95 : f32 to vector<2x32xf32>
      %333 = arith.subf %332, %331 : vector<2x32xf32>
      %334 = math.exp %333 : vector<2x32xf32>
      %cst_96 = arith.constant 1.000000e+00 : f32
      %335 = vector.broadcast %cst_96 : f32 to vector<2x32xf32>
      %336 = arith.addf %335, %334 : vector<2x32xf32>
      %337 = tpu.reciprocal %336 {approx = true} : vector<2x32xf32> -> vector<2x32xf32>
      %338 = arith.mulf %328, %309 : vector<2x32xf32>
      %339 = arith.mulf %321, %330 : vector<2x32xf32>
      %340 = arith.addf %338, %339 : vector<2x32xf32>
      %341 = math.tanh %340 : vector<2x32xf32>
      %342 = arith.mulf %337, %341 : vector<2x32xf32>
      %343 = vector.extract_strided_slice %305 {offsets = [0, 1, 0], sizes = [2, 1, 128], strides = [1, 1, 1]} : vector<2x8x128xf32> to vector<2x1x128xf32>
      %344 = vector.shape_cast %343 : vector<2x1x128xf32> to vector<2x128xf32>
      %345 = arith.truncf %342 : vector<2x32xf32> to vector<2x32xbf16>
      %cst_97 = arith.constant dense<0.000000e+00> : vector<2x128xf32>
      %346 = tpu.matmul %345, %307, %cst_97 {dimension_numbers = #tpu.dot_dimension_numbers<[1], [0], [0], [1], [0, 0, 1, 1], [], []>} : vector<2x32xbf16>, vector<32x128xbf16>, vector<2x128xf32> -> vector<2x128xf32>
      %347 = arith.addf %344, %346 : vector<2x128xf32>
      %348 = vector.extract_strided_slice %347 {offsets = [0, 0], sizes = [2, 32], strides = [1, 1]} : vector<2x128xf32> to vector<2x32xf32>
      %cst_98 = arith.constant 0.000000e+00 : f32
      %349 = vector.broadcast %cst_98 : f32 to vector<2x32xf32>
      %350 = arith.subf %349, %348 : vector<2x32xf32>
      %351 = math.exp %350 : vector<2x32xf32>
      %cst_99 = arith.constant 1.000000e+00 : f32
      %352 = vector.broadcast %cst_99 : f32 to vector<2x32xf32>
      %353 = arith.addf %352, %351 : vector<2x32xf32>
      %354 = tpu.reciprocal %353 {approx = true} : vector<2x32xf32> -> vector<2x32xf32>
      %355 = vector.extract_strided_slice %347 {offsets = [0, 32], sizes = [2, 32], strides = [1, 1]} : vector<2x128xf32> to vector<2x32xf32>
      %cst_100 = arith.constant 0.000000e+00 : f32
      %356 = vector.broadcast %cst_100 : f32 to vector<2x32xf32>
      %357 = arith.subf %356, %355 : vector<2x32xf32>
      %358 = math.exp %357 : vector<2x32xf32>
      %cst_101 = arith.constant 1.000000e+00 : f32
      %359 = vector.broadcast %cst_101 : f32 to vector<2x32xf32>
      %360 = arith.addf %359, %358 : vector<2x32xf32>
      %361 = tpu.reciprocal %360 {approx = true} : vector<2x32xf32> -> vector<2x32xf32>
      %362 = vector.extract_strided_slice %347 {offsets = [0, 64], sizes = [2, 32], strides = [1, 1]} : vector<2x128xf32> to vector<2x32xf32>
      %363 = math.tanh %362 : vector<2x32xf32>
      %364 = vector.extract_strided_slice %347 {offsets = [0, 96], sizes = [2, 32], strides = [1, 1]} : vector<2x128xf32> to vector<2x32xf32>
      %cst_102 = arith.constant 0.000000e+00 : f32
      %365 = vector.broadcast %cst_102 : f32 to vector<2x32xf32>
      %366 = arith.subf %365, %364 : vector<2x32xf32>
      %367 = math.exp %366 : vector<2x32xf32>
      %cst_103 = arith.constant 1.000000e+00 : f32
      %368 = vector.broadcast %cst_103 : f32 to vector<2x32xf32>
      %369 = arith.addf %368, %367 : vector<2x32xf32>
      %370 = tpu.reciprocal %369 {approx = true} : vector<2x32xf32> -> vector<2x32xf32>
      %371 = arith.mulf %361, %340 : vector<2x32xf32>
      %372 = arith.mulf %354, %363 : vector<2x32xf32>
      %373 = arith.addf %371, %372 : vector<2x32xf32>
      %374 = math.tanh %373 : vector<2x32xf32>
      %375 = arith.mulf %370, %374 : vector<2x32xf32>
      %376 = vector.extract_strided_slice %305 {offsets = [0, 2, 0], sizes = [2, 1, 128], strides = [1, 1, 1]} : vector<2x8x128xf32> to vector<2x1x128xf32>
      %377 = vector.shape_cast %376 : vector<2x1x128xf32> to vector<2x128xf32>
      %378 = arith.truncf %375 : vector<2x32xf32> to vector<2x32xbf16>
      %cst_104 = arith.constant dense<0.000000e+00> : vector<2x128xf32>
      %379 = tpu.matmul %378, %307, %cst_104 {dimension_numbers = #tpu.dot_dimension_numbers<[1], [0], [0], [1], [0, 0, 1, 1], [], []>} : vector<2x32xbf16>, vector<32x128xbf16>, vector<2x128xf32> -> vector<2x128xf32>
      %380 = arith.addf %377, %379 : vector<2x128xf32>
      %381 = vector.extract_strided_slice %380 {offsets = [0, 0], sizes = [2, 32], strides = [1, 1]} : vector<2x128xf32> to vector<2x32xf32>
      %cst_105 = arith.constant 0.000000e+00 : f32
      %382 = vector.broadcast %cst_105 : f32 to vector<2x32xf32>
      %383 = arith.subf %382, %381 : vector<2x32xf32>
      %384 = math.exp %383 : vector<2x32xf32>
      %cst_106 = arith.constant 1.000000e+00 : f32
      %385 = vector.broadcast %cst_106 : f32 to vector<2x32xf32>
      %386 = arith.addf %385, %384 : vector<2x32xf32>
      %387 = tpu.reciprocal %386 {approx = true} : vector<2x32xf32> -> vector<2x32xf32>
      %388 = vector.extract_strided_slice %380 {offsets = [0, 32], sizes = [2, 32], strides = [1, 1]} : vector<2x128xf32> to vector<2x32xf32>
      %cst_107 = arith.constant 0.000000e+00 : f32
      %389 = vector.broadcast %cst_107 : f32 to vector<2x32xf32>
      %390 = arith.subf %389, %388 : vector<2x32xf32>
      %391 = math.exp %390 : vector<2x32xf32>
      %cst_108 = arith.constant 1.000000e+00 : f32
      %392 = vector.broadcast %cst_108 : f32 to vector<2x32xf32>
      %393 = arith.addf %392, %391 : vector<2x32xf32>
      %394 = tpu.reciprocal %393 {approx = true} : vector<2x32xf32> -> vector<2x32xf32>
      %395 = vector.extract_strided_slice %380 {offsets = [0, 64], sizes = [2, 32], strides = [1, 1]} : vector<2x128xf32> to vector<2x32xf32>
      %396 = math.tanh %395 : vector<2x32xf32>
      %397 = vector.extract_strided_slice %380 {offsets = [0, 96], sizes = [2, 32], strides = [1, 1]} : vector<2x128xf32> to vector<2x32xf32>
      %cst_109 = arith.constant 0.000000e+00 : f32
      %398 = vector.broadcast %cst_109 : f32 to vector<2x32xf32>
      %399 = arith.subf %398, %397 : vector<2x32xf32>
      %400 = math.exp %399 : vector<2x32xf32>
      %cst_110 = arith.constant 1.000000e+00 : f32
      %401 = vector.broadcast %cst_110 : f32 to vector<2x32xf32>
      %402 = arith.addf %401, %400 : vector<2x32xf32>
      %403 = tpu.reciprocal %402 {approx = true} : vector<2x32xf32> -> vector<2x32xf32>
      %404 = arith.mulf %394, %373 : vector<2x32xf32>
      %405 = arith.mulf %387, %396 : vector<2x32xf32>
      %406 = arith.addf %404, %405 : vector<2x32xf32>
      %407 = math.tanh %406 : vector<2x32xf32>
      %408 = arith.mulf %403, %407 : vector<2x32xf32>
      %409 = vector.extract_strided_slice %305 {offsets = [0, 3, 0], sizes = [2, 1, 128], strides = [1, 1, 1]} : vector<2x8x128xf32> to vector<2x1x128xf32>
      %410 = vector.shape_cast %409 : vector<2x1x128xf32> to vector<2x128xf32>
      %411 = arith.truncf %408 : vector<2x32xf32> to vector<2x32xbf16>
      %cst_111 = arith.constant dense<0.000000e+00> : vector<2x128xf32>
      %412 = tpu.matmul %411, %307, %cst_111 {dimension_numbers = #tpu.dot_dimension_numbers<[1], [0], [0], [1], [0, 0, 1, 1], [], []>} : vector<2x32xbf16>, vector<32x128xbf16>, vector<2x128xf32> -> vector<2x128xf32>
      %413 = arith.addf %410, %412 : vector<2x128xf32>
      %414 = vector.extract_strided_slice %413 {offsets = [0, 0], sizes = [2, 32], strides = [1, 1]} : vector<2x128xf32> to vector<2x32xf32>
      %cst_112 = arith.constant 0.000000e+00 : f32
      %415 = vector.broadcast %cst_112 : f32 to vector<2x32xf32>
      %416 = arith.subf %415, %414 : vector<2x32xf32>
      %417 = math.exp %416 : vector<2x32xf32>
      %cst_113 = arith.constant 1.000000e+00 : f32
      %418 = vector.broadcast %cst_113 : f32 to vector<2x32xf32>
      %419 = arith.addf %418, %417 : vector<2x32xf32>
      %420 = tpu.reciprocal %419 {approx = true} : vector<2x32xf32> -> vector<2x32xf32>
      %421 = vector.extract_strided_slice %413 {offsets = [0, 32], sizes = [2, 32], strides = [1, 1]} : vector<2x128xf32> to vector<2x32xf32>
      %cst_114 = arith.constant 0.000000e+00 : f32
      %422 = vector.broadcast %cst_114 : f32 to vector<2x32xf32>
      %423 = arith.subf %422, %421 : vector<2x32xf32>
      %424 = math.exp %423 : vector<2x32xf32>
      %cst_115 = arith.constant 1.000000e+00 : f32
      %425 = vector.broadcast %cst_115 : f32 to vector<2x32xf32>
      %426 = arith.addf %425, %424 : vector<2x32xf32>
      %427 = tpu.reciprocal %426 {approx = true} : vector<2x32xf32> -> vector<2x32xf32>
      %428 = vector.extract_strided_slice %413 {offsets = [0, 64], sizes = [2, 32], strides = [1, 1]} : vector<2x128xf32> to vector<2x32xf32>
      %429 = math.tanh %428 : vector<2x32xf32>
      %430 = vector.extract_strided_slice %413 {offsets = [0, 96], sizes = [2, 32], strides = [1, 1]} : vector<2x128xf32> to vector<2x32xf32>
      %cst_116 = arith.constant 0.000000e+00 : f32
      %431 = vector.broadcast %cst_116 : f32 to vector<2x32xf32>
      %432 = arith.subf %431, %430 : vector<2x32xf32>
      %433 = math.exp %432 : vector<2x32xf32>
      %cst_117 = arith.constant 1.000000e+00 : f32
      %434 = vector.broadcast %cst_117 : f32 to vector<2x32xf32>
      %435 = arith.addf %434, %433 : vector<2x32xf32>
      %436 = tpu.reciprocal %435 {approx = true} : vector<2x32xf32> -> vector<2x32xf32>
      %437 = arith.mulf %427, %406 : vector<2x32xf32>
      %438 = arith.mulf %420, %429 : vector<2x32xf32>
      %439 = arith.addf %437, %438 : vector<2x32xf32>
      %440 = math.tanh %439 : vector<2x32xf32>
      %441 = arith.mulf %436, %440 : vector<2x32xf32>
      %442 = vector.extract_strided_slice %305 {offsets = [0, 4, 0], sizes = [2, 1, 128], strides = [1, 1, 1]} : vector<2x8x128xf32> to vector<2x1x128xf32>
      %443 = vector.shape_cast %442 : vector<2x1x128xf32> to vector<2x128xf32>
      %444 = arith.truncf %441 : vector<2x32xf32> to vector<2x32xbf16>
      %cst_118 = arith.constant dense<0.000000e+00> : vector<2x128xf32>
      %445 = tpu.matmul %444, %307, %cst_118 {dimension_numbers = #tpu.dot_dimension_numbers<[1], [0], [0], [1], [0, 0, 1, 1], [], []>} : vector<2x32xbf16>, vector<32x128xbf16>, vector<2x128xf32> -> vector<2x128xf32>
      %446 = arith.addf %443, %445 : vector<2x128xf32>
      %447 = vector.extract_strided_slice %446 {offsets = [0, 0], sizes = [2, 32], strides = [1, 1]} : vector<2x128xf32> to vector<2x32xf32>
      %cst_119 = arith.constant 0.000000e+00 : f32
      %448 = vector.broadcast %cst_119 : f32 to vector<2x32xf32>
      %449 = arith.subf %448, %447 : vector<2x32xf32>
      %450 = math.exp %449 : vector<2x32xf32>
      %cst_120 = arith.constant 1.000000e+00 : f32
      %451 = vector.broadcast %cst_120 : f32 to vector<2x32xf32>
      %452 = arith.addf %451, %450 : vector<2x32xf32>
      %453 = tpu.reciprocal %452 {approx = true} : vector<2x32xf32> -> vector<2x32xf32>
      %454 = vector.extract_strided_slice %446 {offsets = [0, 32], sizes = [2, 32], strides = [1, 1]} : vector<2x128xf32> to vector<2x32xf32>
      %cst_121 = arith.constant 0.000000e+00 : f32
      %455 = vector.broadcast %cst_121 : f32 to vector<2x32xf32>
      %456 = arith.subf %455, %454 : vector<2x32xf32>
      %457 = math.exp %456 : vector<2x32xf32>
      %cst_122 = arith.constant 1.000000e+00 : f32
      %458 = vector.broadcast %cst_122 : f32 to vector<2x32xf32>
      %459 = arith.addf %458, %457 : vector<2x32xf32>
      %460 = tpu.reciprocal %459 {approx = true} : vector<2x32xf32> -> vector<2x32xf32>
      %461 = vector.extract_strided_slice %446 {offsets = [0, 64], sizes = [2, 32], strides = [1, 1]} : vector<2x128xf32> to vector<2x32xf32>
      %462 = math.tanh %461 : vector<2x32xf32>
      %463 = vector.extract_strided_slice %446 {offsets = [0, 96], sizes = [2, 32], strides = [1, 1]} : vector<2x128xf32> to vector<2x32xf32>
      %cst_123 = arith.constant 0.000000e+00 : f32
      %464 = vector.broadcast %cst_123 : f32 to vector<2x32xf32>
      %465 = arith.subf %464, %463 : vector<2x32xf32>
      %466 = math.exp %465 : vector<2x32xf32>
      %cst_124 = arith.constant 1.000000e+00 : f32
      %467 = vector.broadcast %cst_124 : f32 to vector<2x32xf32>
      %468 = arith.addf %467, %466 : vector<2x32xf32>
      %469 = tpu.reciprocal %468 {approx = true} : vector<2x32xf32> -> vector<2x32xf32>
      %470 = arith.mulf %460, %439 : vector<2x32xf32>
      %471 = arith.mulf %453, %462 : vector<2x32xf32>
      %472 = arith.addf %470, %471 : vector<2x32xf32>
      %473 = math.tanh %472 : vector<2x32xf32>
      %474 = arith.mulf %469, %473 : vector<2x32xf32>
      %475 = vector.extract_strided_slice %305 {offsets = [0, 5, 0], sizes = [2, 1, 128], strides = [1, 1, 1]} : vector<2x8x128xf32> to vector<2x1x128xf32>
      %476 = vector.shape_cast %475 : vector<2x1x128xf32> to vector<2x128xf32>
      %477 = arith.truncf %474 : vector<2x32xf32> to vector<2x32xbf16>
      %cst_125 = arith.constant dense<0.000000e+00> : vector<2x128xf32>
      %478 = tpu.matmul %477, %307, %cst_125 {dimension_numbers = #tpu.dot_dimension_numbers<[1], [0], [0], [1], [0, 0, 1, 1], [], []>} : vector<2x32xbf16>, vector<32x128xbf16>, vector<2x128xf32> -> vector<2x128xf32>
      %479 = arith.addf %476, %478 : vector<2x128xf32>
      %480 = vector.extract_strided_slice %479 {offsets = [0, 0], sizes = [2, 32], strides = [1, 1]} : vector<2x128xf32> to vector<2x32xf32>
      %cst_126 = arith.constant 0.000000e+00 : f32
      %481 = vector.broadcast %cst_126 : f32 to vector<2x32xf32>
      %482 = arith.subf %481, %480 : vector<2x32xf32>
      %483 = math.exp %482 : vector<2x32xf32>
      %cst_127 = arith.constant 1.000000e+00 : f32
      %484 = vector.broadcast %cst_127 : f32 to vector<2x32xf32>
      %485 = arith.addf %484, %483 : vector<2x32xf32>
      %486 = tpu.reciprocal %485 {approx = true} : vector<2x32xf32> -> vector<2x32xf32>
      %487 = vector.extract_strided_slice %479 {offsets = [0, 32], sizes = [2, 32], strides = [1, 1]} : vector<2x128xf32> to vector<2x32xf32>
      %cst_128 = arith.constant 0.000000e+00 : f32
      %488 = vector.broadcast %cst_128 : f32 to vector<2x32xf32>
      %489 = arith.subf %488, %487 : vector<2x32xf32>
      %490 = math.exp %489 : vector<2x32xf32>
      %cst_129 = arith.constant 1.000000e+00 : f32
      %491 = vector.broadcast %cst_129 : f32 to vector<2x32xf32>
      %492 = arith.addf %491, %490 : vector<2x32xf32>
      %493 = tpu.reciprocal %492 {approx = true} : vector<2x32xf32> -> vector<2x32xf32>
      %494 = vector.extract_strided_slice %479 {offsets = [0, 64], sizes = [2, 32], strides = [1, 1]} : vector<2x128xf32> to vector<2x32xf32>
      %495 = math.tanh %494 : vector<2x32xf32>
      %496 = vector.extract_strided_slice %479 {offsets = [0, 96], sizes = [2, 32], strides = [1, 1]} : vector<2x128xf32> to vector<2x32xf32>
      %cst_130 = arith.constant 0.000000e+00 : f32
      %497 = vector.broadcast %cst_130 : f32 to vector<2x32xf32>
      %498 = arith.subf %497, %496 : vector<2x32xf32>
      %499 = math.exp %498 : vector<2x32xf32>
      %cst_131 = arith.constant 1.000000e+00 : f32
      %500 = vector.broadcast %cst_131 : f32 to vector<2x32xf32>
      %501 = arith.addf %500, %499 : vector<2x32xf32>
      %502 = tpu.reciprocal %501 {approx = true} : vector<2x32xf32> -> vector<2x32xf32>
      %503 = arith.mulf %493, %472 : vector<2x32xf32>
      %504 = arith.mulf %486, %495 : vector<2x32xf32>
      %505 = arith.addf %503, %504 : vector<2x32xf32>
      %506 = math.tanh %505 : vector<2x32xf32>
      %507 = arith.mulf %502, %506 : vector<2x32xf32>
      %508 = vector.extract_strided_slice %305 {offsets = [0, 6, 0], sizes = [2, 1, 128], strides = [1, 1, 1]} : vector<2x8x128xf32> to vector<2x1x128xf32>
      %509 = vector.shape_cast %508 : vector<2x1x128xf32> to vector<2x128xf32>
      %510 = arith.truncf %507 : vector<2x32xf32> to vector<2x32xbf16>
      %cst_132 = arith.constant dense<0.000000e+00> : vector<2x128xf32>
      %511 = tpu.matmul %510, %307, %cst_132 {dimension_numbers = #tpu.dot_dimension_numbers<[1], [0], [0], [1], [0, 0, 1, 1], [], []>} : vector<2x32xbf16>, vector<32x128xbf16>, vector<2x128xf32> -> vector<2x128xf32>
      %512 = arith.addf %509, %511 : vector<2x128xf32>
      %513 = vector.extract_strided_slice %512 {offsets = [0, 0], sizes = [2, 32], strides = [1, 1]} : vector<2x128xf32> to vector<2x32xf32>
      %cst_133 = arith.constant 0.000000e+00 : f32
      %514 = vector.broadcast %cst_133 : f32 to vector<2x32xf32>
      %515 = arith.subf %514, %513 : vector<2x32xf32>
      %516 = math.exp %515 : vector<2x32xf32>
      %cst_134 = arith.constant 1.000000e+00 : f32
      %517 = vector.broadcast %cst_134 : f32 to vector<2x32xf32>
      %518 = arith.addf %517, %516 : vector<2x32xf32>
      %519 = tpu.reciprocal %518 {approx = true} : vector<2x32xf32> -> vector<2x32xf32>
      %520 = vector.extract_strided_slice %512 {offsets = [0, 32], sizes = [2, 32], strides = [1, 1]} : vector<2x128xf32> to vector<2x32xf32>
      %cst_135 = arith.constant 0.000000e+00 : f32
      %521 = vector.broadcast %cst_135 : f32 to vector<2x32xf32>
      %522 = arith.subf %521, %520 : vector<2x32xf32>
      %523 = math.exp %522 : vector<2x32xf32>
      %cst_136 = arith.constant 1.000000e+00 : f32
      %524 = vector.broadcast %cst_136 : f32 to vector<2x32xf32>
      %525 = arith.addf %524, %523 : vector<2x32xf32>
      %526 = tpu.reciprocal %525 {approx = true} : vector<2x32xf32> -> vector<2x32xf32>
      %527 = vector.extract_strided_slice %512 {offsets = [0, 64], sizes = [2, 32], strides = [1, 1]} : vector<2x128xf32> to vector<2x32xf32>
      %528 = math.tanh %527 : vector<2x32xf32>
      %529 = vector.extract_strided_slice %512 {offsets = [0, 96], sizes = [2, 32], strides = [1, 1]} : vector<2x128xf32> to vector<2x32xf32>
      %cst_137 = arith.constant 0.000000e+00 : f32
      %530 = vector.broadcast %cst_137 : f32 to vector<2x32xf32>
      %531 = arith.subf %530, %529 : vector<2x32xf32>
      %532 = math.exp %531 : vector<2x32xf32>
      %cst_138 = arith.constant 1.000000e+00 : f32
      %533 = vector.broadcast %cst_138 : f32 to vector<2x32xf32>
      %534 = arith.addf %533, %532 : vector<2x32xf32>
      %535 = tpu.reciprocal %534 {approx = true} : vector<2x32xf32> -> vector<2x32xf32>
      %536 = arith.mulf %526, %505 : vector<2x32xf32>
      %537 = arith.mulf %519, %528 : vector<2x32xf32>
      %538 = arith.addf %536, %537 : vector<2x32xf32>
      %539 = math.tanh %538 : vector<2x32xf32>
      %540 = arith.mulf %535, %539 : vector<2x32xf32>
      %541 = vector.extract_strided_slice %305 {offsets = [0, 7, 0], sizes = [2, 1, 128], strides = [1, 1, 1]} : vector<2x8x128xf32> to vector<2x1x128xf32>
      %542 = vector.shape_cast %541 : vector<2x1x128xf32> to vector<2x128xf32>
      %543 = arith.truncf %540 : vector<2x32xf32> to vector<2x32xbf16>
      %cst_139 = arith.constant dense<0.000000e+00> : vector<2x128xf32>
      %544 = tpu.matmul %543, %307, %cst_139 {dimension_numbers = #tpu.dot_dimension_numbers<[1], [0], [0], [1], [0, 0, 1, 1], [], []>} : vector<2x32xbf16>, vector<32x128xbf16>, vector<2x128xf32> -> vector<2x128xf32>
      %545 = arith.addf %542, %544 : vector<2x128xf32>
      %546 = vector.extract_strided_slice %545 {offsets = [0, 0], sizes = [2, 32], strides = [1, 1]} : vector<2x128xf32> to vector<2x32xf32>
      %cst_140 = arith.constant 0.000000e+00 : f32
      %547 = vector.broadcast %cst_140 : f32 to vector<2x32xf32>
      %548 = arith.subf %547, %546 : vector<2x32xf32>
      %549 = math.exp %548 : vector<2x32xf32>
      %cst_141 = arith.constant 1.000000e+00 : f32
      %550 = vector.broadcast %cst_141 : f32 to vector<2x32xf32>
      %551 = arith.addf %550, %549 : vector<2x32xf32>
      %552 = tpu.reciprocal %551 {approx = true} : vector<2x32xf32> -> vector<2x32xf32>
      %553 = vector.extract_strided_slice %545 {offsets = [0, 32], sizes = [2, 32], strides = [1, 1]} : vector<2x128xf32> to vector<2x32xf32>
      %cst_142 = arith.constant 0.000000e+00 : f32
      %554 = vector.broadcast %cst_142 : f32 to vector<2x32xf32>
      %555 = arith.subf %554, %553 : vector<2x32xf32>
      %556 = math.exp %555 : vector<2x32xf32>
      %cst_143 = arith.constant 1.000000e+00 : f32
      %557 = vector.broadcast %cst_143 : f32 to vector<2x32xf32>
      %558 = arith.addf %557, %556 : vector<2x32xf32>
      %559 = tpu.reciprocal %558 {approx = true} : vector<2x32xf32> -> vector<2x32xf32>
      %560 = vector.extract_strided_slice %545 {offsets = [0, 64], sizes = [2, 32], strides = [1, 1]} : vector<2x128xf32> to vector<2x32xf32>
      %561 = math.tanh %560 : vector<2x32xf32>
      %562 = vector.extract_strided_slice %545 {offsets = [0, 96], sizes = [2, 32], strides = [1, 1]} : vector<2x128xf32> to vector<2x32xf32>
      %cst_144 = arith.constant 0.000000e+00 : f32
      %563 = vector.broadcast %cst_144 : f32 to vector<2x32xf32>
      %564 = arith.subf %563, %562 : vector<2x32xf32>
      %565 = math.exp %564 : vector<2x32xf32>
      %cst_145 = arith.constant 1.000000e+00 : f32
      %566 = vector.broadcast %cst_145 : f32 to vector<2x32xf32>
      %567 = arith.addf %566, %565 : vector<2x32xf32>
      %568 = tpu.reciprocal %567 {approx = true} : vector<2x32xf32> -> vector<2x32xf32>
      %569 = arith.mulf %559, %538 : vector<2x32xf32>
      %570 = arith.mulf %552, %561 : vector<2x32xf32>
      %571 = arith.addf %569, %570 : vector<2x32xf32>
      %572 = math.tanh %571 : vector<2x32xf32>
      %573 = arith.mulf %568, %572 : vector<2x32xf32>
      %574 = tpu.concatenate %304, %573 in 1 : vector<2x32xf32>, vector<2x32xf32> -> vector<2x64xf32>
      %575 = arith.truncf %574 : vector<2x64xf32> to vector<2x64xbf16>
      %c0_146 = arith.constant 0 : index
      %c0_147 = arith.constant 0 : index
      %576 = vector.load %arg5[%c0_146, %c0_147] : memref<64x8xbf16, #tpu.memory_space<vmem>>, vector<64x8xbf16>
      %cst_148 = arith.constant dense<0.000000e+00> : vector<2x8xf32>
      %577 = tpu.matmul %575, %576, %cst_148 {dimension_numbers = #tpu.dot_dimension_numbers<[1], [0], [0], [1], [0, 0, 1, 1], [], []>} : vector<2x64xbf16>, vector<64x8xbf16>, vector<2x8xf32> -> vector<2x8xf32>
      %c0_149 = arith.constant 0 : index
      %c0_150 = arith.constant 0 : index
      %578 = vector.load %arg6[%c0_149, %c0_150] : memref<1x8xf32, #tpu.memory_space<vmem>>, vector<1x8xf32>
      %579 = vector.broadcast %578 : vector<1x8xf32> to vector<2x8xf32>
      %580 = arith.addf %577, %579 : vector<2x8xf32>
      %c0_151 = arith.constant 0 : index
      %c0_152 = arith.constant 0 : index
      %581 = vector.load %arg7[%c0_151, %c0_152] : memref<2x8xf32, #tpu.memory_space<vmem>>, vector<2x8xf32>
      tpu.vector_store %arg7[%c0_151, %c0_152], %580 {strides = array<i32>} : memref<2x8xf32, #tpu.memory_space<vmem>>, vector<2x8xf32>,
    } else {
    }
    return
  }
  func.func @transform_0(%arg0: i32) -> (i32, i32, i32, i32) {
    %c0_i32 = arith.constant 0 : i32
    %c0_i32_0 = arith.constant 0 : i32
    %c0_i32_1 = arith.constant 0 : i32
    %c0_i32_2 = arith.constant 0 : i32
    return %arg0, %c0_i32, %c0_i32_0, %c0_i32_1 : i32, i32, i32, i32
  }
  func.func @transform_1(%arg0: i32) -> (i32, i32) {
    %c0_i32 = arith.constant 0 : i32
    %c0_i32_0 = arith.constant 0 : i32
    %c0_i32_1 = arith.constant 0 : i32
    return %c0_i32, %c0_i32_0 : i32, i32
  }
  func.func @transform_2(%arg0: i32) -> (i32, i32) {
    %c0_i32 = arith.constant 0 : i32
    %c0_i32_0 = arith.constant 0 : i32
    %c0_i32_1 = arith.constant 0 : i32
    return %c0_i32, %c0_i32_0 : i32, i32
  }
  func.func @transform_3(%arg0: i32) -> (i32, i32, i32) {
    %c0_i32 = arith.constant 0 : i32
    %c0_i32_0 = arith.constant 0 : i32
    %c0_i32_1 = arith.constant 0 : i32
    %c0_i32_2 = arith.constant 0 : i32
    return %c0_i32, %c0_i32_0, %c0_i32_1 : i32, i32, i32
  }
  func.func @transform_4(%arg0: i32) -> (i32, i32) {
    %c0_i32 = arith.constant 0 : i32
    %c0_i32_0 = arith.constant 0 : i32
    %c0_i32_1 = arith.constant 0 : i32
    return %c0_i32, %c0_i32_0 : i32, i32
  }
  func.func @transform_5(%arg0: i32) -> (i32, i32) {
    %c0_i32 = arith.constant 0 : i32
    %c0_i32_0 = arith.constant 0 : i32
    %c0_i32_1 = arith.constant 0 : i32
    return %c0_i32, %c0_i32_0 : i32, i32
  }
  func.func @transform_6(%arg0: i32) -> (i32, i32) {
    %c0_i32 = arith.constant 0 : i32
    %c0_i32_0 = arith.constant 0 : i32
    %c0_i32_1 = arith.constant 0 : i32
    return %c0_i32, %c0_i32_0 : i32, i32
  }
}

</mosaic_0001>

<bundles_post_ra>
// kernel: tpu_custom_call.1
= control target key start
LH: loop header
LB: loop body
LE: loop exit
PB: predicated region body
PF: predicated region fallthrough
CT: control target
= control target key end

     0   :  { %11 = vsyncpa [#allocation4], 0  ;;  %s3382_s0 = inlined_call_operand.hbm [shape: f32[2,32,8,64], index: 0, kind: input, shape index: {}]   ;;  %s3383_s1 = inlined_call_operand.vmem [shape: bf16[32,256], index: 1, kind: input, shape index: {}]   ;;  %s3384_s2 = inlined_call_operand.vmem [shape: f32[1,256], index: 2, kind: input, shape index: {}]   ;;  %s3385_s3 = inlined_call_operand.hbm [shape: bf16[2,32,128], index: 3, kind: input, shape index: {}]   ;;  %s3386_s4 = inlined_call_operand.vmem [shape: bf16[64,8], index: 4, kind: input, shape index: {}]   ;;  %s3387_s5 = inlined_call_operand.vmem [shape: f32[1,8], index: 5, kind: input, shape index: {}]   ;;  %s3388_s6 = inlined_call_operand.hbm [shape: f32[2,8], index: 6, kind: output, shape index: {}]  }
   0x1   :  { %12 = vsyncpa [#allocation7], 0 }
   0x2   :  { %13 = vsyncpa [#allocation5], 0  ;;  %s18_s23 = sshll.u32 %s3382_s0, 4  ;;  %s2692_s24 = smov [#allocation3]   ;;  %s19_s23 = int_to_ptr.hbm [resolvable:$true] %s18_s23 }
   0x3   :  { %s20_s25 = sshll.u32 %s2692_s24, 4  ;;  %s35_s28 = sshll.u32 %s3385_s3, 4  ;;  %s21_s25 = int_to_ptr.vmem [resolvable:$true] %s20_s25  ;;  %s36_s28 = int_to_ptr.hbm [resolvable:$true] %s35_s28 }
   0x4   :  { %s2693_s29 = smov 128   ;;  %s2694_s30 = smov 8  }
   0x5   :  { %26 = dma.hbm_to_vmem [thread:$0]  %s19_s23, 8192, %s21_s25, [#allocation4], %s2693_s29, %s2693_s29, %s2694_s30  }
   0x6   :  { %s2695_s7 = smov [#allocation6]   ;;  %s2696_s9 = smov 64  }
   0x7   :  { %s37_s8 = sshll.u32 %s2695_s7, 4  ;;  %s2697_s10 = smov 4   ;;  %s38_s8 = int_to_ptr.vmem [resolvable:$true] %s37_s8 }
   0x8   :  { %43 = dma.hbm_to_vmem [thread:$0]  %s36_s28, 512, %s38_s8, [#allocation7], %s2696_s9, %s2696_s9, %s2697_s10  }
   0x9   :  { %2686 = dma.done.wait [#allocation4], 8192  }
   0xa   :  { %2687 = vsyncadd [#allocation4], 4294959104 }
   0xb   :  { %2688 = dma.done.wait [#allocation7], 512  }
   0xc   :  { %2689 = vsyncadd [#allocation7], 4294966784  ;;  %vm95_vm0 = vcmask 523264   ;;  %v67_v0 = vld [vmem:[#allocation3 + $0x20] sm:$0xff]  ;;  %v65_v1 = vld [vmem:[#allocation3 + $0x10] sm:$0xff]  ;;  %vm297_vm2 = vcmask 1041409  }
   0xd   :  { %v63_v2 = vld [vmem:[#allocation3] sm:$0xff]  ;;  %v108_v3 = vsel %vm95_vm0, %v67_v0, 0.0  ;;  %v102_v4 = vsel %vm95_vm0, %v65_v1, 0.0  ;;  %v66_v7 = vld [vmem:[#allocation3 + $0x18] sm:$0xff]  ;;  %v64_v8 = vld [vmem:[#allocation3 + $0x8] sm:$0xff]  ;;  %vm299_vm3 = vcmask 1042434  }
   0xe   :  { %v96_v5 = vsel %vm95_vm0, %v63_v2, 0.0  ;;  %109 = vadd.xlane.f32.xlu2 %v108_v3  ;;  %103 = vadd.xlane.f32.xlu1 %v102_v4  ;;  %v71_v6 = vld [vmem:[#allocation3 + $0x40] sm:$0xff]  ;;  %v105_v10 = vsel %vm95_vm0, %v66_v7, 0.0  ;;  %v99_v11 = vsel %vm95_vm0, %v64_v8, 0.0  ;;  %v73_v12 = vld [vmem:[#allocation3 + $0x50] sm:$0xff]  ;;  %v68_v13 = vld [vmem:[#allocation3 + $0x28] sm:$0xff] }
   0xf   :  { %97 = vadd.xlane.f32.xlu0 %v96_v5  ;;  %v120_v9 = vsel %vm95_vm0, %v71_v6, 0.0  ;;  %v72_v14 = vld [vmem:[#allocation3 + $0x48] sm:$0xff]  ;;  %v126_v15 = vsel %vm95_vm0, %v73_v12, 0.0  ;;  %v111_v16 = vsel %vm95_vm0, %v68_v13, 0.0  ;;  %v70_v18 = vld [vmem:[#allocation3 + $0x38] sm:$0xff]  ;;  %v69_v20 = vld [vmem:[#allocation3 + $0x30] sm:$0xff] }
  0x10   :  { %v123_v17 = vsel %vm95_vm0, %v72_v14, 0.0  ;;  %v74_v19 = vld [vmem:[#allocation3 + $0x58] sm:$0xff]  ;;  %v117_v21 = vsel %vm95_vm0, %v70_v18, 0.0  ;;  %v114_v23 = vsel %vm95_vm0, %v69_v20, 0.0  ;;  %v80_v24 = vld [vmem:[#allocation3 + $0x88] sm:$0xff]  ;;  %v79_v25 = vld [vmem:[#allocation3 + $0x80] sm:$0xff] }
  0x11   :  { %v129_v22 = vsel %vm95_vm0, %v74_v19, 0.0  ;;  %v75_v26 = vld [vmem:[#allocation3 + $0x60] sm:$0xff]  ;;  %v147_v27 = vsel %vm95_vm0, %v80_v24, 0.0  ;;  %v144_v28 = vsel %vm95_vm0, %v79_v25, 0.0  ;;  %v77_v30 = vld [vmem:[#allocation3 + $0x70] sm:$0xff]  ;;  %v76_v32 = vld [vmem:[#allocation3 + $0x68] sm:$0xff] }
  0x12   :  { %v132_v29 = vsel %vm95_vm0, %v75_v26, 0.0  ;;  %v81_v31 = vld [vmem:[#allocation3 + $0x90] sm:$0xff]  ;;  %v138_v33 = vsel %vm95_vm0, %v77_v30, 0.0  ;;  %v135_v35 = vsel %vm95_vm0, %v76_v32, 0.0  ;;  %v83_v36 = vld [vmem:[#allocation3 + $0xa0] sm:$0xff]  ;;  %v78_v37 = vld [vmem:[#allocation3 + $0x78] sm:$0xff] }
  0x13   :  { %v150_v34 = vsel %vm95_vm0, %v81_v31, 0.0  ;;  %v82_v38 = vld [vmem:[#allocation3 + $0x98] sm:$0xff]  ;;  %v156_v39 = vsel %vm95_vm0, %v83_v36, 0.0  ;;  %v141_v40 = vsel %vm95_vm0, %v78_v37, 0.0  ;;  %v84_v42 = vld [vmem:[#allocation3 + $0xa8] sm:$0xff]  ;;  %v87_v44 = vld [vmem:[#allocation3 + $0xc0] sm:$0xff] }
  0x14   :  { %v153_v41 = vsel %vm95_vm0, %v82_v38, 0.0  ;;  %v88_v43 = vld [vmem:[#allocation3 + $0xc8] sm:$0xff]  ;;  %v159_v45 = vsel %vm95_vm0, %v84_v42, 0.0  ;;  %v168_v47 = vsel %vm95_vm0, %v87_v44, 0.0  ;;  %v430_v49 = vld [vmem:[#allocation3 + $0x100] sm:$0xff]  ;;  %v89_v50 = vld [vmem:[#allocation3 + $0xd0] sm:$0xff] }
  0x15   :  { %v171_v46 = vsel %vm95_vm0, %v88_v43, 0.0  ;;  %v431_v48 = vld [vmem:[#allocation3 + $0x108] sm:$0xff]  ;;  %v462_v52 = vsel %vm95_vm0, %v430_v49, 0.0  ;;  %v174_v53 = vsel %vm95_vm0, %v89_v50, 0.0  ;;  %v432_v54 = vld [vmem:[#allocation3 + $0x110] sm:$0xff]  ;;  %v90_v55 = vld [vmem:[#allocation3 + $0xd8] sm:$0xff] }
  0x16   :  { %121 = vadd.xlane.f32.xlu2 %v120_v9  ;;  %106 = vadd.xlane.f32.xlu1 %v105_v10  ;;  %v465_v51 = vsel %vm95_vm0, %v431_v48, 0.0  ;;  %v85_v56 = vld [vmem:[#allocation3 + $0xb0] sm:$0xff]  ;;  %v468_v57 = vsel %vm95_vm0, %v432_v54, 0.0  ;;  %v177_v58 = vsel %vm95_vm0, %v90_v55, 0.0  ;;  %v433_v60 = vld [vmem:[#allocation3 + $0x118] sm:$0xff]  ;;  %v91_v61 = vld [vmem:[#allocation3 + $0xe0] sm:$0xff] }
  0x17   :  { %100 = vadd.xlane.f32.xlu0 %v99_v11  ;;  %v162_v59 = vsel %vm95_vm0, %v85_v56, 0.0  ;;  %v86_v62 = vld [vmem:[#allocation3 + $0xb8] sm:$0xff]  ;;  %v471_v63 = vsel %vm95_vm0, %v433_v60, 0.0  ;;  %v180_v0 = vsel %vm95_vm0, %v91_v61, 0.0  ;;  %v438_v2 = vld [vmem:[#allocation3 + $0x140] sm:$0xff]  ;;  %v92_v4 = vld [vmem:[#allocation3 + $0xe8] sm:$0xff] }
  0x18   :  { %v165_v1 = vsel %vm95_vm0, %v86_v62, 0.0  ;;  %v434_v3 = vld [vmem:[#allocation3 + $0x120] sm:$0xff]  ;;  %v486_v5 = vsel %vm95_vm0, %v438_v2, 0.0  ;;  %v183_v7 = vsel %vm95_vm0, %v92_v4, 0.0  ;;  %v435_v8 = vld [vmem:[#allocation3 + $0x128] sm:$0xff]  ;;  %v93_v9 = vld [vmem:[#allocation3 + $0xf0] sm:$0xff] }
  0x19   :  { %v474_v6 = vsel %vm95_vm0, %v434_v3, 0.0  ;;  %v439_v10 = vld [vmem:[#allocation3 + $0x148] sm:$0xff]  ;;  %v477_v11 = vsel %vm95_vm0, %v435_v8, 0.0  ;;  %v186_v12 = vsel %vm95_vm0, %v93_v9, 0.0  ;;  %v2698_v14 = vmov 64.0   ;;  %v437_v24 = vld [vmem:[#allocation3 + $0x138] sm:$0xff] }
  0x1a   :  { %v489_v13 = vsel %vm95_vm0, %v439_v10, 0.0  ;;  %2356 = vrcp.f32 %v2698_v14  ;;  %v441_v25 = vld [vmem:[#allocation3 + $0x158] sm:$0xff]  ;;  %v443_v31 = vld [vmem:[#allocation3 + $0x168] sm:$0xff]  ;;  %v444_v43 = vld [vmem:[#allocation3 + $0x170] sm:$0xff]  ;;  %vm301_vm4 = vcmask 1043459   ;;  %vm303_vm5 = vcmask 1044484  }
  0x1b   :  { %v447_v32 = vld [vmem:[#allocation3 + $0x188] sm:$0xff]  ;;  %v501_v38 = vsel %vm95_vm0, %v443_v31, 0.0  ;;  %v449_v44 = vld [vmem:[#allocation3 + $0x198] sm:$0xff]  ;;  %v448_v49 = vld [vmem:[#allocation3 + $0x190] sm:$0xff]  ;;  %v504_v54 = vsel %vm95_vm0, %v444_v43, 0.0  ;;  %vm305_vm6 = vcmask 1045509  }
  0x1c   :  { %v519_v55 = vsel %vm95_vm0, %v449_v44, 0.0  ;;  %v516_v56 = vsel %vm95_vm0, %v448_v49, 0.0  ;;  %v445_v4 = vld [vmem:[#allocation3 + $0x178] sm:$0xff]  ;;  %vm307_vm7 = vcmask 1046534   ;;  %vm309_vm8 = vcmask 1047559   ;;  %s2701_s0 = smov [#allocation8]  }
  0x1d   :  { %vm394_vm9 = vcmask 261120   ;;  %s2228_s3 = sshll.u32 %s2701_s0, 4  ;;  %s2230_s13 = sshll.u32 %s3388_s6, 4  ;;  %vm2221_vm10 = vcmask 58368   ;;  %s2229_s3 = int_to_ptr.vmem [resolvable:$true] %s2228_s3  ;;  %s2231_s13 = int_to_ptr.hbm [resolvable:$true] %s2230_s13 }
  0x1e   :  { %127 = vadd.xlane.f32.xlu2 %v126_v15  ;;  %112 = vadd.xlane.f32.xlu1 %v111_v16  ;;  %v436_v15 = vld [vmem:[#allocation3 + $0x130] sm:$0xff]  ;;  %v94_v16 = vld [vmem:[#allocation3 + $0xf8] sm:$0xff] }
  0x1f   :  { %124 = vadd.xlane.f32.xlu0 %v123_v17  ;;  %v440_v17 = vld [vmem:[#allocation3 + $0x150] sm:$0xff]  ;;  %v480_v19 = vsel %vm95_vm0, %v436_v15, 0.0  ;;  %v189_v20 = vsel %vm95_vm0, %v94_v16, 0.0  ;;  %v451_v15 = vld [vmem:[#allocation3 + $0x1a8] sm:$0xff] }
  0x20   :  { %v2357_v18 = vpop.eup %2356  ;;  %v456_v16 = vld [vmem:[#allocation3 + $0x1d0] sm:$0xff] }
  0x21   :  { %vm197_vm1 = vweird.f32 %v2357_v18 }
  0x26   :  { %118 = vadd.xlane.f32.xlu2 %v117_v21  ;;  %130 = vadd.xlane.f32.xlu1 %v129_v22  ;;  %v492_v21 = vsel %vm95_vm0, %v440_v17, 0.0  ;;  %v193_v22 = vmul.f32 64.0, %v2357_v18 }
  0x27   :  { %115 = vadd.xlane.f32.xlu0 %v114_v23  ;;  %v442_v23 = vld [vmem:[#allocation3 + $0x160] sm:$0xff] }
  0x28   :  { %v194_v26 = vsub.f32 1.0, %v193_v22  ;;  %v540_v22 = vsel %vm95_vm0, %v456_v16, 0.0 }
  0x2a   :  { %v195_v30 = vmul.f32 %v2357_v18, %v194_v26 }
  0x2c   :  { %v196_v36 = vadd.f32 %v2357_v18, %v195_v30 }
  0x2e   :  { %148 = vadd.xlane.f32.xlu2 %v147_v27  ;;  %145 = vadd.xlane.f32.xlu1 %v144_v28  ;;  %v498_v27 = vsel %vm95_vm0, %v442_v23, 0.0  ;;  %v483_v28 = vsel %vm95_vm0, %v437_v24, 0.0  ;;  %v2793_v42 = vsel %vm197_vm1, %v2357_v18, %v196_v36  ;;  %v457_v24 = vld [vmem:[#allocation3 + $0x1d8] sm:$0xff] }
  0x2f   :  { %133 = vadd.xlane.f32.xlu0 %v132_v29  ;;  %v495_v29 = vsel %vm95_vm0, %v441_v25, 0.0  ;;  %v453_v25 = vld [vmem:[#allocation3 + $0x1b8] sm:$0xff] }
  0x36   :  { %139 = vadd.xlane.f32.xlu2 %v138_v33  ;;  %151 = vadd.xlane.f32.xlu1 %v150_v34 }
  0x37   :  { %136 = vadd.xlane.f32.xlu0 %v135_v35  ;;  %v446_v35 = vld [vmem:[#allocation3 + $0x180] sm:$0xff] }
  0x3e   :  { %157 = vadd.xlane.f32.xlu2 %v156_v39  ;;  %142 = vadd.xlane.f32.xlu1 %v141_v40  ;;  %v513_v39 = vsel %vm95_vm0, %v447_v32, 0.0  ;;  %v510_v40 = vsel %vm95_vm0, %v446_v35, 0.0  ;;  %v543_v32 = vsel %vm95_vm0, %v457_v24, 0.0 }
  0x3f   :  { %154 = vadd.xlane.f32.xlu0 %v153_v41  ;;  %v263_v41 = vlaneseq }
  0x46   :  { %160 = vadd.xlane.f32.xlu2 %v159_v45  ;;  %172 = vadd.xlane.f32.xlu1 %v171_v46  ;;  %v2795_v45 = vand.u32 127, %v263_v41 }
  0x47   :  { %169 = vadd.xlane.f32.xlu0 %v168_v47 }
  0x4e   :  { %466 = vadd.xlane.f32.xlu2 %v465_v51  ;;  %463 = vadd.xlane.f32.xlu1 %v462_v52 }
  0x4f   :  { %175 = vadd.xlane.f32.xlu0 %v174_v53 }
  0x56   :  { %469 = vadd.xlane.f32.xlu2 %v468_v57  ;;  %178 = vadd.xlane.f32.xlu1 %v177_v58 }
  0x57   :  { %163 = vadd.xlane.f32.xlu0 %v162_v59 }
  0x5e   :  { %472 = vadd.xlane.f32.xlu2 %v471_v63  ;;  %181 = vadd.xlane.f32.xlu1 %v180_v0  ;;  %v450_v0 = vld [vmem:[#allocation3 + $0x1a0] sm:$0xff] }
  0x5f   :  { %166 = vadd.xlane.f32.xlu0 %v165_v1  ;;  %v454_v1 = vld [vmem:[#allocation3 + $0x1c0] sm:$0xff]  ;;  %v522_v9 = vsel %vm95_vm0, %v450_v0, 0.0 }
  0x60   :  { %v534_v10 = vsel %vm95_vm0, %v454_v1, 0.0 }
  0x66   :  { %487 = vadd.xlane.f32.xlu2 %v486_v5  ;;  %475 = vadd.xlane.f32.xlu1 %v474_v6 }
  0x67   :  { %184 = vadd.xlane.f32.xlu0 %v183_v7 }
  0x6e   :  { %478 = vadd.xlane.f32.xlu2 %v477_v11  ;;  %187 = vadd.xlane.f32.xlu1 %v186_v12  ;;  %v507_v12 = vsel %vm95_vm0, %v445_v4, 0.0 }
  0x6f   :  { %490 = vadd.xlane.f32.xlu0 %v489_v13 }
  0x76   :  { %481 = vadd.xlane.f32.xlu2 %v480_v19  ;;  %190 = vadd.xlane.f32.xlu1 %v189_v20  ;;  %v455_v19 = vld [vmem:[#allocation3 + $0x1c8] sm:$0xff] }
  0x77   :  { %493 = vadd.xlane.f32.xlu0 %v492_v21  ;;  %v525_v21 = vsel %vm95_vm0, %v451_v15, 0.0  ;;  %v537_v23 = vsel %vm95_vm0, %v455_v19, 0.0 }
  0x7e   :  { %499 = vadd.xlane.f32.xlu2 %v498_v27  ;;  %484 = vadd.xlane.f32.xlu1 %v483_v28  ;;  %v452_v28 = vld [vmem:[#allocation3 + $0x1b0] sm:$0xff] }
  0x7f   :  { %496 = vadd.xlane.f32.xlu0 %v495_v29  ;;  %v528_v36 = vsel %vm95_vm0, %v452_v28, 0.0 }
  0x81   :  { %v110_v33 = vpop.xlane.xlu2 %109  ;;  %v104_v34 = vpop.xlane.xlu1 %103 }
  0x82   :  { %v98_v37 = vpop.xlane.xlu0 %97  ;;  %v201_v50 = vmul.f32 %v2793_v42, %v104_v34  ;;  %v203_v61 = vmul.f32 %v2793_v42, %v110_v33  ;;  %v531_v33 = vsel %vm95_vm0, %v453_v25, 0.0 }
  0x83   :  { %v199_v46 = vmul.f32 %v2793_v42, %v98_v37 }
  0x84   :  { %v267_v60 = vperm.slane %v201_v50, %v2795_v45  ;;  %v269_v8 = vperm.slane %v203_v61, %v2795_v45  ;;  %v458_v50 = vld [vmem:[#allocation3 + $0x1e0] sm:$0xff] }
  0x85   :  { %v265_v57 = vperm.slane %v199_v46, %v2795_v45  ;;  %v460_v46 = vld [vmem:[#allocation3 + $0x1f0] sm:$0xff]  ;;  %v546_v61 = vsel %vm95_vm0, %v458_v50, 0.0 }
  0x86   :  { %502 = vadd.xlane.f32.xlu2 %v501_v38  ;;  %514 = vadd.xlane.f32.xlu1 %v513_v39 }
  0x87   :  { %511 = vadd.xlane.f32.xlu0 %v510_v40  ;;  %v459_v40 = vld [vmem:[#allocation3 + $0x1e8] sm:$0xff] }
  0x89   :  { %v2798_v47 = vpop.xlane.xlu2 %121  ;;  %v107_v48 = vpop.xlane.xlu1 %106 }
  0x8a   :  { %v202_v51 = vmul.f32 %v2793_v42, %v107_v48  ;;  %v101_v52 = vpop.xlane.xlu0 %100  ;;  %v207_v34 = vmul.f32 %v2793_v42, %v2798_v47 }
  0x8b   :  { %v200_v53 = vmul.f32 %v2793_v42, %v101_v52 }
  0x8c   :  { %v268_v58 = vperm.slane %v202_v51, %v2795_v45  ;;  %v273_v41 = vperm.slane %v207_v34, %v2795_v45 }
  0x8d   :  { %v266_v59 = vperm.slane %v200_v53, %v2795_v45  ;;  %v549_v53 = vsel %vm95_vm0, %v459_v40, 0.0 }
  0x8e   :  { %505 = vadd.xlane.f32.xlu1 %v504_v54  ;;  %520 = vadd.xlane.f32.xlu2 %v519_v55 }
  0x8f   :  { %v298_v62 = vsel %vm297_vm2, %v266_v59, %v265_v57  ;;  %517 = vadd.xlane.f32.xlu0 %v516_v56  ;;  %v552_v57 = vsel %vm95_vm0, %v460_v46, 0.0 }
  0x90   :  { %v300_v63 = vsel %vm299_vm3, %v267_v60, %v298_v62 }
  0x91   :  { %v128_v2 = vpop.xlane.xlu2 %127  ;;  %v113_v3 = vpop.xlane.xlu1 %112  ;;  %v302_v5 = vsel %vm301_vm4, %v268_v58, %v300_v63 }
  0x92   :  { %v204_v6 = vmul.f32 %v2793_v42, %v113_v3  ;;  %v125_v7 = vpop.xlane.xlu0 %124  ;;  %v304_v13 = vsel %vm303_vm5, %v269_v8, %v302_v5  ;;  %v209_v37 = vmul.f32 %v2793_v42, %v128_v2  ;;  %v461_v8 = vld [vmem:[#allocation3 + $0x1f8] sm:$0xff] }
  0x93   :  { %v208_v35 = vmul.f32 %v2793_v42, %v125_v7 }
  0x94   :  { %v270_v11 = vperm.slane %v204_v6, %v2795_v45  ;;  %v275_v54 = vperm.slane %v209_v37, %v2795_v45 }
  0x95   :  { %v274_v43 = vperm.slane %v208_v35, %v2795_v45 }
  0x96   :  { %523 = vadd.xlane.f32.xlu1 %v522_v9  ;;  %535 = vadd.xlane.f32.xlu2 %v534_v10  ;;  %v2822_v14 = vsel %vm305_vm6, %v270_v11, %v304_v13  ;;  %v555_v13 = vsel %vm95_vm0, %v461_v8, 0.0 }
  0x97   :  { %508 = vadd.xlane.f32.xlu0 %v507_v12  ;;  %v311_v58 = vsel %vm297_vm2, %v274_v43, %v273_v41 }
  0x98   :  { %v312_v2 = vsel %vm299_vm3, %v275_v54, %v311_v58 }
  0x99   :  { %v2824_v17 = vpop.xlane.xlu2 %118  ;;  %v131_v18 = vpop.xlane.xlu1 %130 }
  0x9a   :  { %v2826_v20 = vpop.xlane.xlu0 %115  ;;  %v210_v44 = vmul.f32 %v2793_v42, %v131_v18 }
  0x9c   :  { %v276_v59 = vperm.slane %v210_v44, %v2795_v45 }
  0x9e   :  { %526 = vadd.xlane.f32.xlu1 %v525_v21  ;;  %541 = vadd.xlane.f32.xlu2 %v540_v22  ;;  %v313_v3 = vsel %vm301_vm4, %v276_v59, %v312_v2 }
  0x9f   :  { %538 = vadd.xlane.f32.xlu0 %v537_v23 }
  0xa1   :  { %v149_v26 = vpop.xlane.xlu2 %148  ;;  %v146_v27 = vpop.xlane.xlu1 %145 }
  0xa2   :  { %v134_v29 = vpop.xlane.xlu0 %133  ;;  %v216_v30 = vmul.f32 %v2793_v42, %v149_v26  ;;  %v215_v31 = vmul.f32 %v2793_v42, %v146_v27 }
  0xa3   :  { %v211_v47 = vmul.f32 %v2793_v42, %v134_v29 }
  0xa4   :  { %v282_v38 = vperm.slane %v216_v30, %v2795_v45  ;;  %v281_v39 = vperm.slane %v215_v31, %v2795_v45 }
  0xa5   :  { %v277_v62 = vperm.slane %v211_v47, %v2795_v45 }
  0xa6   :  { %544 = vadd.xlane.f32.xlu1 %v543_v32  ;;  %532 = vadd.xlane.f32.xlu2 %v531_v33  ;;  %v318_v55 = vsel %vm297_vm2, %v282_v38, %v281_v39 }
  0xa7   :  { %529 = vadd.xlane.f32.xlu0 %v528_v36  ;;  %v314_v4 = vsel %vm303_vm5, %v277_v62, %v313_v3 }
  0xa9   :  { %v140_v48 = vpop.xlane.xlu2 %139  ;;  %v152_v49 = vpop.xlane.xlu1 %151 }
  0xaa   :  { %v217_v51 = vmul.f32 %v2793_v42, %v152_v49  ;;  %v137_v52 = vpop.xlane.xlu0 %136  ;;  %v213_v63 = vmul.f32 %v2793_v42, %v140_v48 }
  0xab   :  { %v212_v56 = vmul.f32 %v2793_v42, %v137_v52 }
  0xac   :  { %v283_v60 = vperm.slane %v217_v51, %v2795_v45  ;;  %v279_v5 = vperm.slane %v213_v63, %v2795_v45 }
  0xad   :  { %v278_v1 = vperm.slane %v212_v56, %v2795_v45 }
  0xae   :  { %v2859_v0 = vsel %vm299_vm3, %v283_v60, %v318_v55  ;;  %550 = vadd.xlane.f32.xlu1 %v549_v53  ;;  %553 = vadd.xlane.f32.xlu2 %v552_v57 }
  0xaf   :  { %547 = vadd.xlane.f32.xlu0 %v546_v61  ;;  %v315_v9 = vsel %vm305_vm6, %v278_v1, %v314_v4 }
  0xb0   :  { %v316_v15 = vsel %vm307_vm7, %v279_v5, %v315_v9 }
  0xb1   :  { %v2866_v6 = vpop.xlane.xlu2 %157  ;;  %v143_v7 = vpop.xlane.xlu1 %142 }
  0xb2   :  { %v214_v10 = vmul.f32 %v2793_v42, %v143_v7  ;;  %v2870_v11 = vpop.xlane.xlu0 %154  ;;  %v205_v7 = vmul.f32 %v2793_v42, %v2826_v20 }
  0xb4   :  { %v280_v12 = vperm.slane %v214_v10, %v2795_v45  ;;  %v271_v20 = vperm.slane %v205_v7, %v2795_v45 }
  0xb6   :  { %v2876_v16 = vsel %vm309_vm8, %v280_v12, %v316_v15  ;;  %v206_v15 = vmul.f32 %v2793_v42, %v2824_v17 }
  0xb7   :  { %556 = vadd.xlane.f32.xlu0 %v555_v13 }
  0xb8   :  { %v272_v17 = vperm.slane %v206_v15, %v2795_v45 }
  0xb9   :  { %v2878_v18 = vpop.xlane.xlu2 %160  ;;  %v173_v19 = vpop.xlane.xlu1 %172 }
  0xba   :  { %v170_v21 = vpop.xlane.xlu0 %169  ;;  %v224_v25 = vmul.f32 %v2793_v42, %v173_v19 }
  0xbb   :  { %v223_v26 = vmul.f32 %v2793_v42, %v170_v21 }
  0xbc   :  { %v290_v28 = vperm.slane %v224_v25, %v2795_v45 }
  0xbd   :  { %v289_v29 = vperm.slane %v223_v26, %v2795_v45 }
  0xbf   :  { %v325_v35 = vsel %vm297_vm2, %v290_v28, %v289_v29 }
  0xc1   :  { %v467_v22 = vpop.xlane.xlu2 %466  ;;  %v464_v23 = vpop.xlane.xlu1 %463 }
  0xc2   :  { %v176_v24 = vpop.xlane.xlu0 %175  ;;  %v559_v58 = vmul.f32 %v467_v22, %v2793_v42  ;;  %v558_v59 = vmul.f32 %v464_v23, %v2793_v42 }
  0xc3   :  { %v225_v27 = vmul.f32 %v2793_v42, %v176_v24 }
  0xc4   :  { %v623_v1 = vperm.slane %v559_v58, %v2795_v45  ;;  %v622_v2 = vperm.slane %v558_v59, %v2795_v45 }
  0xc5   :  { %v291_v30 = vperm.slane %v225_v27, %v2795_v45 }
  0xc6   :  { %v654_v19 = vsel %vm297_vm2, %v623_v1, %v622_v2 }
  0xc7   :  { %v326_v37 = vsel %vm299_vm3, %v291_v30, %v325_v35 }
  0xc9   :  { %v470_v31 = vpop.xlane.xlu2 %469  ;;  %v179_v32 = vpop.xlane.xlu1 %178 }
  0xca   :  { %v226_v33 = vmul.f32 %v2793_v42, %v179_v32  ;;  %v2887_v34 = vpop.xlane.xlu0 %163  ;;  %v560_v61 = vmul.f32 %v470_v31, %v2793_v42 }
  0xcc   :  { %v292_v36 = vperm.slane %v226_v33, %v2795_v45  ;;  %v624_v12 = vperm.slane %v560_v61, %v2795_v45  ;;  %v308_v33 = vsel %vm307_vm7, %v271_v20, %v2822_v14 }
  0xce   :  { %v327_v38 = vsel %vm301_vm4, %v292_v36, %v326_v37  ;;  %v655_v25 = vsel %vm299_vm3, %v624_v12, %v654_v19 }
  0xd1   :  { %v473_v39 = vpop.xlane.xlu2 %472  ;;  %v182_v40 = vpop.xlane.xlu1 %181 }
  0xd2   :  { %v227_v41 = vmul.f32 %v2793_v42, %v182_v40  ;;  %v2894_v43 = vpop.xlane.xlu0 %166  ;;  %v561_v3 = vmul.f32 %v473_v39, %v2793_v42 }
  0xd4   :  { %v293_v44 = vperm.slane %v227_v41, %v2795_v45  ;;  %v625_v21 = vperm.slane %v561_v3, %v2795_v45 }
  0xd6   :  { %v328_v46 = vsel %vm303_vm5, %v293_v44, %v327_v38  ;;  %v656_v29 = vsel %vm301_vm4, %v625_v21, %v655_v25  ;;  %v310_v38 = vsel %vm309_vm8, %v272_v17, %v308_v33 }
  0xd9   :  { %v488_v47 = vpop.xlane.xlu2 %487  ;;  %v476_v48 = vpop.xlane.xlu1 %475 }
  0xda   :  { %v185_v49 = vpop.xlane.xlu0 %184  ;;  %v562_v8 = vmul.f32 %v476_v48, %v2793_v42  ;;  %v566_v48 = vmul.f32 %v488_v47, %v2793_v42 }
  0xdb   :  { %v228_v50 = vmul.f32 %v2793_v42, %v185_v49 }
  0xdc   :  { %v626_v23 = vperm.slane %v562_v8, %v2795_v45 }
  0xdd   :  { %v294_v51 = vperm.slane %v228_v50, %v2795_v45 }
  0xde   :  { %v657_v32 = vsel %vm303_vm5, %v626_v23, %v656_v29  ;;  %v2311_v29 = vld [vmem:[%s3383_s1 + $0x14] sm:$0xf] }
  0xdf   :  { %v329_v57 = vsel %vm305_vm6, %v294_v51, %v328_v46 }
  0xe1   :  { %v479_v52 = vpop.xlane.xlu2 %478  ;;  %v188_v53 = vpop.xlane.xlu1 %187 }
  0xe2   :  { %v229_v54 = vmul.f32 %v2793_v42, %v188_v53  ;;  %v491_v55 = vpop.xlane.xlu0 %490  ;;  %v563_v9 = vmul.f32 %v479_v52, %v2793_v42 }
  0xe3   :  { %v567_v49 = vmul.f32 %v491_v55, %v2793_v42 }
  0xe4   :  { %v295_v56 = vperm.slane %v229_v54, %v2795_v45  ;;  %v627_v24 = vperm.slane %v563_v9, %v2795_v45  ;;  %v630_v54 = vperm.slane %v566_v48, %v2795_v45 }
  0xe6   :  { %v330_v60 = vsel %vm307_vm7, %v295_v56, %v329_v57  ;;  %v658_v36 = vsel %vm305_vm6, %v627_v24, %v657_v32  ;;  %v631_v56 = vperm.slane %v567_v49, %v2795_v45 }
  0xe9   :  { %v482_v62 = vpop.xlane.xlu2 %481  ;;  %v191_v63 = vpop.xlane.xlu1 %190 }
  0xea   :  { %v230_v4 = vmul.f32 %v2793_v42, %v191_v63  ;;  %v494_v5 = vpop.xlane.xlu0 %493  ;;  %v564_v13 = vmul.f32 %v482_v62, %v2793_v42 }
  0xeb   :  { %v568_v14 = vmul.f32 %v494_v5, %v2793_v42 }
  0xec   :  { %v296_v10 = vperm.slane %v230_v4, %v2795_v45  ;;  %v628_v26 = vperm.slane %v564_v13, %v2795_v45  ;;  %v218_v13 = vmul.f32 %v2793_v42, %v2870_v11  ;;  %v2312_v11 = vld [vmem:[%s3383_s1 + $0x14] sm:$0xf0] }
  0xed   :  { %v632_v57 = vperm.slane %v568_v14, %v2795_v45 }
  0xee   :  { %v2923_v22 = vsel %vm309_vm8, %v296_v10, %v330_v60  ;;  %v659_v37 = vsel %vm307_vm7, %v628_v26, %v658_v36  ;;  %v661_v60 = vsel %vm297_vm2, %v631_v56, %v630_v54  ;;  %v284_v17 = vperm.slane %v218_v13, %v2795_v45 }
  0xef   :  { %v662_v61 = vsel %vm299_vm3, %v632_v57, %v661_v60 }
  0xf1   :  { %v500_v27 = vpop.xlane.xlu2 %499  ;;  %v485_v28 = vpop.xlane.xlu1 %484 }
  0xf2   :  { %v565_v30 = vmul.f32 %v485_v28, %v2793_v42  ;;  %v497_v31 = vpop.xlane.xlu0 %496  ;;  %v570_v58 = vmul.f32 %v500_v27, %v2793_v42  ;;  %v2252_v27 = vld [vmem:[%s3383_s1 + $0x10] sm:$0xf]  ;;  %v219_v28 = vmul.f32 %v2793_v42, %v2866_v6  ;;  %v220_v6 = vmul.f32 %v2793_v42, %v2878_v18 }
  0xf3   :  { %v569_v50 = vmul.f32 %v497_v31, %v2793_v42 }
  0xf4   :  { %v629_v35 = vperm.slane %v565_v30, %v2795_v45  ;;  %v634_v62 = vperm.slane %v570_v58, %v2795_v45  ;;  %v2254_v30 = vld [vmem:[%s3383_s1 + $0x18] sm:$0xf0]  ;;  %v286_v48 = vperm.slane %v220_v6, %v2795_v45  ;;  %v2244_v6 = vld [vmem:[%s3383_s1] sm:$0xf] }
  0xf5   :  { %v633_v59 = vperm.slane %v569_v50, %v2795_v45 }
  0xf6   :  { %v660_v39 = vsel %vm309_vm8, %v629_v35, %v659_v37  ;;  %v2257_v35 = vor.u32 %v2311_v29, %v2254_v30 }
  0xf7   :  { %v2332_v40 = vpack.i.bf16 %v660_v39, %v310_v38  ;;  %v663_v63 = vsel %vm301_vm4, %v633_v59, %v662_v61  ;;  %v221_v38 = vmul.f32 %v2793_v42, %v2887_v34 }
  0xf8   :  { %v664_v8 = vsel %vm303_vm5, %v634_v62, %v663_v63  ;;  %417 = vmatpush.bf16.msra.mxu1 %v2257_v35  ;;  %741 = vmatpush.bf16.msra.mxu3 %v2257_v35 }
  0xf9   :  { %v503_v41 = vpop.xlane.xlu2 %502  ;;  %v515_v44 = vpop.xlane.xlu1 %514  ;;  %2333 = vxpose.xlu1.b32.start [1/4] (short) (narrow) %v2332_v40, 8  ;;  %v285_v40 = vperm.slane %v219_v28, %v2795_v45 }
  0xfa   :  { %v512_v46 = vpop.xlane.xlu0 %511  ;;  %v571_v47 = vmul.f32 %v503_v41, %v2793_v42  ;;  %v575_v19 = vmul.f32 %v515_v44, %v2793_v42  ;;  %v222_v41 = vmul.f32 %v2793_v42, %v2894_v43 }
  0xfb   :  { %v574_v21 = vmul.f32 %v512_v46, %v2793_v42  ;;  %v320_v46 = vsel %vm301_vm4, %v284_v17, %v2859_v0 }
  0xfc   :  { %v635_v1 = vperm.slane %v571_v47, %v2795_v45  ;;  %v639_v31 = vperm.slane %v575_v19, %v2795_v45  ;;  %v321_v57 = vsel %vm303_vm5, %v285_v40, %v320_v46  ;;  %v288_v58 = vperm.slane %v222_v41, %v2795_v45 }
  0xfd   :  { %v638_v32 = vperm.slane %v574_v21, %v2795_v45 }
  0xfe   :  { %v665_v9 = vsel %vm305_vm6, %v635_v1, %v664_v8 }
  0xff   :  { %v668_v18 = vsel %vm297_vm2, %v639_v31, %v638_v32 }
 0x101   :  { %v506_v51 = vpop.xlane.xlu1 %505  ;;  %v521_v52 = vpop.xlane.xlu2 %520 }
 0x102   :  { %v518_v53 = vpop.xlane.xlu0 %517  ;;  %v572_v55 = vmul.f32 %v506_v51, %v2793_v42  ;;  %v577_v33 = vmul.f32 %v521_v52, %v2793_v42  ;;  %v287_v51 = vperm.slane %v221_v38, %v2795_v45 }
 0x103   :  { %v576_v23 = vmul.f32 %v518_v53, %v2793_v42 }
 0x104   :  { %v636_v4 = vperm.slane %v572_v55, %v2795_v45  ;;  %v641_v44 = vperm.slane %v577_v33, %v2795_v45  ;;  %v322_v55 = vsel %vm305_vm6, %v286_v48, %v321_v57  ;;  %v2699_v48 = vmov 0  }
 0x105   :  { %v640_v36 = vperm.slane %v576_v23, %v2795_v45  ;;  %v323_v1 = vsel %vm307_vm7, %v287_v51, %v322_v55  ;;  %v3069_v51 = vld [vmem:[%s3384_s2] sm:$0x3]  ;;  %s2700_s2 = smov 32  }
 0x106   :  { %v666_v12 = vsel %vm307_vm7, %v636_v4, %v665_v9 }
 0x107   :  { %v669_v34 = vsel %vm299_vm3, %v640_v36, %v668_v18  ;;  %v2310_v36 = vld [vmem:[%s3383_s1 + $0x4] sm:$0xf0] }
 0x108   :  { %v670_v59 = vsel %vm301_vm4, %v641_v44, %v669_v34 }
 0x109   :  { %v524_v2 = vpop.xlane.xlu1 %523  ;;  %v536_v3 = vpop.xlane.xlu2 %535 }
 0x10a   :  { %v509_v5 = vpop.xlane.xlu0 %508  ;;  %v578_v37 = vmul.f32 %v524_v2, %v2793_v42  ;;  %v582_v54 = vmul.f32 %v536_v3, %v2793_v42 }
 0x10b   :  { %v573_v7 = vmul.f32 %v509_v5, %v2793_v42 }
 0x10c   :  { %v642_v49 = vperm.slane %v578_v37, %v2795_v45  ;;  %v646_v2 = vperm.slane %v582_v54, %v2795_v45  ;;  %v2246_v37 = vld [vmem:[%s3383_s1 + $0x8] sm:$0xf0] }
 0x10d   :  { %v637_v10 = vperm.slane %v573_v7, %v2795_v45  ;;  %v324_v7 = vsel %vm309_vm8, %v288_v58, %v323_v1 }
 0x10e   :  { %v671_v60 = vsel %vm303_vm5, %v642_v49, %v670_v59 }
 0x10f   :  { %v667_v15 = vsel %vm309_vm8, %v637_v10, %v666_v12 }
 0x110   :  { %v2334_v20 = vpack.i.bf16 %v667_v15, %v2876_v16  ;;  %v2253_v16 = vor.u32 %v2312_v11, %v2252_v27 }
 0x111   :  { %v527_v24 = vpop.xlane.xlu1 %526  ;;  %v542_v25 = vpop.xlane.xlu2 %541 }
 0x112   :  { %2335 = vxpose.xlu1.b32.cont [2/4] (short) (narrow) %v2334_v20, 8  ;;  %v539_v26 = vpop.xlane.xlu0 %538  ;;  %404 = vmatpush.bf16.msra.mxu0 %v2253_v16  ;;  %v579_v39 = vmul.f32 %v527_v24, %v2793_v42  ;;  %v584_v63 = vmul.f32 %v542_v25, %v2793_v42 }
 0x113   :  { %728 = vmatpush.bf16.msra.mxu2 %v2253_v16  ;;  %v583_v56 = vmul.f32 %v539_v26, %v2793_v42 }
 0x114   :  { %v643_v52 = vperm.slane %v579_v39, %v2795_v45  ;;  %v648_v12 = vperm.slane %v584_v63, %v2795_v45  ;;  %v2313_v39 = vld [vmem:[#allocation6] sm:$0xff] }
 0x115   :  { %v647_v3 = vperm.slane %v583_v56, %v2795_v45 }
 0x116   :  { %v672_v62 = vsel %vm305_vm6, %v643_v52, %v671_v60 }
 0x117   :  { %v675_v15 = vsel %vm297_vm2, %v647_v3, %v646_v2 }
 0x118   :  { %v676_v25 = vsel %vm299_vm3, %v648_v12, %v675_v15 }
 0x119   :  { %v545_v14 = vpop.xlane.xlu1 %544  ;;  %v533_v50 = vpop.xlane.xlu2 %532 }
 0x11a   :  { %v530_v43 = vpop.xlane.xlu0 %529  ;;  %v581_v53 = vmul.f32 %v533_v50, %v2793_v42  ;;  %v585_v4 = vmul.f32 %v545_v14, %v2793_v42 }
 0x11b   :  { %v580_v0 = vmul.f32 %v530_v43, %v2793_v42 }
 0x11c   :  { %v645_v47 = vperm.slane %v581_v53, %v2795_v45  ;;  %v649_v19 = vperm.slane %v585_v4, %v2795_v45  ;;  %v370_v53 = vperm.slane %v3069_v51, 0 }
 0x11d   :  { %v644_v61 = vperm.slane %v580_v0, %v2795_v45 }
 0x11e   :  { %v677_v27 = vsel %vm301_vm4, %v649_v19, %v676_v25 }
 0x11f   :  { %v673_v5 = vsel %vm307_vm7, %v644_v61, %v672_v62 }
 0x120   :  { %v674_v8 = vsel %vm309_vm8, %v645_v47, %v673_v5 }
 0x121   :  { %v551_v9 = vpop.xlane.xlu1 %550  ;;  %v2336_v10 = vpack.i.bf16 %v674_v8, %v324_v7  ;;  %v554_v23 = vpop.xlane.xlu2 %553 }
 0x122   :  { %v548_v13 = vpop.xlane.xlu0 %547  ;;  %v587_v20 = vmul.f32 %v551_v9, %v2793_v42  ;;  %v588_v26 = vmul.f32 %v554_v23, %v2793_v42 }
 0x123   :  { %v586_v21 = vmul.f32 %v548_v13, %v2793_v42  ;;  %2337 = vxpose.xlu1.b32.cont [3/4] (short) (narrow) %v2336_v10, 8 }
 0x124   :  { %v651_v11 = vperm.slane %v587_v20, %v2795_v45  ;;  %v652_v17 = vperm.slane %v588_v26, %v2795_v45 }
 0x125   :  { %v650_v24 = vperm.slane %v586_v21, %v2795_v45 }
 0x127   :  { %v678_v28 = vsel %vm303_vm5, %v650_v24, %v677_v27 }
 0x128   :  { %v679_v29 = vsel %vm305_vm6, %v651_v11, %v678_v28 }
 0x129   :  { %v680_v32 = vsel %vm307_vm7, %v652_v17, %v679_v29 }
 0x12a   :  { %v557_v16 = vpop.xlane.xlu0 %556 }
 0x12b   :  { %v589_v30 = vmul.f32 %v557_v16, %v2793_v42  ;;  %v2309_v42 = vld [vmem:[%s3383_s1 + $0x4] sm:$0xf] }
 0x12c   :  { %v2249_v38 = vor.u32 %v2309_v42, %v2246_v37 }
 0x12d   :  { %v653_v31 = vperm.slane %v589_v30, %v2795_v45  ;;  %v2245_v45 = vor.u32 %v2310_v36, %v2244_v6 }
 0x12e   :  { %418 = vmatpush.bf16.msra.mxu1 %v2249_v38  ;;  %742 = vmatpush.bf16.msra.mxu3 %v2249_v38 }
 0x12f   :  { %v681_v33 = vsel %vm309_vm8, %v653_v31, %v680_v32  ;;  %405 = vmatpush.bf16.msra.mxu0 %v2245_v45  ;;  %729 = vmatpush.bf16.msra.mxu2 %v2245_v45 }
 0x130   :  { %v2338_v35 = vpack.i.bf16 %v681_v33, %v2923_v22  ;;  %v2314_v22 = vld [vmem:[#allocation6 + $0x8] sm:$0xff] }
 0x132   :  { %2339 = vxpose.xlu1.b32.end [4/4] (short) (narrow) %v2338_v35, 8  ;;  %866 = vmatpush.bf16.msrb.mxu1 %v2314_v22 }
 0x133   :  { %787 = vmatpush.bf16.msrb.mxu0 %v2314_v22  ;;  %951 = vmatpush.bf16.msrb.mxu2 %v2314_v22 }
 0x134   :  { %1038 = vmatpush.bf16.msrb.mxu3 %v2314_v22 }
 0x136   :  { %867 = vmatpush.bf16.msrb.mxu1 %v2313_v39 }
 0x137   :  { %788 = vmatpush.bf16.msrb.mxu0 %v2313_v39  ;;  %952 = vmatpush.bf16.msrb.mxu2 %v2313_v39 }
 0x138   :  { %1039 = vmatpush.bf16.msrb.mxu3 %v2313_v39 }
 0x1be   :  { %v2340_v40 = vpop.trf.xlu1 }
 0x1bf   :  { %v2341_v41 = vunpack.i.l.bf16 %v2340_v40  ;;  %v2344_v18 = vunpack.i.h.bf16 %v2340_v40 }
 0x1c1   :  { %v368_v44 = vpack.c.bf16 %v2341_v41, %v2341_v41  ;;  %v718_v46 = vpack.c.bf16 %v2344_v18, %v2344_v18 }
 0x1c3   :  { %2258 = vmatmul.msk.bf16.vlgmr.msra.gmra.mxu0 %vm394_vm9, %v368_v44  ;;  %2259 = vmatmul.msk.bf16.vlgmr.msra.gmra.mxu1 %vm394_vm9, %v368_v44 }
 0x1c4   :  { %2260 = vmatmul.msk.bf16.vlgmr.msra.gmra.mxu2 %vm394_vm9, %v718_v46  ;;  %2261 = vmatmul.msk.bf16.vlgmr.msra.gmra.mxu3 %vm394_vm9, %v718_v46 }
 0x1c5   :  { %1125 = vmatpush.bf16.msra.mxu0 %v2314_v22  ;;  %1212 = vmatpush.bf16.msra.mxu1 %v2314_v22 }
 0x1c6   :  { %1299 = vmatpush.bf16.msra.mxu2 %v2314_v22  ;;  %1386 = vmatpush.bf16.msra.mxu3 %v2314_v22 }
 0x1c9   :  { %1126 = vmatpush.bf16.msra.mxu0 %v2313_v39  ;;  %1213 = vmatpush.bf16.msra.mxu1 %v2313_v39 }
 0x1ca   :  { %1300 = vmatpush.bf16.msra.mxu2 %v2313_v39  ;;  %1387 = vmatpush.bf16.msra.mxu3 %v2313_v39 }
 0x1d3   :  { %789 = vmatmul.bf16.vlgmr.msrb.gmra.mxu0 %v2699_v48 }
 0x240   :  { %v407_v34 = vpop.f32.mrf.mxu0  ;;  %v3062_v49 = vpop.f32.mrf.mxu1 }
 0x241   :  { %v3072_v54 = vadd.f32 %v407_v34, %v370_v53 }
 0x247   :  { %v731_v14 = vpop.f32.mrf.mxu2  ;;  %v3064_v50 = vpop.f32.mrf.mxu3 }
 0x248   :  { %v409_v52 = vpop.f32.mrf.mxu0  ;;  %v422_v43 = vpop.f32.mrf.mxu1  ;;  %v3074_v58 = vadd.f32 %v731_v14, %v370_v53 }
 0x24f   :  { %v733_v56 = vpop.f32.mrf.mxu2  ;;  %v746_v0 = vpop.f32.mrf.mxu3 }
 0x250   :  { %v790_v57 = vpop.f32.mrf.mxu0 }
 0x251   :  { %v795_v59 = vrot.slane %v790_v57, 1  ;;  %v798_v47 = vadd.f32 %v790_v57, %v3072_v54 }
 0x253   :  { %v799_v55 = vadd.f32 %v795_v59, %v3074_v58  ;;  %2358 = vtanh.f32 %v798_v47  ;;  %v800_v4 = vsub.f32 0.0, %v798_v47 }
 0x255   :  { %2360 = vtanh.f32 %v799_v55  ;;  %v801_v63 = vsub.f32 0.0, %v799_v55  ;;  %v802_v5 = vmul.f32 1.442695, %v800_v4 }
 0x257   :  { %v804_v1 = vmul.f32 1.442695, %v801_v63 }
 0x258   :  { %v792_v60 = vpop.f32.mrf.mxu0 }
 0x259   :  { %v2359_v61 = vpop.eup %2358  ;;  %2362 = vpow2.f32 %v804_v1 }
 0x25a   :  { %816 = vrot.lane.b32.xlu0 %v2359_v61, %s2696_s9 }
 0x25b   :  { %v2361_v62 = vpop.eup %2360 }
 0x25c   :  { %818 = vrot.lane.b32.xlu2 %v2361_v62, %s2696_s9 }
 0x25f   :  { %v2363_v2 = vpop.eup %2362 }
 0x260   :  { %v807_v3 = vadd.f32 1.0, %v2363_v2 }
 0x262   :  { %2364 = vrcp.f32 %v807_v3 }
 0x263   :  { %2366 = vpow2.f32 %v802_v5 }
 0x268   :  { %v2365_v7 = vpop.eup %2364 }
 0x269   :  { %v2367_v10 = vpop.eup %2366  ;;  %v813_v21 = vmul.f32 0.0, %v2365_v7 }
 0x26a   :  { %v806_v12 = vadd.f32 1.0, %v2367_v10 }
 0x26c   :  { %2368 = vrcp.f32 %v806_v12 }
 0x272   :  { %v2369_v13 = vpop.eup %2368 }
 0x273   :  { %v812_v25 = vmul.f32 0.0, %v2369_v13 }
 0x2b6   :  { %v819_v8 = vpop.permute.xlu2 %818 }
 0x2b7   :  { %v823_v9 = vmul.f32 %v2365_v7, %v819_v8 }
 0x2b9   :  { %828 = vrot.lane.b32.xlu2 %v823_v9, %s2700_s2 }
 0x2cc   :  { %v817_v15 = vpop.permute.xlu0 %816 }
 0x2cd   :  { %v822_v19 = vmul.f32 %v2369_v13, %v817_v15 }
 0x2cf   :  { %826 = vrot.lane.b32.xlu0 %v822_v19, %s2700_s2 }
 0x313   :  { %v829_v20 = vpop.permute.xlu2 %828 }
 0x314   :  { %v833_v23 = vadd.f32 %v829_v20, %v813_v21 }
 0x316   :  { %2370 = vtanh.f32 %v833_v23  ;;  %v894_v60 = vrot.slane %v833_v23, 7 }
 0x31c   :  { %v2371_v24 = vpop.eup %2370 }
 0x31d   :  { %840 = vrot.lane.b32.xlu2 %v2371_v24, %s2696_s9 }
 0x341   :  { %v827_v26 = vpop.permute.xlu0 %826 }
 0x342   :  { %v832_v27 = vadd.f32 %v827_v26, %v812_v25 }
 0x344   :  { %2372 = vtanh.f32 %v832_v27  ;;  %v893_v2 = vrot.slane %v832_v27, 7 }
 0x34a   :  { %v2373_v11 = vpop.eup %2372 }
 0x34b   :  { %838 = vrot.lane.b32.xlu0 %v2373_v11, %s2696_s9 }
 0x377   :  { %v841_v28 = vpop.permute.xlu2 %840 }
 0x378   :  { %v845_v17 = vmul.f32 %v2365_v7, %v841_v28 }
 0x37a   :  { %v847_v16 = vpack.c.bf16 %v845_v17, %v845_v17 }
 0x37c   :  { %v851_v30 = vunpack.c.l.b16 %v847_v16 }
 0x37e   :  { %v852_v33 = vrot.slane %v851_v30, 7 }
 0x3bd   :  { %v839_v29 = vpop.permute.xlu0 %838 }
 0x3be   :  { %v844_v31 = vmul.f32 %v2369_v13, %v839_v29 }
 0x3c0   :  { %v846_v32 = vpack.c.bf16 %v844_v31, %v844_v31 }
 0x3c2   :  { %v850_v35 = vunpack.c.l.b16 %v846_v32 }
 0x3c4   :  { %v853_v6 = vsel %vm297_vm2, %v852_v33, %v850_v35 }
 0x3c5   :  { %v854_v36 = vpack.c.b16 %v853_v6, %v853_v6 }
 0x3c7   :  { %855 = vrot.lane.b32.xlu2 %v854_v36, %s2700_s2 }
 0x421   :  { %v856_v42 = vpop.permute.xlu2 %855 }
 0x422   :  { %2270 = vmatmul.msk.bf16.vlgmr.msrb.gmra.mxu1 %vm394_vm9, %v856_v42 }
 0x49f   :  { %v869_v45 = vpop.f32.mrf.mxu1 }
 0x4a0   :  { %v874_v37 = vrot.slane %v869_v45, 7  ;;  %v878_v38 = vadd.f32 %v869_v45, %v3074_v58 }
 0x4a2   :  { %v877_v22 = vadd.f32 %v874_v37, %v3072_v54  ;;  %2374 = vtanh.f32 %v878_v38  ;;  %v880_v18 = vsub.f32 0.0, %v878_v38 }
 0x4a4   :  { %2376 = vtanh.f32 %v877_v22  ;;  %v883_v44 = vmul.f32 1.442695, %v880_v18  ;;  %v879_v14 = vsub.f32 0.0, %v877_v22 }
 0x4a6   :  { %2378 = vpow2.f32 %v883_v44  ;;  %v881_v56 = vmul.f32 1.442695, %v879_v14 }
 0x4a7   :  { %v871_v39 = vpop.f32.mrf.mxu1 }
 0x4a8   :  { %v2375_v40 = vpop.eup %2374 }
 0x4a9   :  { %903 = vrot.lane.b32.xlu2 %v2375_v40, %s2696_s9 }
 0x4aa   :  { %v2377_v41 = vpop.eup %2376 }
 0x4ab   :  { %901 = vrot.lane.b32.xlu0 %v2377_v41, %s2696_s9 }
 0x4ac   :  { %v2379_v46 = vpop.eup %2378 }
 0x4ad   :  { %v886_v34 = vadd.f32 1.0, %v2379_v46 }
 0x4af   :  { %2380 = vrcp.f32 %v886_v34 }
 0x4b0   :  { %2382 = vpow2.f32 %v881_v56 }
 0x4b5   :  { %v2381_v52 = vpop.eup %2380 }
 0x4b6   :  { %v2383_v0 = vpop.eup %2382  ;;  %v898_v61 = vmul.f32 %v2381_v52, %v894_v60 }
 0x4b7   :  { %v885_v57 = vadd.f32 1.0, %v2383_v0 }
 0x4b9   :  { %2384 = vrcp.f32 %v885_v57 }
 0x4bf   :  { %v2385_v59 = vpop.eup %2384 }
 0x4c0   :  { %v897_v3 = vmul.f32 %v2385_v59, %v893_v2 }
 0x503   :  { %v904_v43 = vpop.permute.xlu2 %903 }
 0x504   :  { %v908_v53 = vmul.f32 %v2381_v52, %v904_v43 }
 0x506   :  { %913 = vrot.lane.b32.xlu2 %v908_v53, %s2700_s2 }
 0x51d   :  { %v902_v47 = vpop.permute.xlu0 %901 }
 0x51e   :  { %v907_v55 = vmul.f32 %v2385_v59, %v902_v47 }
 0x520   :  { %911 = vrot.lane.b32.xlu0 %v907_v55, %s2700_s2 }
 0x560   :  { %v914_v62 = vpop.permute.xlu2 %913 }
 0x561   :  { %v3093_v63 = vadd.f32 %v914_v62, %v898_v61 }
 0x563   :  { %2386 = vtanh.f32 %v3093_v63 }
 0x569   :  { %v2387_v1 = vpop.eup %2386 }
 0x56a   :  { %925 = vrot.lane.b32.xlu2 %v2387_v1, %s2696_s9 }
 0x592   :  { %v912_v4 = vpop.permute.xlu0 %911 }
 0x593   :  { %v917_v5 = vadd.f32 %v912_v4, %v897_v3 }
 0x595   :  { %2388 = vtanh.f32 %v917_v5  ;;  %v979_v18 = vrot.slane %v917_v5, 7 }
 0x59b   :  { %v2389_v7 = vpop.eup %2388 }
 0x59c   :  { %923 = vrot.lane.b32.xlu0 %v2389_v7, %s2696_s9 }
 0x5c4   :  { %v926_v8 = vpop.permute.xlu2 %925 }
 0x5c5   :  { %v930_v9 = vmul.f32 %v2381_v52, %v926_v8  ;;  %v980_v52 = vrot.slane %v3093_v63, 7 }
 0x5c7   :  { %v932_v13 = vpack.c.bf16 %v930_v9, %v930_v9 }
 0x5c9   :  { %v936_v21 = vunpack.c.l.b16 %v932_v13 }
 0x60e   :  { %v924_v10 = vpop.permute.xlu0 %923 }
 0x60f   :  { %v929_v12 = vmul.f32 %v2385_v59, %v924_v10 }
 0x611   :  { %v931_v15 = vpack.c.bf16 %v929_v12, %v929_v12 }
 0x613   :  { %v935_v19 = vunpack.c.l.b16 %v931_v15 }
 0x615   :  { %v937_v20 = vrot.slane %v935_v19, 1 }
 0x617   :  { %v938_v23 = vsel %vm297_vm2, %v936_v21, %v937_v20 }
 0x618   :  { %v939_v24 = vpack.c.b16 %v938_v23, %v938_v23 }
 0x61a   :  { %940 = vrot.lane.b32.xlu0 %v939_v24, %s2700_s2 }
 0x68c   :  { %v941_v25 = vpop.permute.xlu0 %940 }
 0x68d   :  { %2271 = vmatmul.msk.bf16.vlgmr.msrb.gmra.mxu2 %vm394_vm9, %v941_v25 }
 0x710   :  { %v954_v26 = vpop.f32.mrf.mxu2 }
 0x711   :  { %v959_v27 = vrot.slane %v954_v26, 6  ;;  %v960_v11 = vrot.slane %v954_v26, 7 }
 0x713   :  { %v963_v28 = vadd.f32 %v959_v27, %v3072_v54  ;;  %v964_v17 = vadd.f32 %v960_v11, %v3074_v58 }
 0x715   :  { %2390 = vtanh.f32 %v963_v28  ;;  %v965_v31 = vsub.f32 0.0, %v963_v28  ;;  %v966_v6 = vsub.f32 0.0, %v964_v17 }
 0x716   :  { %2392 = vtanh.f32 %v964_v17 }
 0x717   :  { %v967_v32 = vmul.f32 1.442695, %v965_v31  ;;  %v969_v37 = vmul.f32 1.442695, %v966_v6 }
 0x718   :  { %v956_v16 = vpop.f32.mrf.mxu2 }
 0x719   :  { %2394 = vpow2.f32 %v967_v32 }
 0x71b   :  { %v2391_v29 = vpop.eup %2390 }
 0x71c   :  { %v2393_v30 = vpop.eup %2392  ;;  %987 = vrot.lane.b32.xlu2 %v2391_v29, %s2696_s9 }
 0x71d   :  { %989 = vrot.lane.b32.xlu0 %v2393_v30, %s2696_s9 }
 0x71f   :  { %v2395_v33 = vpop.eup %2394 }
 0x720   :  { %v971_v35 = vadd.f32 1.0, %v2395_v33 }
 0x722   :  { %2396 = vrcp.f32 %v971_v35 }
 0x723   :  { %2398 = vpow2.f32 %v969_v37 }
 0x728   :  { %v2397_v36 = vpop.eup %2396 }
 0x729   :  { %v2399_v38 = vpop.eup %2398  ;;  %v983_v44 = vmul.f32 %v2397_v36, %v979_v18 }
 0x72a   :  { %v972_v22 = vadd.f32 1.0, %v2399_v38 }
 0x72c   :  { %2400 = vrcp.f32 %v972_v22 }
 0x732   :  { %v2401_v39 = vpop.eup %2400 }
 0x733   :  { %v984_v43 = vmul.f32 %v2401_v39, %v980_v52 }
 0x776   :  { %v988_v42 = vpop.permute.xlu2 %987 }
 0x777   :  { %v993_v45 = vmul.f32 %v2397_v36, %v988_v42 }
 0x779   :  { %997 = vrot.lane.b32.xlu2 %v993_v45, %s2700_s2 }
 0x78f   :  { %v990_v40 = vpop.permute.xlu0 %989 }
 0x790   :  { %v994_v41 = vmul.f32 %v2401_v39, %v990_v40 }
 0x792   :  { %999 = vrot.lane.b32.xlu1 %v994_v41, %s2700_s2 }
 0x7d3   :  { %v998_v46 = vpop.permute.xlu2 %997 }
 0x7d4   :  { %v1003_v34 = vadd.f32 %v998_v46, %v983_v44 }
 0x7d6   :  { %2402 = vtanh.f32 %v1003_v34  ;;  %v1066_v32 = vrot.slane %v1003_v34, 7 }
 0x7dc   :  { %v2403_v14 = vpop.eup %2402 }
 0x7dd   :  { %1009 = vrot.lane.b32.xlu0 %v2403_v14, %s2696_s9 }
 0x804   :  { %v1000_v53 = vpop.permute.xlu1 %999 }
 0x805   :  { %v1004_v56 = vadd.f32 %v1000_v53, %v984_v43 }
 0x807   :  { %2404 = vtanh.f32 %v1004_v56  ;;  %v1067_v42 = vrot.slane %v1004_v56, 7 }
 0x80d   :  { %v2405_v0 = vpop.eup %2404 }
 0x80e   :  { %1011 = vrot.lane.b32.xlu2 %v2405_v0, %s2696_s9  ;;  %v3129_v0 = vld [vmem:[#allocation6 + $0x18] sm:$0xff] }
 0x80f   :  { %1475 = vmatpush.bf16.msrb.mxu0 %v3129_v0  ;;  %1554 = vmatpush.bf16.msrb.mxu1 %v3129_v0 }
 0x810   :  { %1639 = vmatpush.bf16.msrb.mxu2 %v3129_v0 }
 0x84f   :  { %v1010_v57 = vpop.permute.xlu0 %1009 }
 0x850   :  { %v1015_v59 = vmul.f32 %v2397_v36, %v1010_v57  ;;  %v3132_v57 = vld [vmem:[#allocation6 + $0x10] sm:$0xff] }
 0x851   :  { %1476 = vmatpush.bf16.msrb.mxu0 %v3132_v57  ;;  %1555 = vmatpush.bf16.msrb.mxu1 %v3132_v57 }
 0x852   :  { %v1017_v47 = vpack.c.bf16 %v1015_v59, %v1015_v59  ;;  %1640 = vmatpush.bf16.msrb.mxu2 %v3132_v57 }
 0x854   :  { %v1021_v61 = vunpack.c.l.b16 %v1017_v47 }
 0x856   :  { %v1023_v2 = vrot.slane %v1021_v61, 2 }
 0x868   :  { %v1012_v55 = vpop.permute.xlu2 %1011 }
 0x869   :  { %v1016_v60 = vmul.f32 %v2401_v39, %v1012_v55 }
 0x86b   :  { %v1018_v62 = vpack.c.bf16 %v1016_v60, %v1016_v60 }
 0x86d   :  { %v1022_v1 = vunpack.c.l.b16 %v1018_v62 }
 0x86f   :  { %v1024_v3 = vrot.slane %v1022_v1, 1 }
 0x871   :  { %v1025_v4 = vsel %vm297_vm2, %v1024_v3, %v1023_v2  ;;  %v371_v3 = vperm.slane %v3069_v51, 1 }
 0x872   :  { %v1026_v63 = vpack.c.b16 %v1025_v4, %v1025_v4 }
 0x874   :  { %1027 = vrot.lane.b32.xlu0 %v1026_v63, %s2700_s2 }
 0x8e6   :  { %v1028_v5 = vpop.permute.xlu0 %1027 }
 0x8e7   :  { %2272 = vmatmul.msk.bf16.vlgmr.msrb.gmra.mxu3 %vm394_vm9, %v1028_v5  ;;  %v3154_v5 = vadd.f32 %v3064_v50, %v371_v3 }
 0x8e8   :  { %1726 = vmatpush.bf16.msrb.mxu3 %v3129_v0 }
 0x8ec   :  { %1727 = vmatpush.bf16.msrb.mxu3 %v3132_v57 }
 0x96a   :  { %v1041_v7 = vpop.f32.mrf.mxu3 }
 0x96b   :  { %v1046_v8 = vrot.slane %v1041_v7, 5  ;;  %v1047_v9 = vrot.slane %v1041_v7, 6 }
 0x96d   :  { %v1050_v10 = vadd.f32 %v1046_v8, %v3072_v54  ;;  %v1051_v12 = vadd.f32 %v1047_v9, %v3074_v58 }
 0x96f   :  { %2406 = vtanh.f32 %v1050_v10  ;;  %v1052_v21 = vsub.f32 0.0, %v1050_v10  ;;  %v1053_v25 = vsub.f32 0.0, %v1051_v12 }
 0x970   :  { %2408 = vtanh.f32 %v1051_v12 }
 0x971   :  { %v1054_v20 = vmul.f32 1.442695, %v1052_v21  ;;  %v1056_v28 = vmul.f32 1.442695, %v1053_v25 }
 0x972   :  { %v1043_v13 = vpop.f32.mrf.mxu3 }
 0x973   :  { %2410 = vpow2.f32 %v1054_v20 }
 0x975   :  { %v2407_v15 = vpop.eup %2406 }
 0x976   :  { %v2409_v19 = vpop.eup %2408  ;;  %1074 = vrot.lane.b32.xlu2 %v2407_v15, %s2696_s9 }
 0x977   :  { %1076 = vrot.lane.b32.xlu0 %v2409_v19, %s2696_s9 }
 0x979   :  { %v2411_v23 = vpop.eup %2410 }
 0x97a   :  { %v1058_v24 = vadd.f32 1.0, %v2411_v23 }
 0x97c   :  { %2412 = vrcp.f32 %v1058_v24 }
 0x97d   :  { %2414 = vpow2.f32 %v1056_v28 }
 0x982   :  { %v2413_v26 = vpop.eup %2412 }
 0x983   :  { %v2415_v17 = vpop.eup %2414  ;;  %v1070_v33 = vmul.f32 %v2413_v26, %v1066_v32 }
 0x984   :  { %v1059_v16 = vadd.f32 1.0, %v2415_v17 }
 0x986   :  { %2416 = vrcp.f32 %v1059_v16 }
 0x98c   :  { %v2417_v29 = vpop.eup %2416 }
 0x98d   :  { %v1071_v45 = vmul.f32 %v2417_v29, %v1067_v42 }
 0x9d0   :  { %v1075_v27 = vpop.permute.xlu2 %1074 }
 0x9d1   :  { %v1080_v11 = vmul.f32 %v2413_v26, %v1075_v27 }
 0x9d3   :  { %1084 = vrot.lane.b32.xlu2 %v1080_v11, %s2700_s2 }
 0x9e9   :  { %v1077_v30 = vpop.permute.xlu0 %1076 }
 0x9ea   :  { %v1081_v31 = vmul.f32 %v2417_v29, %v1077_v30 }
 0x9ec   :  { %1086 = vrot.lane.b32.xlu0 %v1081_v31, %s2700_s2 }
 0xa2d   :  { %v1085_v35 = vpop.permute.xlu2 %1084 }
 0xa2e   :  { %v3119_v6 = vadd.f32 %v1085_v35, %v1070_v33 }
 0xa30   :  { %2418 = vtanh.f32 %v3119_v6 }
 0xa36   :  { %v2419_v36 = vpop.eup %2418 }
 0xa37   :  { %1096 = vrot.lane.b32.xlu2 %v2419_v36, %s2696_s9 }
 0xa5e   :  { %v1087_v37 = vpop.permute.xlu0 %1086 }
 0xa5f   :  { %v3123_v38 = vadd.f32 %v1087_v37, %v1071_v45 }
 0xa61   :  { %2420 = vtanh.f32 %v3123_v38 }
 0xa67   :  { %v2421_v22 = vpop.eup %2420 }
 0xa68   :  { %1098 = vrot.lane.b32.xlu0 %v2421_v22, %s2696_s9 }
 0xa91   :  { %v1097_v39 = vpop.permute.xlu2 %1096 }
 0xa92   :  { %v1102_v40 = vmul.f32 %v2413_v26, %v1097_v39 }
 0xa94   :  { %v1104_v41 = vpack.c.bf16 %v1102_v40, %v1102_v40  ;;  %v1154_v40 = vrot.slane %v3123_v38, 7  ;;  %v1153_v38 = vrot.slane %v3119_v6, 7 }
 0xa96   :  { %v1108_v46 = vunpack.c.l.b16 %v1104_v41 }
 0xa98   :  { %v1110_v52 = vrot.slane %v1108_v46, 3 }
 0xada   :  { %v1099_v18 = vpop.permute.xlu0 %1098 }
 0xadb   :  { %v1103_v44 = vmul.f32 %v2417_v29, %v1099_v18 }
 0xadd   :  { %v1105_v34 = vpack.c.bf16 %v1103_v44, %v1103_v44 }
 0xadf   :  { %v1109_v14 = vunpack.c.l.b16 %v1105_v34 }
 0xae1   :  { %v1111_v43 = vrot.slane %v1109_v14, 2 }
 0xae3   :  { %v1112_v53 = vsel %vm297_vm2, %v1111_v43, %v1110_v52 }
 0xae4   :  { %v1113_v56 = vpack.c.b16 %v1112_v53, %v1112_v53 }
 0xae6   :  { %1114 = vrot.lane.b32.xlu2 %v1113_v56, %s2700_s2 }
 0xb40   :  { %v1115_v59 = vpop.permute.xlu2 %1114 }
 0xb41   :  { %2273 = vmatmul.msk.bf16.vlgmr.msra.gmra.mxu0 %vm394_vm9, %v1115_v59 }
 0xb42   :  { %1813 = vmatpush.bf16.msra.mxu0 %v3129_v0 }
 0xb46   :  { %1814 = vmatpush.bf16.msra.mxu0 %v3132_v57 }
 0xb51   :  { %1477 = vmatmul.bf16.vlgmr.msrb.gmra.mxu0 %v2699_v48  ;;  %v3151_v48 = vadd.f32 %v3062_v49, %v371_v3 }
 0xbbe   :  { %v1128_v47 = vpop.f32.mrf.mxu0 }
 0xbbf   :  { %v1133_v55 = vrot.slane %v1128_v47, 4  ;;  %v1134_v60 = vrot.slane %v1128_v47, 5 }
 0xbc1   :  { %v1137_v61 = vadd.f32 %v1133_v55, %v3072_v54  ;;  %v1138_v62 = vadd.f32 %v1134_v60, %v3074_v58 }
 0xbc3   :  { %2422 = vtanh.f32 %v1137_v61  ;;  %v1140_v49 = vsub.f32 0.0, %v1138_v62  ;;  %v1139_v20 = vsub.f32 0.0, %v1137_v61 }
 0xbc4   :  { %2424 = vtanh.f32 %v1138_v62 }
 0xbc5   :  { %v1143_v13 = vmul.f32 1.442695, %v1140_v49  ;;  %v1141_v24 = vmul.f32 1.442695, %v1139_v20 }
 0xbc6   :  { %v1130_v1 = vpop.f32.mrf.mxu0 }
 0xbc9   :  { %v2423_v2 = vpop.eup %2422 }
 0xbca   :  { %v2425_v4 = vpop.eup %2424  ;;  %1161 = vrot.lane.b32.xlu0 %v2423_v2, %s2696_s9 }
 0xbcb   :  { %1163 = vrot.lane.b32.xlu2 %v2425_v4, %s2696_s9 }
 0xbce   :  { %v1478_v63 = vpop.f32.mrf.mxu0 }
 0xbcf   :  { %v1483_v7 = vrot.slane %v1478_v63, 1  ;;  %v1486_v8 = vadd.f32 %v1478_v63, %v3151_v48 }
 0xbd1   :  { %v1487_v9 = vadd.f32 %v1483_v7, %v3154_v5  ;;  %2426 = vtanh.f32 %v1486_v8  ;;  %v1488_v50 = vsub.f32 0.0, %v1486_v8 }
 0xbd3   :  { %2428 = vtanh.f32 %v1487_v9  ;;  %v1490_v21 = vmul.f32 1.442695, %v1488_v50  ;;  %v1489_v17 = vsub.f32 0.0, %v1487_v9 }
 0xbd4   :  { %2430 = vpow2.f32 %v1143_v13 }
 0xbd5   :  { %v1492_v32 = vmul.f32 1.442695, %v1489_v17 }
 0xbd6   :  { %v1480_v51 = vpop.f32.mrf.mxu0 }
 0xbd7   :  { %v2427_v10 = vpop.eup %2426 }
 0xbd8   :  { %1504 = vrot.lane.b32.xlu2 %v2427_v10, %s2696_s9 }
 0xbd9   :  { %v2429_v12 = vpop.eup %2428 }
 0xbda   :  { %1506 = vrot.lane.b32.xlu0 %v2429_v12, %s2696_s9  ;;  %v2431_v15 = vpop.eup %2430 }
 0xbdb   :  { %v1146_v19 = vadd.f32 1.0, %v2431_v15 }
 0xbdd   :  { %2432 = vrcp.f32 %v1146_v19 }
 0xbde   :  { %2434 = vpow2.f32 %v1490_v21 }
 0xbdf   :  { %2436 = vpow2.f32 %v1141_v24 }
 0xbe3   :  { %v2433_v23 = vpop.eup %2432 }
 0xbe4   :  { %v2435_v26 = vpop.eup %2434  ;;  %v1158_v41 = vmul.f32 %v2433_v23, %v1154_v40 }
 0xbe5   :  { %v1494_v11 = vadd.f32 1.0, %v2435_v26  ;;  %v2437_v28 = vpop.eup %2436 }
 0xbe6   :  { %v1145_v16 = vadd.f32 1.0, %v2437_v28 }
 0xbe7   :  { %2438 = vrcp.f32 %v1494_v11 }
 0xbe8   :  { %2440 = vrcp.f32 %v1145_v16 }
 0xbe9   :  { %2442 = vpow2.f32 %v1492_v32 }
 0xbed   :  { %v2439_v29 = vpop.eup %2438 }
 0xbee   :  { %v2441_v33 = vpop.eup %2440  ;;  %v1500_v34 = vmul.f32 0.0, %v2439_v29 }
 0xbef   :  { %v2443_v42 = vpop.eup %2442  ;;  %v1157_v53 = vmul.f32 %v2441_v33, %v1153_v38 }
 0xbf0   :  { %v1495_v45 = vadd.f32 1.0, %v2443_v42 }
 0xbf2   :  { %2444 = vrcp.f32 %v1495_v45 }
 0xbf8   :  { %v2445_v37 = vpop.eup %2444 }
 0xbf9   :  { %v1501_v55 = vmul.f32 0.0, %v2445_v37 }
 0xc25   :  { %v1164_v25 = vpop.permute.xlu2 %1163 }
 0xc26   :  { %v1168_v27 = vmul.f32 %v2433_v23, %v1164_v25 }
 0xc28   :  { %1173 = vrot.lane.b32.xlu2 %v1168_v27, %s2700_s2 }
 0xc32   :  { %v1505_v30 = vpop.permute.xlu2 %1504 }
 0xc33   :  { %v1510_v31 = vmul.f32 %v2439_v29, %v1505_v30 }
 0xc35   :  { %1514 = vrot.lane.b32.xlu2 %v1510_v31, %s2700_s2 }
 0xc3c   :  { %v1162_v35 = vpop.permute.xlu0 %1161 }
 0xc3d   :  { %v1167_v36 = vmul.f32 %v2441_v33, %v1162_v35 }
 0xc3f   :  { %1171 = vrot.lane.b32.xlu0 %v1167_v36, %s2700_s2 }
 0xc4c   :  { %v1507_v22 = vpop.permute.xlu0 %1506 }
 0xc4d   :  { %v1511_v39 = vmul.f32 %v2445_v37, %v1507_v22 }
 0xc4f   :  { %1516 = vrot.lane.b32.xlu0 %v1511_v39, %s2700_s2 }
 0xc82   :  { %v1174_v18 = vpop.permute.xlu2 %1173 }
 0xc83   :  { %v3165_v44 = vadd.f32 %v1174_v18, %v1158_v41 }
 0xc85   :  { %2446 = vtanh.f32 %v3165_v44 }
 0xc8b   :  { %v2447_v46 = vpop.eup %2446 }
 0xc8c   :  { %1185 = vrot.lane.b32.xlu2 %v2447_v46, %s2696_s9 }
 0xc8f   :  { %v1515_v14 = vpop.permute.xlu2 %1514 }
 0xc90   :  { %v3169_v52 = vadd.f32 %v1515_v14, %v1500_v34 }
 0xc92   :  { %2448 = vtanh.f32 %v3169_v52 }
 0xc98   :  { %v2449_v43 = vpop.eup %2448 }
 0xc99   :  { %1526 = vrot.lane.b32.xlu2 %v2449_v43, %s2696_s9 }
 0xcb1   :  { %v1172_v56 = vpop.permute.xlu0 %1171 }
 0xcb2   :  { %v3174_v59 = vadd.f32 %v1172_v56, %v1157_v53 }
 0xcb4   :  { %2450 = vtanh.f32 %v3174_v59 }
 0xcba   :  { %v2451_v47 = vpop.eup %2450 }
 0xcbb   :  { %1183 = vrot.lane.b32.xlu0 %v2451_v47, %s2696_s9 }
 0xcc1   :  { %v1517_v60 = vpop.permute.xlu0 %1516 }
 0xcc2   :  { %v3178_v61 = vadd.f32 %v1517_v60, %v1501_v55 }
 0xcc4   :  { %2452 = vtanh.f32 %v3178_v61 }
 0xcca   :  { %v2453_v62 = vpop.eup %2452 }
 0xccb   :  { %1528 = vrot.lane.b32.xlu0 %v2453_v62, %s2696_s9 }
 0xce6   :  { %v1186_v1 = vpop.permute.xlu2 %1185 }
 0xce7   :  { %v1190_v6 = vmul.f32 %v2433_v23, %v1186_v1 }
 0xce9   :  { %v1192_v2 = vpack.c.bf16 %v1190_v6, %v1190_v6 }
 0xceb   :  { %v1196_v63 = vunpack.c.l.b16 %v1192_v2 }
 0xced   :  { %v1198_v9 = vrot.slane %v1196_v63, 3 }
 0xcf3   :  { %v1527_v49 = vpop.permute.xlu2 %1526 }
 0xcf4   :  { %v1532_v13 = vmul.f32 %v2439_v29, %v1527_v49 }
 0xcf6   :  { %v1534_v19 = vpack.c.bf16 %v1532_v13, %v1532_v13 }
 0xcf8   :  { %v1538_v23 = vunpack.c.l.b16 %v1534_v19 }
 0xd2d   :  { %v1184_v3 = vpop.permute.xlu0 %1183 }
 0xd2e   :  { %v1189_v4 = vmul.f32 %v2441_v33, %v1184_v3 }
 0xd30   :  { %v1191_v7 = vpack.c.bf16 %v1189_v4, %v1189_v4 }
 0xd32   :  { %v1195_v8 = vunpack.c.l.b16 %v1191_v7 }
 0xd34   :  { %v1197_v51 = vrot.slane %v1195_v8, 4 }
 0xd36   :  { %v1199_v10 = vsel %vm297_vm2, %v1198_v9, %v1197_v51 }
 0xd37   :  { %v1200_v12 = vpack.c.b16 %v1199_v10, %v1199_v10 }
 0xd39   :  { %1201 = vrot.lane.b32.xlu0 %v1200_v12, %s2700_s2 }
 0xd3d   :  { %v1529_v15 = vpop.permute.xlu0 %1528 }
 0xd3e   :  { %v1533_v50 = vmul.f32 %v2445_v37, %v1529_v15  ;;  %v1240_v15 = vrot.slane %v3174_v59, 7 }
 0xd40   :  { %v1535_v21 = vpack.c.bf16 %v1533_v50, %v1533_v50 }
 0xd42   :  { %v1539_v20 = vunpack.c.l.b16 %v1535_v21 }
 0xd44   :  { %v1540_v24 = vrot.slane %v1539_v20, 7 }
 0xd46   :  { %v1541_v25 = vsel %vm297_vm2, %v1540_v24, %v1538_v23  ;;  %v1582_v23 = vrot.slane %v3178_v61, 7  ;;  %v1581_v24 = vrot.slane %v3169_v52, 7 }
 0xd47   :  { %v1542_v26 = vpack.c.b16 %v1541_v25, %v1541_v25 }
 0xd49   :  { %1543 = vrot.lane.b32.xlu1 %v1542_v26, %s2700_s2 }
 0xdab   :  { %v1202_v27 = vpop.permute.xlu0 %1201 }
 0xdac   :  { %2274 = vmatmul.msk.bf16.vlgmr.msra.gmra.mxu1 %vm394_vm9, %v1202_v27 }
 0xdad   :  { %1900 = vmatpush.bf16.msra.mxu1 %v3129_v0 }
 0xdb1   :  { %1901 = vmatpush.bf16.msra.mxu1 %v3132_v57 }
 0xdbb   :  { %v1544_v11 = vpop.permute.xlu1 %1543 }
 0xdbc   :  { %2285 = vmatmul.msk.bf16.vlgmr.msrb.gmra.mxu1 %vm394_vm9, %v1544_v11 }
 0xe29   :  { %v1215_v28 = vpop.f32.mrf.mxu1 }
 0xe2a   :  { %v1220_v17 = vrot.slane %v1215_v28, 3  ;;  %v1221_v16 = vrot.slane %v1215_v28, 4 }
 0xe2c   :  { %v1224_v29 = vadd.f32 %v1220_v17, %v3072_v54  ;;  %v1225_v30 = vadd.f32 %v1221_v16, %v3074_v58  ;;  %v1241_v17 = vrot.slane %v3165_v44, 7 }
 0xe2e   :  { %2454 = vtanh.f32 %v1224_v29  ;;  %v1226_v40 = vsub.f32 0.0, %v1224_v29  ;;  %v1227_v43 = vsub.f32 0.0, %v1225_v30 }
 0xe2f   :  { %2456 = vtanh.f32 %v1225_v30 }
 0xe30   :  { %v1228_v41 = vmul.f32 1.442695, %v1226_v40  ;;  %v1230_v55 = vmul.f32 1.442695, %v1227_v43 }
 0xe31   :  { %v1217_v31 = vpop.f32.mrf.mxu1 }
 0xe34   :  { %v2455_v32 = vpop.eup %2454 }
 0xe35   :  { %v2457_v33 = vpop.eup %2456  ;;  %1248 = vrot.lane.b32.xlu2 %v2455_v32, %s2696_s9 }
 0xe36   :  { %1250 = vrot.lane.b32.xlu0 %v2457_v33, %s2696_s9 }
 0xe39   :  { %v1557_v35 = vpop.f32.mrf.mxu1 }
 0xe3a   :  { %v1562_v36 = vrot.slane %v1557_v35, 7  ;;  %v1566_v42 = vadd.f32 %v1557_v35, %v3154_v5 }
 0xe3c   :  { %v1565_v45 = vadd.f32 %v1562_v36, %v3151_v48  ;;  %2458 = vtanh.f32 %v1566_v42  ;;  %v1568_v46 = vsub.f32 0.0, %v1566_v42 }
 0xe3e   :  { %2460 = vtanh.f32 %v1565_v45  ;;  %v1571_v14 = vmul.f32 1.442695, %v1568_v46  ;;  %v1567_v1 = vsub.f32 0.0, %v1565_v45 }
 0xe3f   :  { %2462 = vpow2.f32 %v1228_v41 }
 0xe40   :  { %v1569_v63 = vmul.f32 1.442695, %v1567_v1 }
 0xe41   :  { %v1559_v37 = vpop.f32.mrf.mxu1 }
 0xe42   :  { %v2459_v22 = vpop.eup %2458 }
 0xe43   :  { %1591 = vrot.lane.b32.xlu2 %v2459_v22, %s2696_s9 }
 0xe44   :  { %v2461_v39 = vpop.eup %2460 }
 0xe45   :  { %1589 = vrot.lane.b32.xlu1 %v2461_v39, %s2696_s9  ;;  %v2463_v18 = vpop.eup %2462 }
 0xe46   :  { %v1232_v34 = vadd.f32 1.0, %v2463_v18 }
 0xe48   :  { %2464 = vrcp.f32 %v1232_v34 }
 0xe49   :  { %2466 = vpow2.f32 %v1571_v14 }
 0xe4a   :  { %2468 = vpow2.f32 %v1230_v55 }
 0xe4e   :  { %v2465_v38 = vpop.eup %2464 }
 0xe4f   :  { %v2467_v47 = vpop.eup %2466  ;;  %v1244_v50 = vmul.f32 %v2465_v38, %v1240_v15 }
 0xe50   :  { %v1574_v60 = vadd.f32 1.0, %v2467_v47  ;;  %v2469_v62 = vpop.eup %2468 }
 0xe51   :  { %v1233_v2 = vadd.f32 1.0, %v2469_v62 }
 0xe52   :  { %2470 = vrcp.f32 %v1574_v60 }
 0xe53   :  { %2472 = vrcp.f32 %v1233_v2 }
 0xe54   :  { %2474 = vpow2.f32 %v1569_v63 }
 0xe58   :  { %v2471_v6 = vpop.eup %2470 }
 0xe59   :  { %v2473_v7 = vpop.eup %2472  ;;  %v1586_v25 = vmul.f32 %v2471_v6, %v1582_v23 }
 0xe5a   :  { %v2475_v51 = vpop.eup %2474  ;;  %v1245_v29 = vmul.f32 %v2473_v7, %v1241_v17 }
 0xe5b   :  { %v1573_v10 = vadd.f32 1.0, %v2475_v51 }
 0xe5d   :  { %2476 = vrcp.f32 %v1573_v10 }
 0xe63   :  { %v2477_v12 = vpop.eup %2476 }
 0xe64   :  { %v1585_v27 = vmul.f32 %v2477_v12, %v1581_v24 }
 0xe8f   :  { %v1249_v53 = vpop.permute.xlu2 %1248 }
 0xe90   :  { %v1254_v56 = vmul.f32 %v2465_v38, %v1249_v53 }
 0xe92   :  { %1258 = vrot.lane.b32.xlu0 %v1254_v56, %s2700_s2 }
 0xe9d   :  { %v1592_v3 = vpop.permute.xlu2 %1591 }
 0xe9e   :  { %v1596_v4 = vmul.f32 %v2471_v6, %v1592_v3 }
 0xea0   :  { %1601 = vrot.lane.b32.xlu0 %v1596_v4, %s2700_s2 }
 0xea8   :  { %v1251_v8 = vpop.permute.xlu0 %1250 }
 0xea9   :  { %v1255_v9 = vmul.f32 %v2473_v7, %v1251_v8 }
 0xeab   :  { %1260 = vrot.lane.b32.xlu1 %v1255_v9, %s2700_s2 }
 0xeb7   :  { %v1590_v49 = vpop.permute.xlu1 %1589 }
 0xeb8   :  { %v1595_v13 = vmul.f32 %v2477_v12, %v1590_v49 }
 0xeba   :  { %1599 = vrot.lane.b32.xlu2 %v1595_v13, %s2700_s2 }
 0xf04   :  { %v1259_v19 = vpop.permute.xlu0 %1258 }
 0xf05   :  { %v3203_v21 = vadd.f32 %v1259_v19, %v1244_v50 }
 0xf07   :  { %2478 = vtanh.f32 %v3203_v21 }
 0xf0d   :  { %v2479_v20 = vpop.eup %2478 }
 0xf0e   :  { %1270 = vrot.lane.b32.xlu1 %v2479_v20, %s2696_s9 }
 0xf12   :  { %v1602_v26 = vpop.permute.xlu0 %1601 }
 0xf13   :  { %v3209_v11 = vadd.f32 %v1602_v26, %v1586_v25 }
 0xf14   :  { %v1600_v28 = vpop.permute.xlu2 %1599 }
 0xf15   :  { %v3211_v59 = vadd.f32 %v1600_v28, %v1585_v27  ;;  %2480 = vtanh.f32 %v3209_v11 }
 0xf17   :  { %2482 = vtanh.f32 %v3211_v59 }
 0xf1b   :  { %v2481_v16 = vpop.eup %2480 }
 0xf1c   :  { %1613 = vrot.lane.b32.xlu1 %v2481_v16, %s2696_s9 }
 0xf1d   :  { %v2483_v30 = vpop.eup %2482  ;;  %v1261_v61 = vpop.permute.xlu1 %1260 }
 0xf1e   :  { %v3217_v52 = vadd.f32 %v1261_v61, %v1245_v29  ;;  %1611 = vrot.lane.b32.xlu0 %v2483_v30, %s2696_s9 }
 0xf20   :  { %2484 = vtanh.f32 %v3217_v52 }
 0xf26   :  { %v2485_v31 = vpop.eup %2484 }
 0xf27   :  { %1272 = vrot.lane.b32.xlu2 %v2485_v31, %s2696_s9 }
 0xf80   :  { %v1271_v32 = vpop.permute.xlu1 %1270 }
 0xf81   :  { %v1276_v33 = vmul.f32 %v2465_v38, %v1271_v32  ;;  %v1273_v35 = vpop.permute.xlu2 %1272 }
 0xf82   :  { %v1277_v36 = vmul.f32 %v2473_v7, %v1273_v35 }
 0xf83   :  { %v1278_v44 = vpack.c.bf16 %v1276_v33, %v1276_v33 }
 0xf84   :  { %v1279_v42 = vpack.c.bf16 %v1277_v36, %v1277_v36 }
 0xf85   :  { %v1282_v45 = vunpack.c.l.b16 %v1278_v44 }
 0xf86   :  { %v1283_v37 = vunpack.c.l.b16 %v1279_v42 }
 0xf87   :  { %v1284_v22 = vrot.slane %v1282_v45, 5 }
 0xf88   :  { %v1285_v39 = vrot.slane %v1283_v37, 4 }
 0xf8a   :  { %v1286_v40 = vsel %vm297_vm2, %v1285_v39, %v1284_v22 }
 0xf8b   :  { %v1287_v41 = vpack.c.b16 %v1286_v40, %v1286_v40 }
 0xf8d   :  { %1288 = vrot.lane.b32.xlu2 %v1287_v41, %s2700_s2 }
 0xf8e   :  { %v1614_v18 = vpop.permute.xlu1 %1613 }
 0xf8f   :  { %v1618_v46 = vmul.f32 %v2471_v6, %v1614_v18 }
 0xf90   :  { %v1612_v34 = vpop.permute.xlu0 %1611 }
 0xf91   :  { %v1617_v14 = vmul.f32 %v2477_v12, %v1612_v34  ;;  %v1620_v43 = vpack.c.bf16 %v1618_v46, %v1618_v46 }
 0xf93   :  { %v1619_v53 = vpack.c.bf16 %v1617_v14, %v1617_v14  ;;  %v1624_v56 = vunpack.c.l.b16 %v1620_v43  ;;  %v1327_v14 = vrot.slane %v3203_v21, 7  ;;  %v1328_v43 = vrot.slane %v3217_v52, 7 }
 0xf94   :  { %v1668_v21 = vrot.slane %v3209_v11, 7 }
 0xf95   :  { %v1623_v38 = vunpack.c.l.b16 %v1619_v53 }
 0xf97   :  { %v1625_v47 = vrot.slane %v1623_v38, 1 }
 0xf99   :  { %v1626_v55 = vsel %vm297_vm2, %v1624_v56, %v1625_v47 }
 0xf9a   :  { %v1627_v60 = vpack.c.b16 %v1626_v55, %v1626_v55 }
 0xf9c   :  { %1628 = vrot.lane.b32.xlu0 %v1627_v60, %s2700_s2 }
 0xfe7   :  { %v1289_v62 = vpop.permute.xlu2 %1288 }
 0xfe8   :  { %2275 = vmatmul.msk.bf16.vlgmr.msra.gmra.mxu2 %vm394_vm9, %v1289_v62 }
 0xfe9   :  { %1987 = vmatpush.bf16.msra.mxu2 %v3129_v0 }
 0xfed   :  { %1988 = vmatpush.bf16.msra.mxu2 %v3132_v57 }
0x100e   :  { %v1629_v1 = vpop.permute.xlu0 %1628 }
0x100f   :  { %2286 = vmatmul.msk.bf16.vlgmr.msrb.gmra.mxu2 %vm394_vm9, %v1629_v1 }
0x106b   :  { %v1302_v6 = vpop.f32.mrf.mxu2 }
0x106c   :  { %v1307_v2 = vrot.slane %v1302_v6, 2  ;;  %v1308_v3 = vrot.slane %v1302_v6, 3 }
0x106e   :  { %v1311_v4 = vadd.f32 %v1307_v2, %v3072_v54  ;;  %v1312_v63 = vadd.f32 %v1308_v3, %v3074_v58 }
0x1070   :  { %2486 = vtanh.f32 %v1311_v4  ;;  %v1314_v20 = vsub.f32 0.0, %v1312_v63  ;;  %v1313_v26 = vsub.f32 0.0, %v1311_v4  ;;  %v1667_v4 = vrot.slane %v3211_v59, 7 }
0x1071   :  { %2488 = vtanh.f32 %v1312_v63 }
0x1072   :  { %v1317_v23 = vmul.f32 1.442695, %v1314_v20  ;;  %v1315_v28 = vmul.f32 1.442695, %v1313_v26 }
0x1073   :  { %v1304_v7 = vpop.f32.mrf.mxu2 }
0x1076   :  { %v2487_v8 = vpop.eup %2486 }
0x1077   :  { %v2489_v9 = vpop.eup %2488  ;;  %1335 = vrot.lane.b32.xlu1 %v2487_v8, %s2696_s9 }
0x1078   :  { %1337 = vrot.lane.b32.xlu2 %v2489_v9, %s2696_s9 }
0x1092   :  { %v1642_v51 = vpop.f32.mrf.mxu2 }
0x1093   :  { %v1647_v10 = vrot.slane %v1642_v51, 6  ;;  %v1648_v12 = vrot.slane %v1642_v51, 7 }
0x1095   :  { %v1651_v49 = vadd.f32 %v1647_v10, %v3151_v48  ;;  %v1652_v13 = vadd.f32 %v1648_v12, %v3154_v5 }
0x1097   :  { %2490 = vtanh.f32 %v1651_v49  ;;  %v1653_v33 = vsub.f32 0.0, %v1651_v49  ;;  %v1654_v35 = vsub.f32 0.0, %v1652_v13 }
0x1098   :  { %2492 = vtanh.f32 %v1652_v13 }
0x1099   :  { %2494 = vpow2.f32 %v1317_v23  ;;  %v1655_v36 = vmul.f32 1.442695, %v1653_v33  ;;  %v1657_v44 = vmul.f32 1.442695, %v1654_v35 }
0x109a   :  { %v1644_v15 = vpop.f32.mrf.mxu2 }
0x109d   :  { %v2491_v50 = vpop.eup %2490 }
0x109e   :  { %v2493_v19 = vpop.eup %2492  ;;  %1675 = vrot.lane.b32.xlu0 %v2491_v50, %s2696_s9 }
0x109f   :  { %1677 = vrot.lane.b32.xlu1 %v2493_v19, %s2696_s9  ;;  %v2495_v24 = vpop.eup %2494 }
0x10a0   :  { %v1320_v25 = vadd.f32 1.0, %v2495_v24 }
0x10a2   :  { %2496 = vrcp.f32 %v1320_v25 }
0x10a3   :  { %2498 = vpow2.f32 %v1315_v28 }
0x10a8   :  { %v3238_v27 = vpop.eup %2496 }
0x10a9   :  { %v2499_v29 = vpop.eup %2498  ;;  %v1332_v56 = vmul.f32 %v3238_v27, %v1328_v43 }
0x10aa   :  { %v1319_v30 = vadd.f32 1.0, %v2499_v29 }
0x10ac   :  { %2500 = vrcp.f32 %v1319_v30 }
0x10ad   :  { %2502 = vpow2.f32 %v1655_v36 }
0x10ae   :  { %2504 = vpow2.f32 %v1657_v44 }
0x10b2   :  { %v2501_v61 = vpop.eup %2500 }
0x10b3   :  { %v2503_v42 = vpop.eup %2502  ;;  %v1331_v53 = vmul.f32 %v2501_v61, %v1327_v14 }
0x10b4   :  { %v2505_v45 = vpop.eup %2504  ;;  %v1659_v37 = vadd.f32 1.0, %v2503_v42 }
0x10b5   :  { %v1660_v22 = vadd.f32 1.0, %v2505_v45 }
0x10b6   :  { %2506 = vrcp.f32 %v1659_v37 }
0x10b7   :  { %2508 = vrcp.f32 %v1660_v22 }
0x10bc   :  { %v2507_v39 = vpop.eup %2506 }
0x10bd   :  { %v2509_v41 = vpop.eup %2508  ;;  %v1671_v63 = vmul.f32 %v2507_v39, %v1667_v4 }
0x10be   :  { %v1672_v52 = vmul.f32 %v2509_v41, %v1668_v21 }
0x10d2   :  { %v1338_v17 = vpop.permute.xlu2 %1337 }
0x10d3   :  { %v1342_v16 = vmul.f32 %v3238_v27, %v1338_v17 }
0x10d5   :  { %1347 = vrot.lane.b32.xlu0 %v1342_v16, %s2700_s2 }
0x10e9   :  { %v1336_v31 = vpop.permute.xlu1 %1335 }
0x10ea   :  { %v1341_v32 = vmul.f32 %v2501_v61, %v1336_v31 }
0x10ec   :  { %1345 = vrot.lane.b32.xlu2 %v1341_v32, %s2700_s2 }
0x1110   :  { %v1676_v40 = vpop.permute.xlu0 %1675 }
0x1111   :  { %v1678_v18 = vpop.permute.xlu1 %1677  ;;  %v1681_v46 = vmul.f32 %v2507_v39, %v1676_v40 }
0x1112   :  { %v1682_v34 = vmul.f32 %v2509_v41, %v1678_v18 }
0x1113   :  { %1685 = vrot.lane.b32.xlu1 %v1681_v46, %s2700_s2 }
0x1114   :  { %1687 = vrot.lane.b32.xlu2 %v1682_v34, %s2700_s2 }
0x1146   :  { %v1346_v38 = vpop.permute.xlu2 %1345 }
0x1147   :  { %v3248_v47 = vadd.f32 %v1346_v38, %v1331_v53  ;;  %v1348_v55 = vpop.permute.xlu0 %1347 }
0x1148   :  { %v3250_v60 = vadd.f32 %v1348_v55, %v1332_v56 }
0x1149   :  { %2510 = vtanh.f32 %v3248_v47 }
0x114a   :  { %2512 = vtanh.f32 %v3250_v60 }
0x114f   :  { %v2511_v62 = vpop.eup %2510 }
0x1150   :  { %v2513_v1 = vpop.eup %2512  ;;  %1357 = vrot.lane.b32.xlu0 %v2511_v62, %s2696_s9 }
0x1151   :  { %1359 = vrot.lane.b32.xlu1 %v2513_v1, %s2696_s9 }
0x116e   :  { %v1688_v6 = vpop.permute.xlu2 %1687 }
0x116f   :  { %v3257_v2 = vadd.f32 %v1688_v6, %v1672_v52 }
0x1171   :  { %2514 = vtanh.f32 %v3257_v2 }
0x1177   :  { %v2515_v3 = vpop.eup %2514 }
0x1178   :  { %1699 = vrot.lane.b32.xlu0 %v2515_v3, %s2696_s9 }
0x1185   :  { %v1686_v7 = vpop.permute.xlu1 %1685 }
0x1186   :  { %v3262_v8 = vadd.f32 %v1686_v7, %v1671_v63 }
0x1188   :  { %2516 = vtanh.f32 %v3262_v8  ;;  %v1754_v6 = vrot.slane %v3262_v8, 7 }
0x118e   :  { %v2517_v9 = vpop.eup %2516 }
0x118f   :  { %1697 = vrot.lane.b32.xlu2 %v2517_v9, %s2696_s9  ;;  %v1755_v9 = vrot.slane %v3257_v2, 7 }
0x11c2   :  { %v1358_v11 = vpop.permute.xlu0 %1357 }
0x11c3   :  { %v1363_v51 = vmul.f32 %v2501_v61, %v1358_v11  ;;  %v1360_v10 = vpop.permute.xlu1 %1359 }
0x11c4   :  { %v1364_v12 = vmul.f32 %v3238_v27, %v1360_v10 }
0x11c5   :  { %v1365_v49 = vpack.c.bf16 %v1363_v51, %v1363_v51 }
0x11c6   :  { %v1366_v13 = vpack.c.bf16 %v1364_v12, %v1364_v12 }
0x11c7   :  { %v1369_v15 = vunpack.c.l.b16 %v1365_v49 }
0x11c8   :  { %v1370_v50 = vunpack.c.l.b16 %v1366_v13 }
0x11c9   :  { %v1371_v19 = vrot.slane %v1369_v15, 6 }
0x11ca   :  { %v1372_v59 = vrot.slane %v1370_v50, 5 }
0x11cc   :  { %v1373_v20 = vsel %vm297_vm2, %v1372_v59, %v1371_v19 }
0x11cd   :  { %v1374_v23 = vpack.c.b16 %v1373_v20, %v1373_v20 }
0x11cf   :  { %1375 = vrot.lane.b32.xlu1 %v1374_v23, %s2700_s2 }
0x11e9   :  { %v1698_v24 = vpop.permute.xlu2 %1697 }
0x11ea   :  { %v1700_v25 = vpop.permute.xlu0 %1699  ;;  %v1703_v26 = vmul.f32 %v2507_v39, %v1698_v24 }
0x11eb   :  { %v1704_v28 = vmul.f32 %v2509_v41, %v1700_v25 }
0x11ec   :  { %v1705_v17 = vpack.c.bf16 %v1703_v26, %v1703_v26 }
0x11ed   :  { %v1706_v16 = vpack.c.bf16 %v1704_v28, %v1704_v28 }
0x11ee   :  { %v1709_v29 = vunpack.c.l.b16 %v1705_v17 }
0x11ef   :  { %v1710_v30 = vunpack.c.l.b16 %v1706_v16 }
0x11f0   :  { %v1711_v27 = vrot.slane %v1709_v29, 2 }
0x11f1   :  { %v1712_v61 = vrot.slane %v1710_v30, 1 }
0x11f3   :  { %v1713_v31 = vsel %vm297_vm2, %v1712_v61, %v1711_v27 }
0x11f4   :  { %v1714_v32 = vpack.c.b16 %v1713_v31, %v1713_v31 }
0x11f6   :  { %1715 = vrot.lane.b32.xlu2 %v1714_v32, %s2700_s2 }
0x1241   :  { %v1376_v33 = vpop.permute.xlu1 %1375 }
0x1242   :  { %2276 = vmatmul.msk.bf16.vlgmr.msra.gmra.mxu3 %vm394_vm9, %v1376_v33 }
0x1243   :  { %2074 = vmatpush.bf16.msra.mxu3 %v3129_v0 }
0x1247   :  { %2075 = vmatpush.bf16.msra.mxu3 %v3132_v57 }
0x1250   :  { %v1716_v35 = vpop.permute.xlu2 %1715 }
0x1252   :  { %2287 = vmatmul.msk.bf16.vlgmr.msrb.gmra.mxu3 %vm394_vm9, %v1716_v35 }
0x12c5   :  { %v3275_v36 = vpop.f32.mrf.mxu3 }
0x12cd   :  { %v1391_v44 = vpop.f32.mrf.mxu3 }
0x12d5   :  { %v1729_v42 = vpop.f32.mrf.mxu3 }
0x12d6   :  { %v1734_v45 = vrot.slane %v1729_v42, 5  ;;  %v1735_v37 = vrot.slane %v1729_v42, 6 }
0x12d8   :  { %v1738_v22 = vadd.f32 %v1734_v45, %v3151_v48  ;;  %v1739_v39 = vadd.f32 %v1735_v37, %v3154_v5 }
0x12da   :  { %2518 = vtanh.f32 %v1738_v22  ;;  %v1740_v57 = vsub.f32 0.0, %v1738_v22  ;;  %v1741_v18 = vsub.f32 0.0, %v1739_v39 }
0x12db   :  { %2520 = vtanh.f32 %v1739_v39 }
0x12dc   :  { %v1742_v46 = vmul.f32 1.442695, %v1740_v57  ;;  %v1744_v34 = vmul.f32 1.442695, %v1741_v18 }
0x12dd   :  { %v1731_v40 = vpop.f32.mrf.mxu3 }
0x12de   :  { %2522 = vpow2.f32 %v1742_v46 }
0x12df   :  { %2524 = vpow2.f32 %v1744_v34 }
0x12e0   :  { %v2519_v41 = vpop.eup %2518 }
0x12e1   :  { %v2521_v0 = vpop.eup %2520  ;;  %1762 = vrot.lane.b32.xlu0 %v2519_v41, %s2696_s9 }
0x12e2   :  { %1764 = vrot.lane.b32.xlu1 %v2521_v0, %s2696_s9 }
0x12e4   :  { %v2523_v14 = vpop.eup %2522 }
0x12e5   :  { %v2525_v43 = vpop.eup %2524  ;;  %v1746_v53 = vadd.f32 1.0, %v2523_v14 }
0x12e6   :  { %v1747_v38 = vadd.f32 1.0, %v2525_v43 }
0x12e7   :  { %2526 = vrcp.f32 %v1746_v53 }
0x12e8   :  { %2528 = vrcp.f32 %v1747_v38 }
0x12ed   :  { %v2527_v56 = vpop.eup %2526 }
0x12ee   :  { %v2529_v62 = vpop.eup %2528  ;;  %v1758_v3 = vmul.f32 %v2527_v56, %v1754_v6 }
0x12ef   :  { %v1759_v11 = vmul.f32 %v2529_v62, %v1755_v9 }
0x1353   :  { %v1763_v55 = vpop.permute.xlu0 %1762 }
0x1354   :  { %v1765_v1 = vpop.permute.xlu1 %1764  ;;  %v1768_v21 = vmul.f32 %v2527_v56, %v1763_v55 }
0x1355   :  { %v1769_v52 = vmul.f32 %v2529_v62, %v1765_v1 }
0x1356   :  { %1772 = vrot.lane.b32.xlu2 %v1768_v21, %s2700_s2 }
0x1357   :  { %1774 = vrot.lane.b32.xlu0 %v1769_v52, %s2700_s2 }
0x13b0   :  { %v1773_v4 = vpop.permute.xlu2 %1772 }
0x13b1   :  { %v3284_v63 = vadd.f32 %v1773_v4, %v1758_v3 }
0x13b3   :  { %2530 = vtanh.f32 %v3284_v63  ;;  %v1841_v38 = vrot.slane %v3284_v63, 7 }
0x13b9   :  { %v2531_v7 = vpop.eup %2530 }
0x13ba   :  { %1784 = vrot.lane.b32.xlu1 %v2531_v7, %s2696_s9 }
0x13c9   :  { %v1775_v51 = vpop.permute.xlu0 %1774 }
0x13ca   :  { %v1779_v10 = vadd.f32 %v1775_v51, %v1759_v11 }
0x13cc   :  { %2532 = vtanh.f32 %v1779_v10  ;;  %v1842_v46 = vrot.slane %v1779_v10, 7 }
0x13d2   :  { %v2533_v12 = vpop.eup %2532 }
0x13d3   :  { %1786 = vrot.lane.b32.xlu2 %v2533_v12, %s2696_s9 }
0x142c   :  { %v1785_v49 = vpop.permute.xlu1 %1784 }
0x142d   :  { %v1787_v8 = vpop.permute.xlu2 %1786  ;;  %v1790_v13 = vmul.f32 %v2527_v56, %v1785_v49 }
0x142e   :  { %v1791_v15 = vmul.f32 %v2529_v62, %v1787_v8 }
0x142f   :  { %v1792_v50 = vpack.c.bf16 %v1790_v13, %v1790_v13 }
0x1430   :  { %v1793_v19 = vpack.c.bf16 %v1791_v15, %v1791_v15 }
0x1431   :  { %v1796_v59 = vunpack.c.l.b16 %v1792_v50 }
0x1432   :  { %v1797_v20 = vunpack.c.l.b16 %v1793_v19 }
0x1433   :  { %v1798_v23 = vrot.slane %v1796_v59, 3 }
0x1434   :  { %v1799_v24 = vrot.slane %v1797_v20, 2 }
0x1436   :  { %v1800_v25 = vsel %vm297_vm2, %v1799_v24, %v1798_v23 }
0x1437   :  { %v1801_v2 = vpack.c.b16 %v1800_v25, %v1800_v25 }
0x1439   :  { %1802 = vrot.lane.b32.xlu0 %v1801_v2, %s2700_s2 }
0x14ab   :  { %v1803_v26 = vpop.permute.xlu0 %1802 }
0x14ac   :  { %2288 = vmatmul.msk.bf16.vlgmr.msra.gmra.mxu0 %vm394_vm9, %v1803_v26 }
0x1529   :  { %v1816_v28 = vpop.f32.mrf.mxu0 }
0x152a   :  { %v1821_v17 = vrot.slane %v1816_v28, 4  ;;  %v1822_v16 = vrot.slane %v1816_v28, 5 }
0x152c   :  { %v1825_v29 = vadd.f32 %v1821_v17, %v3151_v48  ;;  %v1826_v30 = vadd.f32 %v1822_v16, %v3154_v5 }
0x152e   :  { %2534 = vtanh.f32 %v1825_v29  ;;  %v1828_v32 = vsub.f32 0.0, %v1826_v30  ;;  %v1827_v42 = vsub.f32 0.0, %v1825_v29 }
0x152f   :  { %2536 = vtanh.f32 %v1826_v30 }
0x1530   :  { %v1831_v33 = vmul.f32 1.442695, %v1828_v32  ;;  %v1829_v37 = vmul.f32 1.442695, %v1827_v42 }
0x1531   :  { %v1818_v27 = vpop.f32.mrf.mxu0 }
0x1532   :  { %2538 = vpow2.f32 %v1831_v33 }
0x1534   :  { %v2535_v61 = vpop.eup %2534 }
0x1535   :  { %v2537_v31 = vpop.eup %2536  ;;  %1849 = vrot.lane.b32.xlu1 %v2535_v61, %s2696_s9 }
0x1536   :  { %1851 = vrot.lane.b32.xlu2 %v2537_v31, %s2696_s9 }
0x1538   :  { %v2539_v35 = vpop.eup %2538 }
0x1539   :  { %v1834_v44 = vadd.f32 1.0, %v2539_v35 }
0x153b   :  { %2540 = vrcp.f32 %v1834_v44 }
0x153c   :  { %2542 = vpow2.f32 %v1829_v37 }
0x1541   :  { %v2541_v45 = vpop.eup %2540 }
0x1542   :  { %v2543_v40 = vpop.eup %2542  ;;  %v1846_v34 = vmul.f32 %v2541_v45, %v1842_v46 }
0x1543   :  { %v1833_v41 = vadd.f32 1.0, %v2543_v40 }
0x1545   :  { %2544 = vrcp.f32 %v1833_v41 }
0x154b   :  { %v2545_v0 = vpop.eup %2544 }
0x154c   :  { %v1845_v56 = vmul.f32 %v2545_v0, %v1841_v38 }
0x1590   :  { %v1852_v22 = vpop.permute.xlu2 %1851 }
0x1591   :  { %v1856_v39 = vmul.f32 %v2541_v45, %v1852_v22 }
0x1593   :  { %1861 = vrot.lane.b32.xlu1 %v1856_v39, %s2700_s2 }
0x15a7   :  { %v1850_v57 = vpop.permute.xlu1 %1849 }
0x15a8   :  { %v1855_v18 = vmul.f32 %v2545_v0, %v1850_v57 }
0x15aa   :  { %1859 = vrot.lane.b32.xlu0 %v1855_v18, %s2700_s2 }
0x1605   :  { %v1862_v14 = vpop.permute.xlu1 %1861 }
0x1606   :  { %v1866_v43 = vadd.f32 %v1862_v14, %v1846_v34 }
0x1608   :  { %2546 = vtanh.f32 %v1866_v43  ;;  %v1929_v44 = vrot.slane %v1866_v43, 7 }
0x160e   :  { %v2547_v53 = vpop.eup %2546 }
0x160f   :  { %1873 = vrot.lane.b32.xlu0 %v2547_v53, %s2696_s9 }
0x161c   :  { %v1860_v55 = vpop.permute.xlu0 %1859 }
0x161d   :  { %v1865_v62 = vadd.f32 %v1860_v55, %v1845_v56 }
0x161f   :  { %2548 = vtanh.f32 %v1865_v62  ;;  %v1928_v35 = vrot.slane %v1865_v62, 7 }
0x1625   :  { %v2549_v1 = vpop.eup %2548 }
0x1626   :  { %1871 = vrot.lane.b32.xlu2 %v2549_v1, %s2696_s9 }
0x1680   :  { %v1872_v21 = vpop.permute.xlu2 %1871 }
0x1681   :  { %v1874_v52 = vpop.permute.xlu0 %1873  ;;  %v1877_v6 = vmul.f32 %v2545_v0, %v1872_v21 }
0x1682   :  { %v1878_v3 = vmul.f32 %v2541_v45, %v1874_v52 }
0x1683   :  { %v1879_v4 = vpack.c.bf16 %v1877_v6, %v1877_v6 }
0x1684   :  { %v1880_v7 = vpack.c.bf16 %v1878_v3, %v1878_v3 }
0x1685   :  { %v1883_v9 = vunpack.c.l.b16 %v1879_v4 }
0x1686   :  { %v1884_v11 = vunpack.c.l.b16 %v1880_v7 }
0x1687   :  { %v1885_v51 = vrot.slane %v1883_v9, 4 }
0x1688   :  { %v1886_v10 = vrot.slane %v1884_v11, 3 }
0x168a   :  { %v1887_v12 = vsel %vm297_vm2, %v1886_v10, %v1885_v51 }
0x168b   :  { %v1888_v63 = vpack.c.b16 %v1887_v12, %v1887_v12 }
0x168d   :  { %1889 = vrot.lane.b32.xlu1 %v1888_v63, %s2700_s2 }
0x16ff   :  { %v1890_v49 = vpop.permute.xlu1 %1889 }
0x1700   :  { %2289 = vmatmul.msk.bf16.vlgmr.msra.gmra.mxu1 %vm394_vm9, %v1890_v49 }
0x177d   :  { %v1903_v8 = vpop.f32.mrf.mxu1 }
0x177e   :  { %v1908_v13 = vrot.slane %v1903_v8, 3  ;;  %v1909_v15 = vrot.slane %v1903_v8, 4 }
0x1780   :  { %v1912_v50 = vadd.f32 %v1908_v13, %v3151_v48  ;;  %v1913_v19 = vadd.f32 %v1909_v15, %v3154_v5 }
0x1782   :  { %2550 = vtanh.f32 %v1912_v50  ;;  %v1914_v24 = vsub.f32 0.0, %v1912_v50  ;;  %v1915_v28 = vsub.f32 0.0, %v1913_v19 }
0x1783   :  { %2552 = vtanh.f32 %v1913_v19 }
0x1784   :  { %v1916_v25 = vmul.f32 1.442695, %v1914_v24  ;;  %v1918_v30 = vmul.f32 1.442695, %v1915_v28 }
0x1785   :  { %v1905_v59 = vpop.f32.mrf.mxu1 }
0x1786   :  { %2554 = vpow2.f32 %v1916_v25 }
0x1788   :  { %v2551_v20 = vpop.eup %2550 }
0x1789   :  { %v2553_v23 = vpop.eup %2552  ;;  %1936 = vrot.lane.b32.xlu2 %v2551_v20, %s2696_s9 }
0x178a   :  { %1938 = vrot.lane.b32.xlu0 %v2553_v23, %s2696_s9 }
0x178c   :  { %v2555_v2 = vpop.eup %2554 }
0x178d   :  { %v1920_v26 = vadd.f32 1.0, %v2555_v2 }
0x178f   :  { %2556 = vrcp.f32 %v1920_v26 }
0x1790   :  { %2558 = vpow2.f32 %v1918_v30 }
0x1795   :  { %v2557_v17 = vpop.eup %2556 }
0x1796   :  { %v2559_v27 = vpop.eup %2558  ;;  %v1932_v42 = vmul.f32 %v2557_v17, %v1928_v35 }
0x1797   :  { %v1921_v61 = vadd.f32 1.0, %v2559_v27 }
0x1799   :  { %2560 = vrcp.f32 %v1921_v61 }
0x179f   :  { %v2561_v31 = vpop.eup %2560 }
0x17a0   :  { %v1933_v45 = vmul.f32 %v2561_v31, %v1929_v44 }
0x17e3   :  { %v1937_v16 = vpop.permute.xlu2 %1936 }
0x17e4   :  { %v1942_v29 = vmul.f32 %v2557_v17, %v1937_v16  ;;  %v1395_v16 = vrot.slane %v3275_v36, 2 }
0x17e6   :  { %1946 = vrot.lane.b32.xlu1 %v1942_v29, %s2700_s2  ;;  %v1399_v29 = vadd.f32 %v1395_v16, %v3074_v58 }
0x17fc   :  { %v1939_v32 = vpop.permute.xlu0 %1938 }
0x17fd   :  { %v1943_v33 = vmul.f32 %v2561_v31, %v1939_v32 }
0x17ff   :  { %1948 = vrot.lane.b32.xlu2 %v1943_v33, %s2700_s2 }
0x1858   :  { %v1947_v37 = vpop.permute.xlu1 %1946 }
0x1859   :  { %v1949_v22 = vpop.permute.xlu2 %1948  ;;  %v1952_v39 = vadd.f32 %v1947_v37, %v1932_v42 }
0x185a   :  { %v3311_v40 = vadd.f32 %v1949_v22, %v1933_v45 }
0x185b   :  { %2562 = vtanh.f32 %v1952_v39  ;;  %v2015_v2 = vrot.slane %v1952_v39, 7 }
0x185c   :  { %2564 = vtanh.f32 %v3311_v40  ;;  %v2016_v61 = vrot.slane %v3311_v40, 7 }
0x1861   :  { %v2563_v41 = vpop.eup %2562 }
0x1862   :  { %v2565_v0 = vpop.eup %2564  ;;  %1958 = vrot.lane.b32.xlu0 %v2563_v41, %s2696_s9  ;;  %v1394_v41 = vrot.slane %v3275_v36, 1 }
0x1863   :  { %1960 = vrot.lane.b32.xlu1 %v2565_v0, %s2696_s9 }
0x18d4   :  { %v1959_v57 = vpop.permute.xlu0 %1958 }
0x18d5   :  { %v1961_v18 = vpop.permute.xlu1 %1960  ;;  %v1964_v46 = vmul.f32 %v2557_v17, %v1959_v57 }
0x18d6   :  { %v1965_v34 = vmul.f32 %v2561_v31, %v1961_v18  ;;  %v1398_v18 = vadd.f32 %v1394_v41, %v3072_v54 }
0x18d7   :  { %v1966_v14 = vpack.c.bf16 %v1964_v46, %v1964_v46 }
0x18d8   :  { %v1967_v43 = vpack.c.bf16 %v1965_v34, %v1965_v34 }
0x18d9   :  { %v1970_v53 = vunpack.c.l.b16 %v1966_v14 }
0x18da   :  { %v1971_v38 = vunpack.c.l.b16 %v1967_v43 }
0x18db   :  { %v1972_v56 = vrot.slane %v1970_v53, 5  ;;  %v1400_v53 = vsub.f32 0.0, %v1398_v18 }
0x18dc   :  { %v1973_v55 = vrot.slane %v1971_v38, 4  ;;  %v1401_v38 = vsub.f32 0.0, %v1399_v29 }
0x18dd   :  { %v1402_v36 = vmul.f32 1.442695, %v1400_v53 }
0x18de   :  { %v1974_v62 = vsel %vm297_vm2, %v1973_v55, %v1972_v56  ;;  %v1404_v56 = vmul.f32 1.442695, %v1401_v38 }
0x18df   :  { %v1975_v1 = vpack.c.b16 %v1974_v62, %v1974_v62 }
0x18e1   :  { %1976 = vrot.lane.b32.xlu2 %v1975_v1, %s2700_s2 }
0x193b   :  { %v1977_v21 = vpop.permute.xlu2 %1976 }
0x193c   :  { %2290 = vmatmul.msk.bf16.vlgmr.msra.gmra.mxu2 %vm394_vm9, %v1977_v21 }
0x19bf   :  { %v1990_v52 = vpop.f32.mrf.mxu2 }
0x19c0   :  { %v1995_v6 = vrot.slane %v1990_v52, 2  ;;  %v1996_v3 = vrot.slane %v1990_v52, 3 }
0x19c2   :  { %v1999_v4 = vadd.f32 %v1995_v6, %v3151_v48  ;;  %v2000_v7 = vadd.f32 %v1996_v3, %v3154_v5 }
0x19c4   :  { %2566 = vtanh.f32 %v1999_v4  ;;  %v2001_v10 = vsub.f32 0.0, %v1999_v4  ;;  %v2002_v12 = vsub.f32 0.0, %v2000_v7 }
0x19c5   :  { %2568 = vtanh.f32 %v2000_v7 }
0x19c6   :  { %v2003_v63 = vmul.f32 1.442695, %v2001_v10  ;;  %v2005_v49 = vmul.f32 1.442695, %v2002_v12 }
0x19c7   :  { %v1992_v9 = vpop.f32.mrf.mxu2 }
0x19c8   :  { %2570 = vpow2.f32 %v2003_v63 }
0x19c9   :  { %2572 = vpow2.f32 %v2005_v49 }
0x19ca   :  { %v2567_v11 = vpop.eup %2566 }
0x19cb   :  { %v2569_v51 = vpop.eup %2568  ;;  %2023 = vrot.lane.b32.xlu0 %v2567_v11, %s2696_s9 }
0x19cc   :  { %2025 = vrot.lane.b32.xlu1 %v2569_v51, %s2696_s9 }
0x19ce   :  { %v2571_v8 = vpop.eup %2570 }
0x19cf   :  { %v2573_v13 = vpop.eup %2572  ;;  %v2007_v15 = vadd.f32 1.0, %v2571_v8 }
0x19d0   :  { %v2008_v50 = vadd.f32 1.0, %v2573_v13 }
0x19d1   :  { %2574 = vrcp.f32 %v2007_v15 }
0x19d2   :  { %2576 = vrcp.f32 %v2008_v50 }
0x19d7   :  { %v2575_v19 = vpop.eup %2574 }
0x19d8   :  { %v2577_v20 = vpop.eup %2576  ;;  %v2019_v26 = vmul.f32 %v2575_v19, %v2015_v2 }
0x19d9   :  { %v2020_v31 = vmul.f32 %v2577_v20, %v2016_v61 }
0x1a3d   :  { %v2024_v59 = vpop.permute.xlu0 %2023 }
0x1a3e   :  { %v2026_v23 = vpop.permute.xlu1 %2025  ;;  %v2029_v24 = vmul.f32 %v2575_v19, %v2024_v59 }
0x1a3f   :  { %v2030_v25 = vmul.f32 %v2577_v20, %v2026_v23 }
0x1a40   :  { %2033 = vrot.lane.b32.xlu2 %v2029_v24, %s2700_s2  ;;  %v1415_v24 = vrot.slane %v3250_v60, 7 }
0x1a41   :  { %2035 = vrot.lane.b32.xlu0 %v2030_v25, %s2700_s2 }
0x1a9a   :  { %v2034_v28 = vpop.permute.xlu2 %2033 }
0x1a9b   :  { %v3325_v17 = vadd.f32 %v2034_v28, %v2019_v26 }
0x1a9d   :  { %2578 = vtanh.f32 %v3325_v17 }
0x1a9e   :  { %2580 = vtanh.f32 %v1399_v29 }
0x1aa3   :  { %v2579_v30 = vpop.eup %2578 }
0x1aa4   :  { %2045 = vrot.lane.b32.xlu1 %v2579_v30, %s2696_s9  ;;  %v2581_v27 = vpop.eup %2580 }
0x1aac   :  { %1424 = vrot.lane.b32.xlu1 %v2581_v27, %s2696_s9 }
0x1ab3   :  { %v2036_v32 = vpop.permute.xlu0 %2035 }
0x1ab4   :  { %v3333_v33 = vadd.f32 %v2036_v32, %v2020_v31  ;;  %v1414_v31 = vrot.slane %v3248_v47, 7 }
0x1ab6   :  { %2582 = vtanh.f32 %v3333_v33 }
0x1ab7   :  { %2584 = vtanh.f32 %v1398_v18 }
0x1ab8   :  { %2586 = vpow2.f32 %v1402_v36 }
0x1ab9   :  { %2588 = vpow2.f32 %v1404_v56 }
0x1abc   :  { %v2583_v35 = vpop.eup %2582 }
0x1abd   :  { %2047 = vrot.lane.b32.xlu2 %v2583_v35, %s2696_s9  ;;  %v2585_v14 = vpop.eup %2584 }
0x1abe   :  { %v2587_v52 = vpop.eup %2586 }
0x1abf   :  { %v2589_v6 = vpop.eup %2588  ;;  %v1406_v3 = vadd.f32 1.0, %v2587_v52 }
0x1ac0   :  { %v1407_v4 = vadd.f32 1.0, %v2589_v6 }
0x1b16   :  { %v2046_v44 = vpop.permute.xlu1 %2045 }
0x1b17   :  { %v2048_v58 = vpop.permute.xlu2 %2047  ;;  %v2051_v42 = vmul.f32 %v2575_v19, %v2046_v44 }
0x1b18   :  { %v2052_v45 = vmul.f32 %v2577_v20, %v2048_v58  ;;  %v2102_v58 = vrot.slane %v3325_v17, 7 }
0x1b19   :  { %v2053_v37 = vpack.c.bf16 %v2051_v42, %v2051_v42  ;;  %v2103_v42 = vrot.slane %v3333_v33, 7 }
0x1b1a   :  { %v2054_v22 = vpack.c.bf16 %v2052_v45, %v2052_v45 }
0x1b1b   :  { %v2057_v39 = vunpack.c.l.b16 %v2053_v37 }
0x1b1c   :  { %v2058_v0 = vunpack.c.l.b16 %v2054_v22 }
0x1b1d   :  { %v2059_v40 = vrot.slane %v2057_v39, 6 }
0x1b1e   :  { %v2060_v57 = vrot.slane %v2058_v0, 5  ;;  %v1425_v10 = vpop.permute.xlu1 %1424 }
0x1b20   :  { %v2061_v46 = vsel %vm297_vm2, %v2060_v57, %v2059_v40 }
0x1b21   :  { %v2062_v34 = vpack.c.b16 %v2061_v46, %v2061_v46 }
0x1b23   :  { %2063 = vrot.lane.b32.xlu0 %v2062_v34, %s2700_s2 }
0x1b2b   :  { %1422 = vrot.lane.b32.xlu0 %v2585_v14, %s2696_s9  ;;  %v2320_v14 = vld [vmem:[%s3386_s4 + $0x18] sm:$0xff] }
0x1b2c   :  { %2212 = vmatpush.bf16.msrb.mxu0 %v2320_v14 }
0x1b95   :  { %v2064_v43 = vpop.permute.xlu0 %2063 }
0x1b96   :  { %2291 = vmatmul.msk.bf16.vlgmr.msra.gmra.mxu3 %vm394_vm9, %v2064_v43  ;;  %v2319_v43 = vld [vmem:[%s3386_s4 + $0x10] sm:$0xff] }
0x1b97   :  { %2213 = vmatpush.bf16.msrb.mxu0 %v2319_v43 }
0x1b9d   :  { %v1423_v51 = vpop.permute.xlu0 %1422 }
0x1c19   :  { %v2077_v55 = vpop.f32.mrf.mxu3 }
0x1c1a   :  { %v2082_v54 = vrot.slane %v2077_v55, 1  ;;  %v2083_v62 = vrot.slane %v2077_v55, 2 }
0x1c1c   :  { %v2086_v1 = vadd.f32 %v2082_v54, %v3151_v48  ;;  %v2087_v21 = vadd.f32 %v2083_v62, %v3154_v5  ;;  %v2318_v62 = vld [vmem:[%s3386_s4 + $0x8] sm:$0xff] }
0x1c1d   :  { %2214 = vmatpush.bf16.msrb.mxu0 %v2318_v62 }
0x1c1e   :  { %2590 = vtanh.f32 %v2086_v1  ;;  %v2089_v49 = vsub.f32 0.0, %v2087_v21  ;;  %v2088_v50 = vsub.f32 0.0, %v2086_v1  ;;  %v2317_v1 = vld [vmem:[%s3386_s4] sm:$0xff] }
0x1c1f   :  { %2592 = vtanh.f32 %v2087_v21 }
0x1c20   :  { %2594 = vrcp.f32 %v1406_v3  ;;  %v2092_v8 = vmul.f32 1.442695, %v2089_v49  ;;  %v2090_v59 = vmul.f32 1.442695, %v2088_v50  ;;  %v2355_v49 = vld [vmem:[%s3387_s5] ss:$0 sm:$0xff] }
0x1c21   :  { %v2079_v7 = vpop.f32.mrf.mxu3  ;;  %2596 = vrcp.f32 %v1407_v4  ;;  %2215 = vmatpush.bf16.msrb.mxu0 %v2317_v1 }
0x1c22   :  { %2598 = vpow2.f32 %v2092_v8 }
0x1c24   :  { %v2591_v9 = vpop.eup %2590 }
0x1c25   :  { %v2593_v11 = vpop.eup %2592  ;;  %2110 = vrot.lane.b32.xlu1 %v2591_v9, %s2696_s9 }
0x1c26   :  { %2112 = vrot.lane.b32.xlu2 %v2593_v11, %s2696_s9  ;;  %v2595_v48 = vpop.eup %2594 }
0x1c27   :  { %v2597_v12 = vpop.eup %2596  ;;  %v1428_v5 = vmul.f32 %v2595_v48, %v1423_v51  ;;  %v1418_v32 = vmul.f32 %v2595_v48, %v1414_v31 }
0x1c28   :  { %v1429_v63 = vmul.f32 %v2597_v12, %v1425_v10  ;;  %v2599_v13 = vpop.eup %2598  ;;  %v1419_v25 = vmul.f32 %v2597_v12, %v1415_v24 }
0x1c29   :  { %v2095_v15 = vadd.f32 1.0, %v2599_v13 }
0x1c2b   :  { %2600 = vrcp.f32 %v2095_v15 }
0x1c2c   :  { %2602 = vpow2.f32 %v2090_v59 }
0x1c2d   :  { %1432 = vrot.lane.b32.xlu1 %v1428_v5, %s2700_s2 }
0x1c2e   :  { %1434 = vrot.lane.b32.xlu2 %v1429_v63, %s2700_s2 }
0x1c31   :  { %v2601_v19 = vpop.eup %2600 }
0x1c32   :  { %v2603_v28 = vpop.eup %2602  ;;  %v2107_v37 = vmul.f32 %v2601_v19, %v2103_v42 }
0x1c33   :  { %v2094_v16 = vadd.f32 1.0, %v2603_v28 }
0x1c80   :  { %v2113_v20 = vpop.permute.xlu2 %2112 }
0x1c81   :  { %v2117_v23 = vmul.f32 %v2601_v19, %v2113_v20 }
0x1c83   :  { %2122 = vrot.lane.b32.xlu0 %v2117_v23, %s2700_s2 }
0x1c88   :  { %v1435_v2 = vpop.permute.xlu2 %1434 }
0x1c89   :  { %v1439_v26 = vadd.f32 %v1435_v2, %v1419_v25 }
0x1c8b   :  { %2604 = vtanh.f32 %v1439_v26 }
0x1c8c   :  { %2606 = vrcp.f32 %v2094_v16 }
0x1c91   :  { %v2605_v29 = vpop.eup %2604 }
0x1c92   :  { %1446 = vrot.lane.b32.xlu0 %v2605_v29, %s2696_s9  ;;  %v2607_v30 = vpop.eup %2606 }
0x1c93   :  { %v2106_v45 = vmul.f32 %v2607_v30, %v2102_v58 }
0x1c97   :  { %v2111_v27 = vpop.permute.xlu1 %2110 }
0x1c98   :  { %v2116_v61 = vmul.f32 %v2607_v30, %v2111_v27 }
0x1c9a   :  { %2120 = vrot.lane.b32.xlu2 %v2116_v61, %s2700_s2 }
0x1c9f   :  { %v1433_v35 = vpop.permute.xlu1 %1432 }
0x1ca0   :  { %v1438_v60 = vadd.f32 %v1433_v35, %v1418_v32 }
0x1ca2   :  { %2608 = vtanh.f32 %v1438_v60 }
0x1ca8   :  { %v2609_v44 = vpop.eup %2608 }
0x1ca9   :  { %1444 = vrot.lane.b32.xlu2 %v2609_v44, %s2696_s9 }
0x1cf4   :  { %v2121_v22 = vpop.permute.xlu2 %2120 }
0x1cf5   :  { %v2123_v39 = vpop.permute.xlu0 %2122  ;;  %v2126_v41 = vadd.f32 %v2121_v22, %v2106_v45 }
0x1cf6   :  { %v2127_v0 = vadd.f32 %v2123_v39, %v2107_v37 }
0x1cf7   :  { %2610 = vtanh.f32 %v2126_v41 }
0x1cf8   :  { %2612 = vtanh.f32 %v2127_v0 }
0x1cfd   :  { %v2611_v47 = vpop.eup %2610 }
0x1cfe   :  { %v2613_v40 = vpop.eup %2612  ;;  %2132 = vrot.lane.b32.xlu0 %v2611_v47, %s2696_s9 }
0x1cff   :  { %2134 = vrot.lane.b32.xlu1 %v2613_v40, %s2696_s9 }
0x1d03   :  { %v1445_v18 = vpop.permute.xlu2 %1444 }
0x1d04   :  { %v1447_v57 = vpop.permute.xlu0 %1446  ;;  %v1450_v34 = vmul.f32 %v2595_v48, %v1445_v18 }
0x1d05   :  { %v1451_v46 = vmul.f32 %v2597_v12, %v1447_v57 }
0x1d07   :  { %v2142_v17 = vrot.slane %v1451_v46, 7 }
0x1d09   :  { %v2345_v33 = vpack.i.bf16 %v2142_v17, %v1450_v34 }
0x1d0b   :  { %2346 = vrot.lane.b32.xlu1 %v2345_v33, %s2700_s2 }
0x1d70   :  { %v2133_v53 = vpop.permute.xlu0 %2132 }
0x1d71   :  { %v2135_v38 = vpop.permute.xlu1 %2134  ;;  %v2138_v56 = vmul.f32 %v2607_v30, %v2133_v53 }
0x1d72   :  { %v2139_v36 = vmul.f32 %v2601_v19, %v2135_v38 }
0x1d74   :  { %v2151_v55 = vrot.slane %v2139_v36, 7 }
0x1d76   :  { %v2350_v54 = vpack.i.bf16 %v2151_v55, %v2138_v56 }
0x1d78   :  { %2351 = vrot.lane.b32.xlu2 %v2350_v54, %s2696_s9 }
0x1d7d   :  { %v2347_v21 = vpop.permute.xlu1 %2346 }
0x1d7e   :  { %v2349_v6 = vunpack.i.h.bf16 %v2347_v21  ;;  %v2348_v3 = vunpack.i.l.bf16 %v2347_v21 }
0x1dd2   :  { %v2352_v52 = vpop.permute.xlu2 %2351 }
0x1dd3   :  { %v2354_v4 = vunpack.i.h.bf16 %v2352_v52  ;;  %v2353_v7 = vunpack.i.l.bf16 %v2352_v52 }
0x1dd5   :  { %v2158_v9 = vsel %vm394_vm9, %v2348_v3, %v2353_v7  ;;  %v2159_v11 = vsel %vm394_vm9, %v2349_v6, %v2354_v4 }
0x1dd6   :  { %v2160_v51 = vpack.c.bf16 %v2159_v11, %v2158_v9 }
0x1dd8   :  { %v2174_v10 = vshrl.u32 %v2160_v51, 16  ;;  %v2177_v48 = vshll.u32 %v2160_v51, 16 }
0x1dda   :  { %v2176_v12 = vrot.slane %v2174_v10, 3  ;;  %v2179_v5 = vrot.slane %v2177_v48, 4 }
0x1ddc   :  { %v2180_v63 = vor.u32 %v2179_v5, %v2176_v12 }
0x1dde   :  { %2308 = vmatmul.msk.bf16.vlgmr.msrb.gmra.mxu0 %vm95_vm0, %v2180_v63 }
0x1e5b   :  { %v2217_v8 = vpop.f32.mrf.mxu0 }
0x1e5c   :  { %v2218_v13 = vadd.f32 %v2355_v49, %v2217_v8 }
0x1e5e   :  { %2222 = vst.msk [vmem:[#allocation8] sm:$0x3] %vm2221_vm10, %v2218_v13 }
0x1e5f   :  { %2233 = dma.vmem_to_hbm [thread:$0]  %s2229_s3, 32, %s2231_s13, [#allocation5]  }
0x1e63   :  { %v2219_v15 = vpop.f32.mrf.mxu0 }
0x1e64   :  { %2690 = dma.done.wait [#allocation5], 32  }
0x1e65   :  { %2691 = vsyncadd [#allocation5], 4294967264 }
0x1e66   :  { %2238 = vsyncpa [#allocation4], 1 }
0x1e67   :  { %2239 = vsyncpa [#allocation7], 1 }
0x1e68   :  { %2240 = vsyncpa [#allocation5], 1 }

</bundles_post_ra>
